<compile_context>
chip_gen: v6e
topology: v6e:2x2x1
jax: 0.10.0
libtpu: 0.0.40
codegen_flags: <defaults>
</compile_context>

<pallas_src>
from functools import partial

import numpy as np
import jax
import jax.numpy as jnp
from jax.experimental import pallas as pl
from jax.experimental.pallas import tpu as pltpu


# Network hyper-parameters fixed by the PyTorch DQN definition.
_C1, _K1, _S1 = 32, 8, 4
_C2, _K2, _S2 = 64, 4, 2
_C3, _K3, _S3 = 64, 3, 1
_FC1 = 512


def _conv_out_hw(h, w):
    h1, w1 = (h - _K1) // _S1 + 1, (w - _K1) // _S1 + 1
    h2, w2 = (h1 - _K2) // _S2 + 1, (w1 - _K2) // _S2 + 1
    h3, w3 = (h2 - _K3) // _S3 + 1, (w2 - _K3) // _S3 + 1
    return (h1, w1), (h2, w2), (h3, w3)


# ----------------------------------------------------------------------------
# Fused whole-network kernel (conv1 -> conv2 -> conv3 -> fc1 -> fc2)
# ----------------------------------------------------------------------------
def _make_dqn_kernel(tb, in_ch, hw):
    (oh1, ow1), (oh2, ow2), (oh3, ow3) = _conv_out_hw(*hw)
    q1 = _S1 * _S1 * in_ch                      # conv1 per-block patch width

    def kernel(x_ref, w1_ref, b1_ref, w2_ref, b2_ref, w3_ref, b3_ref,
               w4_ref, b4_ref, w5_ref, b5_ref, q_ref):
        # Input block: stride-4-blocked NHWC layout
        #   xb[n, hb, wb, e*4*C + r*C + c] = x_nhwc[n, 4*hb + e, 4*wb + r, c]
        xb = x_ref[...]                                        # [tb, H/4, W/4, 16*C] bf16

        # ---- conv1 (8x8 / stride 4): im2col fused as 4 block-shifted matmuls
        # dy = 4a + e, dx = 4b + r  =>  patch (i, j) reads blocks (i+a, j+b).
        acc1 = jnp.zeros((tb * oh1 * ow1, _C1), jnp.float32)
        for a in range(2):
            for b in range(2):
                xs = xb[:, a:a + oh1, b:b + ow1, :]            # static contiguous slice
                xs = xs.reshape(tb * oh1 * ow1, q1)            # rows in (n, i, j) order
                acc1 = acc1 + jnp.dot(xs, w1_ref[2 * a + b],
                                      preferred_element_type=jnp.float32)
        a1 = jnp.maximum(acc1 + b1_ref[...], 0.0).astype(jnp.bfloat16)
        a1 = a1.reshape(tb, oh1, ow1, _C1)

        # ---- conv2 (4x4 / stride 2): per output position, build the patch by
        # lane-concatenating statically indexed channels, then one MXU matmul.
        w2m, b2 = w2_ref[...], b2_ref[...]
        a2 = []                                                # (oh2*ow2) x [tb, 64]
        for i in range(oh2):
            for j in range(ow2):
                parts = [a1[:, _S2 * i + dy, _S2 * j + dx, :]
                         for dy in range(_K2) for dx in range(_K2)]
                patch = jnp.concatenate(parts, axis=-1)        # [tb, 4*4*32] bf16
                y = jnp.dot(patch, w2m, preferred_element_type=jnp.float32)
                a2.append(jnp.maximum(y + b2, 0.0).astype(jnp.bfloat16))

        # ---- conv3 (3x3 / stride 1): same scheme over conv2's per-position outputs.
        w3m, b3 = w3_ref[...], b3_ref[...]
        feats = []                                             # (oh3*ow3) x [tb, 64]
        for i in range(oh3):
            for j in range(ow3):
                parts = [a2[(i + dy) * ow2 + (j + dx)]
                         for dy in range(_K3) for dx in range(_K3)]
                patch = jnp.concatenate(parts, axis=-1)        # [tb, 3*3*64] bf16
                y = jnp.dot(patch, w3m, preferred_element_type=jnp.float32)
                feats.append(jnp.maximum(y + b3, 0.0).astype(jnp.bfloat16))

        # ---- flatten (NHWC (h, w, c) order; fc1 rows were permuted to match)
        flat = feats[0] if len(feats) == 1 else jnp.concatenate(feats, axis=-1)
        h = jnp.dot(flat, w4_ref[...], preferred_element_type=jnp.float32)
        h = jnp.maximum(h + b4_ref[...], 0.0).astype(jnp.bfloat16)
        q = jnp.dot(h, w5_ref[...], preferred_element_type=jnp.float32) + b5_ref[...]
        q_ref[...] = q.astype(q_ref.dtype)

    return kernel


def _pick_batch_tile(n):
    """Batch rows per grid step: full batch when tiny, else a multiple of 8,
    capped at 128 and small enough to give >=2 grid tiles (v7x has 2 TCs)."""
    if n <= 8:
        return n
    return min(128, ((n + 15) // 16) * 8)


def _resident_spec(arr):
    """Full-extent BlockSpec with a constant index_map -> fetched once, stays
    resident in VMEM across all batch tiles."""
    return pl.BlockSpec(arr.shape, (lambda nd: lambda g: (0,) * nd)(arr.ndim))


# ----------------------------------------------------------------------------
# Forward pass wrapper
# ----------------------------------------------------------------------------
def dqn_forward(params, x, *, num_actions):
    """x: [N, C, H, W] float32 (PyTorch layout) -> q_values [N, num_actions] f32."""
    n, c, h, w = x.shape
    assert h % _S1 == 0 and w % _S1 == 0, "H, W must be multiples of 4"
    (oh1, ow1), (oh2, ow2), (oh3, ow3) = _conv_out_hw(h, w)
    assert oh2 >= _K3 and ow2 >= _K3, "input too small for the conv stack"

    # One same-size relayout of the raw input (replaces the old NCHW->NHWC
    # transpose + 4x im2col patch materialization).
    # TODO(synk): fold this relayout into the kernel (pass raw NCHW and
    # transpose in VMEM) so the input is only touched once in HBM.
    xb = jnp.transpose(x, (0, 2, 3, 1))                         # NHWC
    xb = xb.reshape(n, h // _S1, _S1, w // _S1, _S1, c)
    xb = jnp.transpose(xb, (0, 1, 3, 2, 4, 5))
    xb = xb.reshape(n, h // _S1, w // _S1, _S1 * _S1 * c).astype(jnp.bfloat16)

    tb = _pick_batch_tile(n)
    n_pad = -(-n // tb) * tb
    if n_pad != n:
        xb = jnp.pad(xb, ((0, n_pad - n), (0, 0), (0, 0), (0, 0)))

    weight_args = (params["w1"], params["b1"], params["w2"], params["b2"],
                   params["w3"], params["b3"], params["w4"], params["b4"],
                   params["w5"], params["b5"])
    in_specs = [pl.BlockSpec((tb,) + xb.shape[1:], lambda g: (g, 0, 0, 0))]
    in_specs += [_resident_spec(arr) for arr in weight_args]

    q = pl.pallas_call(
        _make_dqn_kernel(tb, c, (h, w)),
        out_shape=jax.ShapeDtypeStruct((n_pad, num_actions), jnp.float32),
        grid=(n_pad // tb,),
        in_specs=in_specs,
        out_specs=pl.BlockSpec((tb, num_actions), lambda g: (g, 0)),
        compiler_params=pltpu.CompilerParams(
            dimension_semantics=("parallel",),
            vmem_limit_bytes=32 * 1024 * 1024,
        ),
    )(xb, *weight_args)
    return q[:n] if n_pad != n else q


# ----------------------------------------------------------------------------
# Parameters: raw torch-layout init + explicit repack into kernel layouts.
# ----------------------------------------------------------------------------
def init_dqn_params(key, in_ch, num_actions, hw):
    """Random torch-layout (OIHW / [out, in]) f32 parameters."""
    (_, _), (_, _), (oh3, ow3) = _conv_out_hw(*hw)
    conv_out = _C3 * oh3 * ow3
    ks = jax.random.split(key, 10)
    s = 0.05
    return {
        "conv1_w": jax.random.normal(ks[0], (_C1, in_ch, _K1, _K1), jnp.float32) * s,
        "conv1_b": jax.random.normal(ks[1], (_C1,), jnp.float32) * s,
        "conv2_w": jax.random.normal(ks[2], (_C2, _C1, _K2, _K2), jnp.float32) * s,
        "conv2_b": jax.random.normal(ks[3], (_C2,), jnp.float32) * s,
        "conv3_w": jax.random.normal(ks[4], (_C3, _C2, _K3, _K3), jnp.float32) * s,
        "conv3_b": jax.random.normal(ks[5], (_C3,), jnp.float32) * s,
        "fc1_w": jax.random.normal(ks[6], (_FC1, conv_out), jnp.float32) * s,
        "fc1_b": jax.random.normal(ks[7], (_FC1,), jnp.float32) * s,
        "fc2_w": jax.random.normal(ks[8], (num_actions, _FC1), jnp.float32) * s,
        "fc2_b": jax.random.normal(ks[9], (num_actions,), jnp.float32) * s,
    }


def pack_params(raw, hw):
    """Repack torch-layout weights into the kernel's VMEM-resident layouts
    (no zero padding anywhere -- true K and N everywhere)."""
    (_, _), (_, _), (oh3, ow3) = _conv_out_hw(*hw)
    in_ch = raw["conv1_w"].shape[1]
    p = {}
    # conv1: split the 8x8 kernel into 2x2 blocks of 4x4 (dy=4a+e, dx=4b+r),
    # each block is a [4*4*in_ch, 32] matmul operand with rows in (e, r, c) order.
    w1 = raw["conv1_w"].reshape(_C1, in_ch, 2, _S1, 2, _S1)     # (oc, c, a, e, b, r)
    w1 = jnp.transpose(w1, (2, 4, 3, 5, 1, 0))                  # (a, b, e, r, c, oc)
    p["w1"] = w1.reshape(4, _S1 * _S1 * in_ch, _C1).astype(jnp.bfloat16)
    p["b1"] = raw["conv1_b"].reshape(1, _C1)
    # conv2 / conv3: im2col weight matrices, rows in (dy, dx, c) order.
    p["w2"] = jnp.transpose(raw["conv2_w"], (2, 3, 1, 0)).reshape(
        _K2 * _K2 * _C1, _C2).astype(jnp.bfloat16)
    p["b2"] = raw["conv2_b"].reshape(1, _C2)
    p["w3"] = jnp.transpose(raw["conv3_w"], (2, 3, 1, 0)).reshape(
        _K3 * _K3 * _C2, _C3).astype(jnp.bfloat16)
    p["b3"] = raw["conv3_b"].reshape(1, _C3)
    # fc1: permute rows from torch's NCHW (c, h, w) flatten order to the
    # kernel's NHWC (h, w, c) order, then transpose to [conv_out, 512].
    w4 = raw["fc1_w"].reshape(_FC1, _C3, oh3, ow3)
    w4 = jnp.transpose(w4, (2, 3, 1, 0)).reshape(oh3 * ow3 * _C3, _FC1)
    p["w4"] = w4.astype(jnp.bfloat16)
    p["b4"] = raw["fc1_b"].reshape(1, _FC1)
    p["w5"] = jnp.transpose(raw["fc2_w"], (1, 0)).astype(jnp.bfloat16)
    p["b5"] = raw["fc2_b"].reshape(1, -1)
    return p


def reference_forward(raw, x):
    """Pure-JAX f32 reference matching the PyTorch module exactly."""
    dn = ("NCHW", "OIHW", "NCHW")
    h = jax.lax.conv_general_dilated(x, raw["conv1_w"], (_S1, _S1), "VALID",
                                     dimension_numbers=dn)
    h = jax.nn.relu(h + raw["conv1_b"][None, :, None, None])
    h = jax.lax.conv_general_dilated(h, raw["conv2_w"], (_S2, _S2), "VALID",
                                     dimension_numbers=dn)
    h = jax.nn.relu(h + raw["conv2_b"][None, :, None, None])
    h = jax.lax.conv_general_dilated(h, raw["conv3_w"], (_S3, _S3), "VALID",
                                     dimension_numbers=dn)
    h = jax.nn.relu(h + raw["conv3_b"][None, :, None, None])
    flat = h.reshape(x.shape[0], -1)                            # NCHW flatten
    h = jax.nn.relu(flat @ raw["fc1_w"].T + raw["fc1_b"])
    return h @ raw["fc2_w"].T + raw["fc2_b"]


if __name__ == "__main__":
    # Smallest Atari-like observation compatible with the 8/4 -> 4/2 -> 3/1
    # conv stack: 4 stacked frames of 36x36 (36 -> 8 -> 3 -> 1 spatially).
    batch, in_ch, hw = 2, 4, (36, 36)
    num_actions = 6

    key = jax.random.PRNGKey(0)
    pkey, xkey = jax.random.split(key)
    raw = init_dqn_params(pkey, in_ch, num_actions, hw)
    params = pack_params(raw, hw)
    x = jax.random.normal(xkey, (batch, in_ch) + hw, jnp.float32)

    fwd = jax.jit(partial(dqn_forward, num_actions=num_actions))
    q_values = jax.block_until_ready(fwd(params, x))
    assert q_values.shape == (batch, num_actions), q_values.shape
    assert q_values.dtype == jnp.float32

    # Correctness vs. an f32 pure-JAX reference (bf16 operands -> loose tol).
    q_ref = reference_forward(raw, x)
    np.testing.assert_allclose(np.asarray(q_values), np.asarray(q_ref),
                               rtol=0.1, atol=0.05)
    print("KERNEL_OK")
</pallas_src>

<mosaic_0001>
module attributes {stable_mosaic.version = 11 : i64} {
  func.func @kernel(%arg0: i32, %arg1: memref<2x9x9x64xbf16, #tpu.memory_space<vmem>>, %arg2: memref<4x64x32xbf16, #tpu.memory_space<vmem>>, %arg3: memref<1x32xf32, #tpu.memory_space<vmem>>, %arg4: memref<512x64xbf16, #tpu.memory_space<vmem>>, %arg5: memref<1x64xf32, #tpu.memory_space<vmem>>, %arg6: memref<576x64xbf16, #tpu.memory_space<vmem>>, %arg7: memref<1x64xf32, #tpu.memory_space<vmem>>, %arg8: memref<64x512xbf16, #tpu.memory_space<vmem>>, %arg9: memref<1x512xf32, #tpu.memory_space<vmem>>, %arg10: memref<512x6xbf16, #tpu.memory_space<vmem>>, %arg11: memref<1x6xf32, #tpu.memory_space<vmem>>, %arg12: memref<2x6xf32, #tpu.memory_space<vmem>>) attributes {dimension_semantics = [#tpu.dimension_semantics<parallel>], iteration_bounds = array<i64: 1>, scalar_prefetch = 0 : i64, scratch_operands = 0 : i64, tpu.core_type = #tpu.core_type<tc>, window_params = [{transform_indices = @transform_0, window_bounds = array<i64: 2, 9, 9, 64>}, {pipeline_mode = #tpu.pipeline_mode<synchronous>, transform_indices = @transform_1, window_bounds = array<i64: 4, 64, 32>}, {pipeline_mode = #tpu.pipeline_mode<synchronous>, transform_indices = @transform_2, window_bounds = array<i64: 1, 32>}, {pipeline_mode = #tpu.pipeline_mode<synchronous>, transform_indices = @transform_3, window_bounds = array<i64: 512, 64>}, {pipeline_mode = #tpu.pipeline_mode<synchronous>, transform_indices = @transform_4, window_bounds = array<i64: 1, 64>}, {pipeline_mode = #tpu.pipeline_mode<synchronous>, transform_indices = @transform_5, window_bounds = array<i64: 576, 64>}, {pipeline_mode = #tpu.pipeline_mode<synchronous>, transform_indices = @transform_6, window_bounds = array<i64: 1, 64>}, {pipeline_mode = #tpu.pipeline_mode<synchronous>, transform_indices = @transform_7, window_bounds = array<i64: 64, 512>}, {pipeline_mode = #tpu.pipeline_mode<synchronous>, transform_indices = @transform_8, window_bounds = array<i64: 1, 512>}, {pipeline_mode = #tpu.pipeline_mode<synchronous>, transform_indices = @transform_9, window_bounds = array<i64: 512, 6>}, {pipeline_mode = #tpu.pipeline_mode<synchronous>, transform_indices = @transform_10, window_bounds = array<i64: 1, 6>}, {transform_indices = @transform_11, window_bounds = array<i64: 2, 6>}]} {
    %c0 = arith.constant 0 : index
    %c0_0 = arith.constant 0 : index
    %c0_1 = arith.constant 0 : index
    %c0_2 = arith.constant 0 : index
    %0 = vector.load %arg1[%c0, %c0_0, %c0_1, %c0_2] : memref<2x9x9x64xbf16, #tpu.memory_space<vmem>>, vector<2x9x9x64xbf16>
    %cst = arith.constant 0.000000e+00 : f32
    %1 = vector.broadcast %cst : f32 to vector<128x32xf32>
    %2 = vector.extract_strided_slice %0 {offsets = [0, 0, 0, 0], sizes = [2, 8, 8, 64], strides = [1, 1, 1, 1]} : vector<2x9x9x64xbf16> to vector<2x8x8x64xbf16>
    %3 = vector.shape_cast %2 : vector<2x8x8x64xbf16> to vector<128x64xbf16>
    %c0_3 = arith.constant 0 : index
    %c0_4 = arith.constant 0 : index
    %c0_5 = arith.constant 0 : index
    %4 = vector.load %arg2[%c0_3, %c0_4, %c0_5] : memref<4x64x32xbf16, #tpu.memory_space<vmem>>, vector<1x64x32xbf16>
    %5 = vector.shape_cast %4 : vector<1x64x32xbf16> to vector<64x32xbf16>
    %cst_6 = arith.constant dense<0.000000e+00> : vector<128x32xf32>
    %6 = tpu.matmul %3, %5, %cst_6 {dimension_numbers = #tpu.dot_dimension_numbers<[1], [0], [0], [1], [0, 0, 1, 1], [], []>} : vector<128x64xbf16>, vector<64x32xbf16>, vector<128x32xf32> -> vector<128x32xf32>
    %7 = arith.addf %1, %6 : vector<128x32xf32>
    %8 = vector.extract_strided_slice %0 {offsets = [0, 0, 1, 0], sizes = [2, 8, 8, 64], strides = [1, 1, 1, 1]} : vector<2x9x9x64xbf16> to vector<2x8x8x64xbf16>
    %9 = vector.shape_cast %8 : vector<2x8x8x64xbf16> to vector<128x64xbf16>
    %c1 = arith.constant 1 : index
    %c0_7 = arith.constant 0 : index
    %c0_8 = arith.constant 0 : index
    %10 = vector.load %arg2[%c1, %c0_7, %c0_8] : memref<4x64x32xbf16, #tpu.memory_space<vmem>>, vector<1x64x32xbf16>
    %11 = vector.shape_cast %10 : vector<1x64x32xbf16> to vector<64x32xbf16>
    %cst_9 = arith.constant dense<0.000000e+00> : vector<128x32xf32>
    %12 = tpu.matmul %9, %11, %cst_9 {dimension_numbers = #tpu.dot_dimension_numbers<[1], [0], [0], [1], [0, 0, 1, 1], [], []>} : vector<128x64xbf16>, vector<64x32xbf16>, vector<128x32xf32> -> vector<128x32xf32>
    %13 = arith.addf %7, %12 : vector<128x32xf32>
    %14 = vector.extract_strided_slice %0 {offsets = [0, 1, 0, 0], sizes = [2, 8, 8, 64], strides = [1, 1, 1, 1]} : vector<2x9x9x64xbf16> to vector<2x8x8x64xbf16>
    %15 = vector.shape_cast %14 : vector<2x8x8x64xbf16> to vector<128x64xbf16>
    %c2 = arith.constant 2 : index
    %c0_10 = arith.constant 0 : index
    %c0_11 = arith.constant 0 : index
    %16 = vector.load %arg2[%c2, %c0_10, %c0_11] : memref<4x64x32xbf16, #tpu.memory_space<vmem>>, vector<1x64x32xbf16>
    %17 = vector.shape_cast %16 : vector<1x64x32xbf16> to vector<64x32xbf16>
    %cst_12 = arith.constant dense<0.000000e+00> : vector<128x32xf32>
    %18 = tpu.matmul %15, %17, %cst_12 {dimension_numbers = #tpu.dot_dimension_numbers<[1], [0], [0], [1], [0, 0, 1, 1], [], []>} : vector<128x64xbf16>, vector<64x32xbf16>, vector<128x32xf32> -> vector<128x32xf32>
    %19 = arith.addf %13, %18 : vector<128x32xf32>
    %20 = vector.extract_strided_slice %0 {offsets = [0, 1, 1, 0], sizes = [2, 8, 8, 64], strides = [1, 1, 1, 1]} : vector<2x9x9x64xbf16> to vector<2x8x8x64xbf16>
    %21 = vector.shape_cast %20 : vector<2x8x8x64xbf16> to vector<128x64xbf16>
    %c3 = arith.constant 3 : index
    %c0_13 = arith.constant 0 : index
    %c0_14 = arith.constant 0 : index
    %22 = vector.load %arg2[%c3, %c0_13, %c0_14] : memref<4x64x32xbf16, #tpu.memory_space<vmem>>, vector<1x64x32xbf16>
    %23 = vector.shape_cast %22 : vector<1x64x32xbf16> to vector<64x32xbf16>
    %cst_15 = arith.constant dense<0.000000e+00> : vector<128x32xf32>
    %24 = tpu.matmul %21, %23, %cst_15 {dimension_numbers = #tpu.dot_dimension_numbers<[1], [0], [0], [1], [0, 0, 1, 1], [], []>} : vector<128x64xbf16>, vector<64x32xbf16>, vector<128x32xf32> -> vector<128x32xf32>
    %25 = arith.addf %19, %24 : vector<128x32xf32>
    %c0_16 = arith.constant 0 : index
    %c0_17 = arith.constant 0 : index
    %26 = vector.load %arg3[%c0_16, %c0_17] : memref<1x32xf32, #tpu.memory_space<vmem>>, vector<1x32xf32>
    %27 = vector.broadcast %26 : vector<1x32xf32> to vector<128x32xf32>
    %28 = arith.addf %25, %27 : vector<128x32xf32>
    %cst_18 = arith.constant 0.000000e+00 : f32
    %29 = vector.broadcast %cst_18 : f32 to vector<128x32xf32>
    %30 = arith.maximumf %28, %29 : vector<128x32xf32>
    %31 = arith.truncf %30 : vector<128x32xf32> to vector<128x32xbf16>
    %32 = vector.shape_cast %31 : vector<128x32xbf16> to vector<2x8x8x32xbf16>
    %c0_19 = arith.constant 0 : index
    %c0_20 = arith.constant 0 : index
    %33 = vector.load %arg4[%c0_19, %c0_20] : memref<512x64xbf16, #tpu.memory_space<vmem>>, vector<512x64xbf16>
    %c0_21 = arith.constant 0 : index
    %c0_22 = arith.constant 0 : index
    %34 = vector.load %arg5[%c0_21, %c0_22] : memref<1x64xf32, #tpu.memory_space<vmem>>, vector<1x64xf32>
    %35 = vector.extract_strided_slice %32 {offsets = [0, 0, 0, 0], sizes = [2, 1, 1, 32], strides = [1, 1, 1, 1]} : vector<2x8x8x32xbf16> to vector<2x1x1x32xbf16>
    %36 = vector.shape_cast %35 : vector<2x1x1x32xbf16> to vector<2x32xbf16>
    %37 = vector.extract_strided_slice %32 {offsets = [0, 0, 1, 0], sizes = [2, 1, 1, 32], strides = [1, 1, 1, 1]} : vector<2x8x8x32xbf16> to vector<2x1x1x32xbf16>
    %38 = vector.shape_cast %37 : vector<2x1x1x32xbf16> to vector<2x32xbf16>
    %39 = vector.extract_strided_slice %32 {offsets = [0, 0, 2, 0], sizes = [2, 1, 1, 32], strides = [1, 1, 1, 1]} : vector<2x8x8x32xbf16> to vector<2x1x1x32xbf16>
    %40 = vector.shape_cast %39 : vector<2x1x1x32xbf16> to vector<2x32xbf16>
    %41 = vector.extract_strided_slice %32 {offsets = [0, 0, 3, 0], sizes = [2, 1, 1, 32], strides = [1, 1, 1, 1]} : vector<2x8x8x32xbf16> to vector<2x1x1x32xbf16>
    %42 = vector.shape_cast %41 : vector<2x1x1x32xbf16> to vector<2x32xbf16>
    %43 = vector.extract_strided_slice %32 {offsets = [0, 1, 0, 0], sizes = [2, 1, 1, 32], strides = [1, 1, 1, 1]} : vector<2x8x8x32xbf16> to vector<2x1x1x32xbf16>
    %44 = vector.shape_cast %43 : vector<2x1x1x32xbf16> to vector<2x32xbf16>
    %45 = vector.extract_strided_slice %32 {offsets = [0, 1, 1, 0], sizes = [2, 1, 1, 32], strides = [1, 1, 1, 1]} : vector<2x8x8x32xbf16> to vector<2x1x1x32xbf16>
    %46 = vector.shape_cast %45 : vector<2x1x1x32xbf16> to vector<2x32xbf16>
    %47 = vector.extract_strided_slice %32 {offsets = [0, 1, 2, 0], sizes = [2, 1, 1, 32], strides = [1, 1, 1, 1]} : vector<2x8x8x32xbf16> to vector<2x1x1x32xbf16>
    %48 = vector.shape_cast %47 : vector<2x1x1x32xbf16> to vector<2x32xbf16>
    %49 = vector.extract_strided_slice %32 {offsets = [0, 1, 3, 0], sizes = [2, 1, 1, 32], strides = [1, 1, 1, 1]} : vector<2x8x8x32xbf16> to vector<2x1x1x32xbf16>
    %50 = vector.shape_cast %49 : vector<2x1x1x32xbf16> to vector<2x32xbf16>
    %51 = vector.extract_strided_slice %32 {offsets = [0, 2, 0, 0], sizes = [2, 1, 1, 32], strides = [1, 1, 1, 1]} : vector<2x8x8x32xbf16> to vector<2x1x1x32xbf16>
    %52 = vector.shape_cast %51 : vector<2x1x1x32xbf16> to vector<2x32xbf16>
    %53 = vector.extract_strided_slice %32 {offsets = [0, 2, 1, 0], sizes = [2, 1, 1, 32], strides = [1, 1, 1, 1]} : vector<2x8x8x32xbf16> to vector<2x1x1x32xbf16>
    %54 = vector.shape_cast %53 : vector<2x1x1x32xbf16> to vector<2x32xbf16>
    %55 = vector.extract_strided_slice %32 {offsets = [0, 2, 2, 0], sizes = [2, 1, 1, 32], strides = [1, 1, 1, 1]} : vector<2x8x8x32xbf16> to vector<2x1x1x32xbf16>
    %56 = vector.shape_cast %55 : vector<2x1x1x32xbf16> to vector<2x32xbf16>
    %57 = vector.extract_strided_slice %32 {offsets = [0, 2, 3, 0], sizes = [2, 1, 1, 32], strides = [1, 1, 1, 1]} : vector<2x8x8x32xbf16> to vector<2x1x1x32xbf16>
    %58 = vector.shape_cast %57 : vector<2x1x1x32xbf16> to vector<2x32xbf16>
    %59 = vector.extract_strided_slice %32 {offsets = [0, 3, 0, 0], sizes = [2, 1, 1, 32], strides = [1, 1, 1, 1]} : vector<2x8x8x32xbf16> to vector<2x1x1x32xbf16>
    %60 = vector.shape_cast %59 : vector<2x1x1x32xbf16> to vector<2x32xbf16>
    %61 = vector.extract_strided_slice %32 {offsets = [0, 3, 1, 0], sizes = [2, 1, 1, 32], strides = [1, 1, 1, 1]} : vector<2x8x8x32xbf16> to vector<2x1x1x32xbf16>
    %62 = vector.shape_cast %61 : vector<2x1x1x32xbf16> to vector<2x32xbf16>
    %63 = vector.extract_strided_slice %32 {offsets = [0, 3, 2, 0], sizes = [2, 1, 1, 32], strides = [1, 1, 1, 1]} : vector<2x8x8x32xbf16> to vector<2x1x1x32xbf16>
    %64 = vector.shape_cast %63 : vector<2x1x1x32xbf16> to vector<2x32xbf16>
    %65 = vector.extract_strided_slice %32 {offsets = [0, 3, 3, 0], sizes = [2, 1, 1, 32], strides = [1, 1, 1, 1]} : vector<2x8x8x32xbf16> to vector<2x1x1x32xbf16>
    %66 = vector.shape_cast %65 : vector<2x1x1x32xbf16> to vector<2x32xbf16>
    %67 = tpu.concatenate %36, %38, %40, %42, %44, %46, %48, %50, %52, %54, %56, %58, %60, %62, %64, %66 in 1 : vector<2x32xbf16>, vector<2x32xbf16>, vector<2x32xbf16>, vector<2x32xbf16>, vector<2x32xbf16>, vector<2x32xbf16>, vector<2x32xbf16>, vector<2x32xbf16>, vector<2x32xbf16>, vector<2x32xbf16>, vector<2x32xbf16>, vector<2x32xbf16>, vector<2x32xbf16>, vector<2x32xbf16>, vector<2x32xbf16>, vector<2x32xbf16> -> vector<2x512xbf16>
    %cst_23 = arith.constant dense<0.000000e+00> : vector<2x64xf32>
    %68 = tpu.matmul %67, %33, %cst_23 {dimension_numbers = #tpu.dot_dimension_numbers<[1], [0], [0], [1], [0, 0, 1, 1], [], []>} : vector<2x512xbf16>, vector<512x64xbf16>, vector<2x64xf32> -> vector<2x64xf32>
    %69 = vector.broadcast %34 : vector<1x64xf32> to vector<2x64xf32>
    %70 = arith.addf %68, %69 : vector<2x64xf32>
    %cst_24 = arith.constant 0.000000e+00 : f32
    %71 = vector.broadcast %cst_24 : f32 to vector<2x64xf32>
    %72 = arith.maximumf %70, %71 : vector<2x64xf32>
    %73 = arith.truncf %72 : vector<2x64xf32> to vector<2x64xbf16>
    %74 = vector.extract_strided_slice %32 {offsets = [0, 0, 2, 0], sizes = [2, 1, 1, 32], strides = [1, 1, 1, 1]} : vector<2x8x8x32xbf16> to vector<2x1x1x32xbf16>
    %75 = vector.shape_cast %74 : vector<2x1x1x32xbf16> to vector<2x32xbf16>
    %76 = vector.extract_strided_slice %32 {offsets = [0, 0, 3, 0], sizes = [2, 1, 1, 32], strides = [1, 1, 1, 1]} : vector<2x8x8x32xbf16> to vector<2x1x1x32xbf16>
    %77 = vector.shape_cast %76 : vector<2x1x1x32xbf16> to vector<2x32xbf16>
    %78 = vector.extract_strided_slice %32 {offsets = [0, 0, 4, 0], sizes = [2, 1, 1, 32], strides = [1, 1, 1, 1]} : vector<2x8x8x32xbf16> to vector<2x1x1x32xbf16>
    %79 = vector.shape_cast %78 : vector<2x1x1x32xbf16> to vector<2x32xbf16>
    %80 = vector.extract_strided_slice %32 {offsets = [0, 0, 5, 0], sizes = [2, 1, 1, 32], strides = [1, 1, 1, 1]} : vector<2x8x8x32xbf16> to vector<2x1x1x32xbf16>
    %81 = vector.shape_cast %80 : vector<2x1x1x32xbf16> to vector<2x32xbf16>
    %82 = vector.extract_strided_slice %32 {offsets = [0, 1, 2, 0], sizes = [2, 1, 1, 32], strides = [1, 1, 1, 1]} : vector<2x8x8x32xbf16> to vector<2x1x1x32xbf16>
    %83 = vector.shape_cast %82 : vector<2x1x1x32xbf16> to vector<2x32xbf16>
    %84 = vector.extract_strided_slice %32 {offsets = [0, 1, 3, 0], sizes = [2, 1, 1, 32], strides = [1, 1, 1, 1]} : vector<2x8x8x32xbf16> to vector<2x1x1x32xbf16>
    %85 = vector.shape_cast %84 : vector<2x1x1x32xbf16> to vector<2x32xbf16>
    %86 = vector.extract_strided_slice %32 {offsets = [0, 1, 4, 0], sizes = [2, 1, 1, 32], strides = [1, 1, 1, 1]} : vector<2x8x8x32xbf16> to vector<2x1x1x32xbf16>
    %87 = vector.shape_cast %86 : vector<2x1x1x32xbf16> to vector<2x32xbf16>
    %88 = vector.extract_strided_slice %32 {offsets = [0, 1, 5, 0], sizes = [2, 1, 1, 32], strides = [1, 1, 1, 1]} : vector<2x8x8x32xbf16> to vector<2x1x1x32xbf16>
    %89 = vector.shape_cast %88 : vector<2x1x1x32xbf16> to vector<2x32xbf16>
    %90 = vector.extract_strided_slice %32 {offsets = [0, 2, 2, 0], sizes = [2, 1, 1, 32], strides = [1, 1, 1, 1]} : vector<2x8x8x32xbf16> to vector<2x1x1x32xbf16>
    %91 = vector.shape_cast %90 : vector<2x1x1x32xbf16> to vector<2x32xbf16>
    %92 = vector.extract_strided_slice %32 {offsets = [0, 2, 3, 0], sizes = [2, 1, 1, 32], strides = [1, 1, 1, 1]} : vector<2x8x8x32xbf16> to vector<2x1x1x32xbf16>
    %93 = vector.shape_cast %92 : vector<2x1x1x32xbf16> to vector<2x32xbf16>
    %94 = vector.extract_strided_slice %32 {offsets = [0, 2, 4, 0], sizes = [2, 1, 1, 32], strides = [1, 1, 1, 1]} : vector<2x8x8x32xbf16> to vector<2x1x1x32xbf16>
    %95 = vector.shape_cast %94 : vector<2x1x1x32xbf16> to vector<2x32xbf16>
    %96 = vector.extract_strided_slice %32 {offsets = [0, 2, 5, 0], sizes = [2, 1, 1, 32], strides = [1, 1, 1, 1]} : vector<2x8x8x32xbf16> to vector<2x1x1x32xbf16>
    %97 = vector.shape_cast %96 : vector<2x1x1x32xbf16> to vector<2x32xbf16>
    %98 = vector.extract_strided_slice %32 {offsets = [0, 3, 2, 0], sizes = [2, 1, 1, 32], strides = [1, 1, 1, 1]} : vector<2x8x8x32xbf16> to vector<2x1x1x32xbf16>
    %99 = vector.shape_cast %98 : vector<2x1x1x32xbf16> to vector<2x32xbf16>
    %100 = vector.extract_strided_slice %32 {offsets = [0, 3, 3, 0], sizes = [2, 1, 1, 32], strides = [1, 1, 1, 1]} : vector<2x8x8x32xbf16> to vector<2x1x1x32xbf16>
    %101 = vector.shape_cast %100 : vector<2x1x1x32xbf16> to vector<2x32xbf16>
    %102 = vector.extract_strided_slice %32 {offsets = [0, 3, 4, 0], sizes = [2, 1, 1, 32], strides = [1, 1, 1, 1]} : vector<2x8x8x32xbf16> to vector<2x1x1x32xbf16>
    %103 = vector.shape_cast %102 : vector<2x1x1x32xbf16> to vector<2x32xbf16>
    %104 = vector.extract_strided_slice %32 {offsets = [0, 3, 5, 0], sizes = [2, 1, 1, 32], strides = [1, 1, 1, 1]} : vector<2x8x8x32xbf16> to vector<2x1x1x32xbf16>
    %105 = vector.shape_cast %104 : vector<2x1x1x32xbf16> to vector<2x32xbf16>
    %106 = tpu.concatenate %75, %77, %79, %81, %83, %85, %87, %89, %91, %93, %95, %97, %99, %101, %103, %105 in 1 : vector<2x32xbf16>, vector<2x32xbf16>, vector<2x32xbf16>, vector<2x32xbf16>, vector<2x32xbf16>, vector<2x32xbf16>, vector<2x32xbf16>, vector<2x32xbf16>, vector<2x32xbf16>, vector<2x32xbf16>, vector<2x32xbf16>, vector<2x32xbf16>, vector<2x32xbf16>, vector<2x32xbf16>, vector<2x32xbf16>, vector<2x32xbf16> -> vector<2x512xbf16>
    %cst_25 = arith.constant dense<0.000000e+00> : vector<2x64xf32>
    %107 = tpu.matmul %106, %33, %cst_25 {dimension_numbers = #tpu.dot_dimension_numbers<[1], [0], [0], [1], [0, 0, 1, 1], [], []>} : vector<2x512xbf16>, vector<512x64xbf16>, vector<2x64xf32> -> vector<2x64xf32>
    %108 = vector.broadcast %34 : vector<1x64xf32> to vector<2x64xf32>
    %109 = arith.addf %107, %108 : vector<2x64xf32>
    %cst_26 = arith.constant 0.000000e+00 : f32
    %110 = vector.broadcast %cst_26 : f32 to vector<2x64xf32>
    %111 = arith.maximumf %109, %110 : vector<2x64xf32>
    %112 = arith.truncf %111 : vector<2x64xf32> to vector<2x64xbf16>
    %113 = vector.extract_strided_slice %32 {offsets = [0, 0, 4, 0], sizes = [2, 1, 1, 32], strides = [1, 1, 1, 1]} : vector<2x8x8x32xbf16> to vector<2x1x1x32xbf16>
    %114 = vector.shape_cast %113 : vector<2x1x1x32xbf16> to vector<2x32xbf16>
    %115 = vector.extract_strided_slice %32 {offsets = [0, 0, 5, 0], sizes = [2, 1, 1, 32], strides = [1, 1, 1, 1]} : vector<2x8x8x32xbf16> to vector<2x1x1x32xbf16>
    %116 = vector.shape_cast %115 : vector<2x1x1x32xbf16> to vector<2x32xbf16>
    %117 = vector.extract_strided_slice %32 {offsets = [0, 0, 6, 0], sizes = [2, 1, 1, 32], strides = [1, 1, 1, 1]} : vector<2x8x8x32xbf16> to vector<2x1x1x32xbf16>
    %118 = vector.shape_cast %117 : vector<2x1x1x32xbf16> to vector<2x32xbf16>
    %119 = vector.extract_strided_slice %32 {offsets = [0, 0, 7, 0], sizes = [2, 1, 1, 32], strides = [1, 1, 1, 1]} : vector<2x8x8x32xbf16> to vector<2x1x1x32xbf16>
    %120 = vector.shape_cast %119 : vector<2x1x1x32xbf16> to vector<2x32xbf16>
    %121 = vector.extract_strided_slice %32 {offsets = [0, 1, 4, 0], sizes = [2, 1, 1, 32], strides = [1, 1, 1, 1]} : vector<2x8x8x32xbf16> to vector<2x1x1x32xbf16>
    %122 = vector.shape_cast %121 : vector<2x1x1x32xbf16> to vector<2x32xbf16>
    %123 = vector.extract_strided_slice %32 {offsets = [0, 1, 5, 0], sizes = [2, 1, 1, 32], strides = [1, 1, 1, 1]} : vector<2x8x8x32xbf16> to vector<2x1x1x32xbf16>
    %124 = vector.shape_cast %123 : vector<2x1x1x32xbf16> to vector<2x32xbf16>
    %125 = vector.extract_strided_slice %32 {offsets = [0, 1, 6, 0], sizes = [2, 1, 1, 32], strides = [1, 1, 1, 1]} : vector<2x8x8x32xbf16> to vector<2x1x1x32xbf16>
    %126 = vector.shape_cast %125 : vector<2x1x1x32xbf16> to vector<2x32xbf16>
    %127 = vector.extract_strided_slice %32 {offsets = [0, 1, 7, 0], sizes = [2, 1, 1, 32], strides = [1, 1, 1, 1]} : vector<2x8x8x32xbf16> to vector<2x1x1x32xbf16>
    %128 = vector.shape_cast %127 : vector<2x1x1x32xbf16> to vector<2x32xbf16>
    %129 = vector.extract_strided_slice %32 {offsets = [0, 2, 4, 0], sizes = [2, 1, 1, 32], strides = [1, 1, 1, 1]} : vector<2x8x8x32xbf16> to vector<2x1x1x32xbf16>
    %130 = vector.shape_cast %129 : vector<2x1x1x32xbf16> to vector<2x32xbf16>
    %131 = vector.extract_strided_slice %32 {offsets = [0, 2, 5, 0], sizes = [2, 1, 1, 32], strides = [1, 1, 1, 1]} : vector<2x8x8x32xbf16> to vector<2x1x1x32xbf16>
    %132 = vector.shape_cast %131 : vector<2x1x1x32xbf16> to vector<2x32xbf16>
    %133 = vector.extract_strided_slice %32 {offsets = [0, 2, 6, 0], sizes = [2, 1, 1, 32], strides = [1, 1, 1, 1]} : vector<2x8x8x32xbf16> to vector<2x1x1x32xbf16>
    %134 = vector.shape_cast %133 : vector<2x1x1x32xbf16> to vector<2x32xbf16>
    %135 = vector.extract_strided_slice %32 {offsets = [0, 2, 7, 0], sizes = [2, 1, 1, 32], strides = [1, 1, 1, 1]} : vector<2x8x8x32xbf16> to vector<2x1x1x32xbf16>
    %136 = vector.shape_cast %135 : vector<2x1x1x32xbf16> to vector<2x32xbf16>
    %137 = vector.extract_strided_slice %32 {offsets = [0, 3, 4, 0], sizes = [2, 1, 1, 32], strides = [1, 1, 1, 1]} : vector<2x8x8x32xbf16> to vector<2x1x1x32xbf16>
    %138 = vector.shape_cast %137 : vector<2x1x1x32xbf16> to vector<2x32xbf16>
    %139 = vector.extract_strided_slice %32 {offsets = [0, 3, 5, 0], sizes = [2, 1, 1, 32], strides = [1, 1, 1, 1]} : vector<2x8x8x32xbf16> to vector<2x1x1x32xbf16>
    %140 = vector.shape_cast %139 : vector<2x1x1x32xbf16> to vector<2x32xbf16>
    %141 = vector.extract_strided_slice %32 {offsets = [0, 3, 6, 0], sizes = [2, 1, 1, 32], strides = [1, 1, 1, 1]} : vector<2x8x8x32xbf16> to vector<2x1x1x32xbf16>
    %142 = vector.shape_cast %141 : vector<2x1x1x32xbf16> to vector<2x32xbf16>
    %143 = vector.extract_strided_slice %32 {offsets = [0, 3, 7, 0], sizes = [2, 1, 1, 32], strides = [1, 1, 1, 1]} : vector<2x8x8x32xbf16> to vector<2x1x1x32xbf16>
    %144 = vector.shape_cast %143 : vector<2x1x1x32xbf16> to vector<2x32xbf16>
    %145 = tpu.concatenate %114, %116, %118, %120, %122, %124, %126, %128, %130, %132, %134, %136, %138, %140, %142, %144 in 1 : vector<2x32xbf16>, vector<2x32xbf16>, vector<2x32xbf16>, vector<2x32xbf16>, vector<2x32xbf16>, vector<2x32xbf16>, vector<2x32xbf16>, vector<2x32xbf16>, vector<2x32xbf16>, vector<2x32xbf16>, vector<2x32xbf16>, vector<2x32xbf16>, vector<2x32xbf16>, vector<2x32xbf16>, vector<2x32xbf16>, vector<2x32xbf16> -> vector<2x512xbf16>
    %cst_27 = arith.constant dense<0.000000e+00> : vector<2x64xf32>
    %146 = tpu.matmul %145, %33, %cst_27 {dimension_numbers = #tpu.dot_dimension_numbers<[1], [0], [0], [1], [0, 0, 1, 1], [], []>} : vector<2x512xbf16>, vector<512x64xbf16>, vector<2x64xf32> -> vector<2x64xf32>
    %147 = vector.broadcast %34 : vector<1x64xf32> to vector<2x64xf32>
    %148 = arith.addf %146, %147 : vector<2x64xf32>
    %cst_28 = arith.constant 0.000000e+00 : f32
    %149 = vector.broadcast %cst_28 : f32 to vector<2x64xf32>
    %150 = arith.maximumf %148, %149 : vector<2x64xf32>
    %151 = arith.truncf %150 : vector<2x64xf32> to vector<2x64xbf16>
    %152 = vector.extract_strided_slice %32 {offsets = [0, 2, 0, 0], sizes = [2, 1, 1, 32], strides = [1, 1, 1, 1]} : vector<2x8x8x32xbf16> to vector<2x1x1x32xbf16>
    %153 = vector.shape_cast %152 : vector<2x1x1x32xbf16> to vector<2x32xbf16>
    %154 = vector.extract_strided_slice %32 {offsets = [0, 2, 1, 0], sizes = [2, 1, 1, 32], strides = [1, 1, 1, 1]} : vector<2x8x8x32xbf16> to vector<2x1x1x32xbf16>
    %155 = vector.shape_cast %154 : vector<2x1x1x32xbf16> to vector<2x32xbf16>
    %156 = vector.extract_strided_slice %32 {offsets = [0, 2, 2, 0], sizes = [2, 1, 1, 32], strides = [1, 1, 1, 1]} : vector<2x8x8x32xbf16> to vector<2x1x1x32xbf16>
    %157 = vector.shape_cast %156 : vector<2x1x1x32xbf16> to vector<2x32xbf16>
    %158 = vector.extract_strided_slice %32 {offsets = [0, 2, 3, 0], sizes = [2, 1, 1, 32], strides = [1, 1, 1, 1]} : vector<2x8x8x32xbf16> to vector<2x1x1x32xbf16>
    %159 = vector.shape_cast %158 : vector<2x1x1x32xbf16> to vector<2x32xbf16>
    %160 = vector.extract_strided_slice %32 {offsets = [0, 3, 0, 0], sizes = [2, 1, 1, 32], strides = [1, 1, 1, 1]} : vector<2x8x8x32xbf16> to vector<2x1x1x32xbf16>
    %161 = vector.shape_cast %160 : vector<2x1x1x32xbf16> to vector<2x32xbf16>
    %162 = vector.extract_strided_slice %32 {offsets = [0, 3, 1, 0], sizes = [2, 1, 1, 32], strides = [1, 1, 1, 1]} : vector<2x8x8x32xbf16> to vector<2x1x1x32xbf16>
    %163 = vector.shape_cast %162 : vector<2x1x1x32xbf16> to vector<2x32xbf16>
    %164 = vector.extract_strided_slice %32 {offsets = [0, 3, 2, 0], sizes = [2, 1, 1, 32], strides = [1, 1, 1, 1]} : vector<2x8x8x32xbf16> to vector<2x1x1x32xbf16>
    %165 = vector.shape_cast %164 : vector<2x1x1x32xbf16> to vector<2x32xbf16>
    %166 = vector.extract_strided_slice %32 {offsets = [0, 3, 3, 0], sizes = [2, 1, 1, 32], strides = [1, 1, 1, 1]} : vector<2x8x8x32xbf16> to vector<2x1x1x32xbf16>
    %167 = vector.shape_cast %166 : vector<2x1x1x32xbf16> to vector<2x32xbf16>
    %168 = vector.extract_strided_slice %32 {offsets = [0, 4, 0, 0], sizes = [2, 1, 1, 32], strides = [1, 1, 1, 1]} : vector<2x8x8x32xbf16> to vector<2x1x1x32xbf16>
    %169 = vector.shape_cast %168 : vector<2x1x1x32xbf16> to vector<2x32xbf16>
    %170 = vector.extract_strided_slice %32 {offsets = [0, 4, 1, 0], sizes = [2, 1, 1, 32], strides = [1, 1, 1, 1]} : vector<2x8x8x32xbf16> to vector<2x1x1x32xbf16>
    %171 = vector.shape_cast %170 : vector<2x1x1x32xbf16> to vector<2x32xbf16>
    %172 = vector.extract_strided_slice %32 {offsets = [0, 4, 2, 0], sizes = [2, 1, 1, 32], strides = [1, 1, 1, 1]} : vector<2x8x8x32xbf16> to vector<2x1x1x32xbf16>
    %173 = vector.shape_cast %172 : vector<2x1x1x32xbf16> to vector<2x32xbf16>
    %174 = vector.extract_strided_slice %32 {offsets = [0, 4, 3, 0], sizes = [2, 1, 1, 32], strides = [1, 1, 1, 1]} : vector<2x8x8x32xbf16> to vector<2x1x1x32xbf16>
    %175 = vector.shape_cast %174 : vector<2x1x1x32xbf16> to vector<2x32xbf16>
    %176 = vector.extract_strided_slice %32 {offsets = [0, 5, 0, 0], sizes = [2, 1, 1, 32], strides = [1, 1, 1, 1]} : vector<2x8x8x32xbf16> to vector<2x1x1x32xbf16>
    %177 = vector.shape_cast %176 : vector<2x1x1x32xbf16> to vector<2x32xbf16>
    %178 = vector.extract_strided_slice %32 {offsets = [0, 5, 1, 0], sizes = [2, 1, 1, 32], strides = [1, 1, 1, 1]} : vector<2x8x8x32xbf16> to vector<2x1x1x32xbf16>
    %179 = vector.shape_cast %178 : vector<2x1x1x32xbf16> to vector<2x32xbf16>
    %180 = vector.extract_strided_slice %32 {offsets = [0, 5, 2, 0], sizes = [2, 1, 1, 32], strides = [1, 1, 1, 1]} : vector<2x8x8x32xbf16> to vector<2x1x1x32xbf16>
    %181 = vector.shape_cast %180 : vector<2x1x1x32xbf16> to vector<2x32xbf16>
    %182 = vector.extract_strided_slice %32 {offsets = [0, 5, 3, 0], sizes = [2, 1, 1, 32], strides = [1, 1, 1, 1]} : vector<2x8x8x32xbf16> to vector<2x1x1x32xbf16>
    %183 = vector.shape_cast %182 : vector<2x1x1x32xbf16> to vector<2x32xbf16>
    %184 = tpu.concatenate %153, %155, %157, %159, %161, %163, %165, %167, %169, %171, %173, %175, %177, %179, %181, %183 in 1 : vector<2x32xbf16>, vector<2x32xbf16>, vector<2x32xbf16>, vector<2x32xbf16>, vector<2x32xbf16>, vector<2x32xbf16>, vector<2x32xbf16>, vector<2x32xbf16>, vector<2x32xbf16>, vector<2x32xbf16>, vector<2x32xbf16>, vector<2x32xbf16>, vector<2x32xbf16>, vector<2x32xbf16>, vector<2x32xbf16>, vector<2x32xbf16> -> vector<2x512xbf16>
    %cst_29 = arith.constant dense<0.000000e+00> : vector<2x64xf32>
    %185 = tpu.matmul %184, %33, %cst_29 {dimension_numbers = #tpu.dot_dimension_numbers<[1], [0], [0], [1], [0, 0, 1, 1], [], []>} : vector<2x512xbf16>, vector<512x64xbf16>, vector<2x64xf32> -> vector<2x64xf32>
    %186 = vector.broadcast %34 : vector<1x64xf32> to vector<2x64xf32>
    %187 = arith.addf %185, %186 : vector<2x64xf32>
    %cst_30 = arith.constant 0.000000e+00 : f32
    %188 = vector.broadcast %cst_30 : f32 to vector<2x64xf32>
    %189 = arith.maximumf %187, %188 : vector<2x64xf32>
    %190 = arith.truncf %189 : vector<2x64xf32> to vector<2x64xbf16>
    %191 = vector.extract_strided_slice %32 {offsets = [0, 2, 2, 0], sizes = [2, 1, 1, 32], strides = [1, 1, 1, 1]} : vector<2x8x8x32xbf16> to vector<2x1x1x32xbf16>
    %192 = vector.shape_cast %191 : vector<2x1x1x32xbf16> to vector<2x32xbf16>
    %193 = vector.extract_strided_slice %32 {offsets = [0, 2, 3, 0], sizes = [2, 1, 1, 32], strides = [1, 1, 1, 1]} : vector<2x8x8x32xbf16> to vector<2x1x1x32xbf16>
    %194 = vector.shape_cast %193 : vector<2x1x1x32xbf16> to vector<2x32xbf16>
    %195 = vector.extract_strided_slice %32 {offsets = [0, 2, 4, 0], sizes = [2, 1, 1, 32], strides = [1, 1, 1, 1]} : vector<2x8x8x32xbf16> to vector<2x1x1x32xbf16>
    %196 = vector.shape_cast %195 : vector<2x1x1x32xbf16> to vector<2x32xbf16>
    %197 = vector.extract_strided_slice %32 {offsets = [0, 2, 5, 0], sizes = [2, 1, 1, 32], strides = [1, 1, 1, 1]} : vector<2x8x8x32xbf16> to vector<2x1x1x32xbf16>
    %198 = vector.shape_cast %197 : vector<2x1x1x32xbf16> to vector<2x32xbf16>
    %199 = vector.extract_strided_slice %32 {offsets = [0, 3, 2, 0], sizes = [2, 1, 1, 32], strides = [1, 1, 1, 1]} : vector<2x8x8x32xbf16> to vector<2x1x1x32xbf16>
    %200 = vector.shape_cast %199 : vector<2x1x1x32xbf16> to vector<2x32xbf16>
    %201 = vector.extract_strided_slice %32 {offsets = [0, 3, 3, 0], sizes = [2, 1, 1, 32], strides = [1, 1, 1, 1]} : vector<2x8x8x32xbf16> to vector<2x1x1x32xbf16>
    %202 = vector.shape_cast %201 : vector<2x1x1x32xbf16> to vector<2x32xbf16>
    %203 = vector.extract_strided_slice %32 {offsets = [0, 3, 4, 0], sizes = [2, 1, 1, 32], strides = [1, 1, 1, 1]} : vector<2x8x8x32xbf16> to vector<2x1x1x32xbf16>
    %204 = vector.shape_cast %203 : vector<2x1x1x32xbf16> to vector<2x32xbf16>
    %205 = vector.extract_strided_slice %32 {offsets = [0, 3, 5, 0], sizes = [2, 1, 1, 32], strides = [1, 1, 1, 1]} : vector<2x8x8x32xbf16> to vector<2x1x1x32xbf16>
    %206 = vector.shape_cast %205 : vector<2x1x1x32xbf16> to vector<2x32xbf16>
    %207 = vector.extract_strided_slice %32 {offsets = [0, 4, 2, 0], sizes = [2, 1, 1, 32], strides = [1, 1, 1, 1]} : vector<2x8x8x32xbf16> to vector<2x1x1x32xbf16>
    %208 = vector.shape_cast %207 : vector<2x1x1x32xbf16> to vector<2x32xbf16>
    %209 = vector.extract_strided_slice %32 {offsets = [0, 4, 3, 0], sizes = [2, 1, 1, 32], strides = [1, 1, 1, 1]} : vector<2x8x8x32xbf16> to vector<2x1x1x32xbf16>
    %210 = vector.shape_cast %209 : vector<2x1x1x32xbf16> to vector<2x32xbf16>
    %211 = vector.extract_strided_slice %32 {offsets = [0, 4, 4, 0], sizes = [2, 1, 1, 32], strides = [1, 1, 1, 1]} : vector<2x8x8x32xbf16> to vector<2x1x1x32xbf16>
    %212 = vector.shape_cast %211 : vector<2x1x1x32xbf16> to vector<2x32xbf16>
    %213 = vector.extract_strided_slice %32 {offsets = [0, 4, 5, 0], sizes = [2, 1, 1, 32], strides = [1, 1, 1, 1]} : vector<2x8x8x32xbf16> to vector<2x1x1x32xbf16>
    %214 = vector.shape_cast %213 : vector<2x1x1x32xbf16> to vector<2x32xbf16>
    %215 = vector.extract_strided_slice %32 {offsets = [0, 5, 2, 0], sizes = [2, 1, 1, 32], strides = [1, 1, 1, 1]} : vector<2x8x8x32xbf16> to vector<2x1x1x32xbf16>
    %216 = vector.shape_cast %215 : vector<2x1x1x32xbf16> to vector<2x32xbf16>
    %217 = vector.extract_strided_slice %32 {offsets = [0, 5, 3, 0], sizes = [2, 1, 1, 32], strides = [1, 1, 1, 1]} : vector<2x8x8x32xbf16> to vector<2x1x1x32xbf16>
    %218 = vector.shape_cast %217 : vector<2x1x1x32xbf16> to vector<2x32xbf16>
    %219 = vector.extract_strided_slice %32 {offsets = [0, 5, 4, 0], sizes = [2, 1, 1, 32], strides = [1, 1, 1, 1]} : vector<2x8x8x32xbf16> to vector<2x1x1x32xbf16>
    %220 = vector.shape_cast %219 : vector<2x1x1x32xbf16> to vector<2x32xbf16>
    %221 = vector.extract_strided_slice %32 {offsets = [0, 5, 5, 0], sizes = [2, 1, 1, 32], strides = [1, 1, 1, 1]} : vector<2x8x8x32xbf16> to vector<2x1x1x32xbf16>
    %222 = vector.shape_cast %221 : vector<2x1x1x32xbf16> to vector<2x32xbf16>
    %223 = tpu.concatenate %192, %194, %196, %198, %200, %202, %204, %206, %208, %210, %212, %214, %216, %218, %220, %222 in 1 : vector<2x32xbf16>, vector<2x32xbf16>, vector<2x32xbf16>, vector<2x32xbf16>, vector<2x32xbf16>, vector<2x32xbf16>, vector<2x32xbf16>, vector<2x32xbf16>, vector<2x32xbf16>, vector<2x32xbf16>, vector<2x32xbf16>, vector<2x32xbf16>, vector<2x32xbf16>, vector<2x32xbf16>, vector<2x32xbf16>, vector<2x32xbf16> -> vector<2x512xbf16>
    %cst_31 = arith.constant dense<0.000000e+00> : vector<2x64xf32>
    %224 = tpu.matmul %223, %33, %cst_31 {dimension_numbers = #tpu.dot_dimension_numbers<[1], [0], [0], [1], [0, 0, 1, 1], [], []>} : vector<2x512xbf16>, vector<512x64xbf16>, vector<2x64xf32> -> vector<2x64xf32>
    %225 = vector.broadcast %34 : vector<1x64xf32> to vector<2x64xf32>
    %226 = arith.addf %224, %225 : vector<2x64xf32>
    %cst_32 = arith.constant 0.000000e+00 : f32
    %227 = vector.broadcast %cst_32 : f32 to vector<2x64xf32>
    %228 = arith.maximumf %226, %227 : vector<2x64xf32>
    %229 = arith.truncf %228 : vector<2x64xf32> to vector<2x64xbf16>
    %230 = vector.extract_strided_slice %32 {offsets = [0, 2, 4, 0], sizes = [2, 1, 1, 32], strides = [1, 1, 1, 1]} : vector<2x8x8x32xbf16> to vector<2x1x1x32xbf16>
    %231 = vector.shape_cast %230 : vector<2x1x1x32xbf16> to vector<2x32xbf16>
    %232 = vector.extract_strided_slice %32 {offsets = [0, 2, 5, 0], sizes = [2, 1, 1, 32], strides = [1, 1, 1, 1]} : vector<2x8x8x32xbf16> to vector<2x1x1x32xbf16>
    %233 = vector.shape_cast %232 : vector<2x1x1x32xbf16> to vector<2x32xbf16>
    %234 = vector.extract_strided_slice %32 {offsets = [0, 2, 6, 0], sizes = [2, 1, 1, 32], strides = [1, 1, 1, 1]} : vector<2x8x8x32xbf16> to vector<2x1x1x32xbf16>
    %235 = vector.shape_cast %234 : vector<2x1x1x32xbf16> to vector<2x32xbf16>
    %236 = vector.extract_strided_slice %32 {offsets = [0, 2, 7, 0], sizes = [2, 1, 1, 32], strides = [1, 1, 1, 1]} : vector<2x8x8x32xbf16> to vector<2x1x1x32xbf16>
    %237 = vector.shape_cast %236 : vector<2x1x1x32xbf16> to vector<2x32xbf16>
    %238 = vector.extract_strided_slice %32 {offsets = [0, 3, 4, 0], sizes = [2, 1, 1, 32], strides = [1, 1, 1, 1]} : vector<2x8x8x32xbf16> to vector<2x1x1x32xbf16>
    %239 = vector.shape_cast %238 : vector<2x1x1x32xbf16> to vector<2x32xbf16>
    %240 = vector.extract_strided_slice %32 {offsets = [0, 3, 5, 0], sizes = [2, 1, 1, 32], strides = [1, 1, 1, 1]} : vector<2x8x8x32xbf16> to vector<2x1x1x32xbf16>
    %241 = vector.shape_cast %240 : vector<2x1x1x32xbf16> to vector<2x32xbf16>
    %242 = vector.extract_strided_slice %32 {offsets = [0, 3, 6, 0], sizes = [2, 1, 1, 32], strides = [1, 1, 1, 1]} : vector<2x8x8x32xbf16> to vector<2x1x1x32xbf16>
    %243 = vector.shape_cast %242 : vector<2x1x1x32xbf16> to vector<2x32xbf16>
    %244 = vector.extract_strided_slice %32 {offsets = [0, 3, 7, 0], sizes = [2, 1, 1, 32], strides = [1, 1, 1, 1]} : vector<2x8x8x32xbf16> to vector<2x1x1x32xbf16>
    %245 = vector.shape_cast %244 : vector<2x1x1x32xbf16> to vector<2x32xbf16>
    %246 = vector.extract_strided_slice %32 {offsets = [0, 4, 4, 0], sizes = [2, 1, 1, 32], strides = [1, 1, 1, 1]} : vector<2x8x8x32xbf16> to vector<2x1x1x32xbf16>
    %247 = vector.shape_cast %246 : vector<2x1x1x32xbf16> to vector<2x32xbf16>
    %248 = vector.extract_strided_slice %32 {offsets = [0, 4, 5, 0], sizes = [2, 1, 1, 32], strides = [1, 1, 1, 1]} : vector<2x8x8x32xbf16> to vector<2x1x1x32xbf16>
    %249 = vector.shape_cast %248 : vector<2x1x1x32xbf16> to vector<2x32xbf16>
    %250 = vector.extract_strided_slice %32 {offsets = [0, 4, 6, 0], sizes = [2, 1, 1, 32], strides = [1, 1, 1, 1]} : vector<2x8x8x32xbf16> to vector<2x1x1x32xbf16>
    %251 = vector.shape_cast %250 : vector<2x1x1x32xbf16> to vector<2x32xbf16>
    %252 = vector.extract_strided_slice %32 {offsets = [0, 4, 7, 0], sizes = [2, 1, 1, 32], strides = [1, 1, 1, 1]} : vector<2x8x8x32xbf16> to vector<2x1x1x32xbf16>
    %253 = vector.shape_cast %252 : vector<2x1x1x32xbf16> to vector<2x32xbf16>
    %254 = vector.extract_strided_slice %32 {offsets = [0, 5, 4, 0], sizes = [2, 1, 1, 32], strides = [1, 1, 1, 1]} : vector<2x8x8x32xbf16> to vector<2x1x1x32xbf16>
    %255 = vector.shape_cast %254 : vector<2x1x1x32xbf16> to vector<2x32xbf16>
    %256 = vector.extract_strided_slice %32 {offsets = [0, 5, 5, 0], sizes = [2, 1, 1, 32], strides = [1, 1, 1, 1]} : vector<2x8x8x32xbf16> to vector<2x1x1x32xbf16>
    %257 = vector.shape_cast %256 : vector<2x1x1x32xbf16> to vector<2x32xbf16>
    %258 = vector.extract_strided_slice %32 {offsets = [0, 5, 6, 0], sizes = [2, 1, 1, 32], strides = [1, 1, 1, 1]} : vector<2x8x8x32xbf16> to vector<2x1x1x32xbf16>
    %259 = vector.shape_cast %258 : vector<2x1x1x32xbf16> to vector<2x32xbf16>
    %260 = vector.extract_strided_slice %32 {offsets = [0, 5, 7, 0], sizes = [2, 1, 1, 32], strides = [1, 1, 1, 1]} : vector<2x8x8x32xbf16> to vector<2x1x1x32xbf16>
    %261 = vector.shape_cast %260 : vector<2x1x1x32xbf16> to vector<2x32xbf16>
    %262 = tpu.concatenate %231, %233, %235, %237, %239, %241, %243, %245, %247, %249, %251, %253, %255, %257, %259, %261 in 1 : vector<2x32xbf16>, vector<2x32xbf16>, vector<2x32xbf16>, vector<2x32xbf16>, vector<2x32xbf16>, vector<2x32xbf16>, vector<2x32xbf16>, vector<2x32xbf16>, vector<2x32xbf16>, vector<2x32xbf16>, vector<2x32xbf16>, vector<2x32xbf16>, vector<2x32xbf16>, vector<2x32xbf16>, vector<2x32xbf16>, vector<2x32xbf16> -> vector<2x512xbf16>
    %cst_33 = arith.constant dense<0.000000e+00> : vector<2x64xf32>
    %263 = tpu.matmul %262, %33, %cst_33 {dimension_numbers = #tpu.dot_dimension_numbers<[1], [0], [0], [1], [0, 0, 1, 1], [], []>} : vector<2x512xbf16>, vector<512x64xbf16>, vector<2x64xf32> -> vector<2x64xf32>
    %264 = vector.broadcast %34 : vector<1x64xf32> to vector<2x64xf32>
    %265 = arith.addf %263, %264 : vector<2x64xf32>
    %cst_34 = arith.constant 0.000000e+00 : f32
    %266 = vector.broadcast %cst_34 : f32 to vector<2x64xf32>
    %267 = arith.maximumf %265, %266 : vector<2x64xf32>
    %268 = arith.truncf %267 : vector<2x64xf32> to vector<2x64xbf16>
    %269 = vector.extract_strided_slice %32 {offsets = [0, 4, 0, 0], sizes = [2, 1, 1, 32], strides = [1, 1, 1, 1]} : vector<2x8x8x32xbf16> to vector<2x1x1x32xbf16>
    %270 = vector.shape_cast %269 : vector<2x1x1x32xbf16> to vector<2x32xbf16>
    %271 = vector.extract_strided_slice %32 {offsets = [0, 4, 1, 0], sizes = [2, 1, 1, 32], strides = [1, 1, 1, 1]} : vector<2x8x8x32xbf16> to vector<2x1x1x32xbf16>
    %272 = vector.shape_cast %271 : vector<2x1x1x32xbf16> to vector<2x32xbf16>
    %273 = vector.extract_strided_slice %32 {offsets = [0, 4, 2, 0], sizes = [2, 1, 1, 32], strides = [1, 1, 1, 1]} : vector<2x8x8x32xbf16> to vector<2x1x1x32xbf16>
    %274 = vector.shape_cast %273 : vector<2x1x1x32xbf16> to vector<2x32xbf16>
    %275 = vector.extract_strided_slice %32 {offsets = [0, 4, 3, 0], sizes = [2, 1, 1, 32], strides = [1, 1, 1, 1]} : vector<2x8x8x32xbf16> to vector<2x1x1x32xbf16>
    %276 = vector.shape_cast %275 : vector<2x1x1x32xbf16> to vector<2x32xbf16>
    %277 = vector.extract_strided_slice %32 {offsets = [0, 5, 0, 0], sizes = [2, 1, 1, 32], strides = [1, 1, 1, 1]} : vector<2x8x8x32xbf16> to vector<2x1x1x32xbf16>
    %278 = vector.shape_cast %277 : vector<2x1x1x32xbf16> to vector<2x32xbf16>
    %279 = vector.extract_strided_slice %32 {offsets = [0, 5, 1, 0], sizes = [2, 1, 1, 32], strides = [1, 1, 1, 1]} : vector<2x8x8x32xbf16> to vector<2x1x1x32xbf16>
    %280 = vector.shape_cast %279 : vector<2x1x1x32xbf16> to vector<2x32xbf16>
    %281 = vector.extract_strided_slice %32 {offsets = [0, 5, 2, 0], sizes = [2, 1, 1, 32], strides = [1, 1, 1, 1]} : vector<2x8x8x32xbf16> to vector<2x1x1x32xbf16>
    %282 = vector.shape_cast %281 : vector<2x1x1x32xbf16> to vector<2x32xbf16>
    %283 = vector.extract_strided_slice %32 {offsets = [0, 5, 3, 0], sizes = [2, 1, 1, 32], strides = [1, 1, 1, 1]} : vector<2x8x8x32xbf16> to vector<2x1x1x32xbf16>
    %284 = vector.shape_cast %283 : vector<2x1x1x32xbf16> to vector<2x32xbf16>
    %285 = vector.extract_strided_slice %32 {offsets = [0, 6, 0, 0], sizes = [2, 1, 1, 32], strides = [1, 1, 1, 1]} : vector<2x8x8x32xbf16> to vector<2x1x1x32xbf16>
    %286 = vector.shape_cast %285 : vector<2x1x1x32xbf16> to vector<2x32xbf16>
    %287 = vector.extract_strided_slice %32 {offsets = [0, 6, 1, 0], sizes = [2, 1, 1, 32], strides = [1, 1, 1, 1]} : vector<2x8x8x32xbf16> to vector<2x1x1x32xbf16>
    %288 = vector.shape_cast %287 : vector<2x1x1x32xbf16> to vector<2x32xbf16>
    %289 = vector.extract_strided_slice %32 {offsets = [0, 6, 2, 0], sizes = [2, 1, 1, 32], strides = [1, 1, 1, 1]} : vector<2x8x8x32xbf16> to vector<2x1x1x32xbf16>
    %290 = vector.shape_cast %289 : vector<2x1x1x32xbf16> to vector<2x32xbf16>
    %291 = vector.extract_strided_slice %32 {offsets = [0, 6, 3, 0], sizes = [2, 1, 1, 32], strides = [1, 1, 1, 1]} : vector<2x8x8x32xbf16> to vector<2x1x1x32xbf16>
    %292 = vector.shape_cast %291 : vector<2x1x1x32xbf16> to vector<2x32xbf16>
    %293 = vector.extract_strided_slice %32 {offsets = [0, 7, 0, 0], sizes = [2, 1, 1, 32], strides = [1, 1, 1, 1]} : vector<2x8x8x32xbf16> to vector<2x1x1x32xbf16>
    %294 = vector.shape_cast %293 : vector<2x1x1x32xbf16> to vector<2x32xbf16>
    %295 = vector.extract_strided_slice %32 {offsets = [0, 7, 1, 0], sizes = [2, 1, 1, 32], strides = [1, 1, 1, 1]} : vector<2x8x8x32xbf16> to vector<2x1x1x32xbf16>
    %296 = vector.shape_cast %295 : vector<2x1x1x32xbf16> to vector<2x32xbf16>
    %297 = vector.extract_strided_slice %32 {offsets = [0, 7, 2, 0], sizes = [2, 1, 1, 32], strides = [1, 1, 1, 1]} : vector<2x8x8x32xbf16> to vector<2x1x1x32xbf16>
    %298 = vector.shape_cast %297 : vector<2x1x1x32xbf16> to vector<2x32xbf16>
    %299 = vector.extract_strided_slice %32 {offsets = [0, 7, 3, 0], sizes = [2, 1, 1, 32], strides = [1, 1, 1, 1]} : vector<2x8x8x32xbf16> to vector<2x1x1x32xbf16>
    %300 = vector.shape_cast %299 : vector<2x1x1x32xbf16> to vector<2x32xbf16>
    %301 = tpu.concatenate %270, %272, %274, %276, %278, %280, %282, %284, %286, %288, %290, %292, %294, %296, %298, %300 in 1 : vector<2x32xbf16>, vector<2x32xbf16>, vector<2x32xbf16>, vector<2x32xbf16>, vector<2x32xbf16>, vector<2x32xbf16>, vector<2x32xbf16>, vector<2x32xbf16>, vector<2x32xbf16>, vector<2x32xbf16>, vector<2x32xbf16>, vector<2x32xbf16>, vector<2x32xbf16>, vector<2x32xbf16>, vector<2x32xbf16>, vector<2x32xbf16> -> vector<2x512xbf16>
    %cst_35 = arith.constant dense<0.000000e+00> : vector<2x64xf32>
    %302 = tpu.matmul %301, %33, %cst_35 {dimension_numbers = #tpu.dot_dimension_numbers<[1], [0], [0], [1], [0, 0, 1, 1], [], []>} : vector<2x512xbf16>, vector<512x64xbf16>, vector<2x64xf32> -> vector<2x64xf32>
    %303 = vector.broadcast %34 : vector<1x64xf32> to vector<2x64xf32>
    %304 = arith.addf %302, %303 : vector<2x64xf32>
    %cst_36 = arith.constant 0.000000e+00 : f32
    %305 = vector.broadcast %cst_36 : f32 to vector<2x64xf32>
    %306 = arith.maximumf %304, %305 : vector<2x64xf32>
    %307 = arith.truncf %306 : vector<2x64xf32> to vector<2x64xbf16>
    %308 = vector.extract_strided_slice %32 {offsets = [0, 4, 2, 0], sizes = [2, 1, 1, 32], strides = [1, 1, 1, 1]} : vector<2x8x8x32xbf16> to vector<2x1x1x32xbf16>
    %309 = vector.shape_cast %308 : vector<2x1x1x32xbf16> to vector<2x32xbf16>
    %310 = vector.extract_strided_slice %32 {offsets = [0, 4, 3, 0], sizes = [2, 1, 1, 32], strides = [1, 1, 1, 1]} : vector<2x8x8x32xbf16> to vector<2x1x1x32xbf16>
    %311 = vector.shape_cast %310 : vector<2x1x1x32xbf16> to vector<2x32xbf16>
    %312 = vector.extract_strided_slice %32 {offsets = [0, 4, 4, 0], sizes = [2, 1, 1, 32], strides = [1, 1, 1, 1]} : vector<2x8x8x32xbf16> to vector<2x1x1x32xbf16>
    %313 = vector.shape_cast %312 : vector<2x1x1x32xbf16> to vector<2x32xbf16>
    %314 = vector.extract_strided_slice %32 {offsets = [0, 4, 5, 0], sizes = [2, 1, 1, 32], strides = [1, 1, 1, 1]} : vector<2x8x8x32xbf16> to vector<2x1x1x32xbf16>
    %315 = vector.shape_cast %314 : vector<2x1x1x32xbf16> to vector<2x32xbf16>
    %316 = vector.extract_strided_slice %32 {offsets = [0, 5, 2, 0], sizes = [2, 1, 1, 32], strides = [1, 1, 1, 1]} : vector<2x8x8x32xbf16> to vector<2x1x1x32xbf16>
    %317 = vector.shape_cast %316 : vector<2x1x1x32xbf16> to vector<2x32xbf16>
    %318 = vector.extract_strided_slice %32 {offsets = [0, 5, 3, 0], sizes = [2, 1, 1, 32], strides = [1, 1, 1, 1]} : vector<2x8x8x32xbf16> to vector<2x1x1x32xbf16>
    %319 = vector.shape_cast %318 : vector<2x1x1x32xbf16> to vector<2x32xbf16>
    %320 = vector.extract_strided_slice %32 {offsets = [0, 5, 4, 0], sizes = [2, 1, 1, 32], strides = [1, 1, 1, 1]} : vector<2x8x8x32xbf16> to vector<2x1x1x32xbf16>
    %321 = vector.shape_cast %320 : vector<2x1x1x32xbf16> to vector<2x32xbf16>
    %322 = vector.extract_strided_slice %32 {offsets = [0, 5, 5, 0], sizes = [2, 1, 1, 32], strides = [1, 1, 1, 1]} : vector<2x8x8x32xbf16> to vector<2x1x1x32xbf16>
    %323 = vector.shape_cast %322 : vector<2x1x1x32xbf16> to vector<2x32xbf16>
    %324 = vector.extract_strided_slice %32 {offsets = [0, 6, 2, 0], sizes = [2, 1, 1, 32], strides = [1, 1, 1, 1]} : vector<2x8x8x32xbf16> to vector<2x1x1x32xbf16>
    %325 = vector.shape_cast %324 : vector<2x1x1x32xbf16> to vector<2x32xbf16>
    %326 = vector.extract_strided_slice %32 {offsets = [0, 6, 3, 0], sizes = [2, 1, 1, 32], strides = [1, 1, 1, 1]} : vector<2x8x8x32xbf16> to vector<2x1x1x32xbf16>
    %327 = vector.shape_cast %326 : vector<2x1x1x32xbf16> to vector<2x32xbf16>
    %328 = vector.extract_strided_slice %32 {offsets = [0, 6, 4, 0], sizes = [2, 1, 1, 32], strides = [1, 1, 1, 1]} : vector<2x8x8x32xbf16> to vector<2x1x1x32xbf16>
    %329 = vector.shape_cast %328 : vector<2x1x1x32xbf16> to vector<2x32xbf16>
    %330 = vector.extract_strided_slice %32 {offsets = [0, 6, 5, 0], sizes = [2, 1, 1, 32], strides = [1, 1, 1, 1]} : vector<2x8x8x32xbf16> to vector<2x1x1x32xbf16>
    %331 = vector.shape_cast %330 : vector<2x1x1x32xbf16> to vector<2x32xbf16>
    %332 = vector.extract_strided_slice %32 {offsets = [0, 7, 2, 0], sizes = [2, 1, 1, 32], strides = [1, 1, 1, 1]} : vector<2x8x8x32xbf16> to vector<2x1x1x32xbf16>
    %333 = vector.shape_cast %332 : vector<2x1x1x32xbf16> to vector<2x32xbf16>
    %334 = vector.extract_strided_slice %32 {offsets = [0, 7, 3, 0], sizes = [2, 1, 1, 32], strides = [1, 1, 1, 1]} : vector<2x8x8x32xbf16> to vector<2x1x1x32xbf16>
    %335 = vector.shape_cast %334 : vector<2x1x1x32xbf16> to vector<2x32xbf16>
    %336 = vector.extract_strided_slice %32 {offsets = [0, 7, 4, 0], sizes = [2, 1, 1, 32], strides = [1, 1, 1, 1]} : vector<2x8x8x32xbf16> to vector<2x1x1x32xbf16>
    %337 = vector.shape_cast %336 : vector<2x1x1x32xbf16> to vector<2x32xbf16>
    %338 = vector.extract_strided_slice %32 {offsets = [0, 7, 5, 0], sizes = [2, 1, 1, 32], strides = [1, 1, 1, 1]} : vector<2x8x8x32xbf16> to vector<2x1x1x32xbf16>
    %339 = vector.shape_cast %338 : vector<2x1x1x32xbf16> to vector<2x32xbf16>
    %340 = tpu.concatenate %309, %311, %313, %315, %317, %319, %321, %323, %325, %327, %329, %331, %333, %335, %337, %339 in 1 : vector<2x32xbf16>, vector<2x32xbf16>, vector<2x32xbf16>, vector<2x32xbf16>, vector<2x32xbf16>, vector<2x32xbf16>, vector<2x32xbf16>, vector<2x32xbf16>, vector<2x32xbf16>, vector<2x32xbf16>, vector<2x32xbf16>, vector<2x32xbf16>, vector<2x32xbf16>, vector<2x32xbf16>, vector<2x32xbf16>, vector<2x32xbf16> -> vector<2x512xbf16>
    %cst_37 = arith.constant dense<0.000000e+00> : vector<2x64xf32>
    %341 = tpu.matmul %340, %33, %cst_37 {dimension_numbers = #tpu.dot_dimension_numbers<[1], [0], [0], [1], [0, 0, 1, 1], [], []>} : vector<2x512xbf16>, vector<512x64xbf16>, vector<2x64xf32> -> vector<2x64xf32>
    %342 = vector.broadcast %34 : vector<1x64xf32> to vector<2x64xf32>
    %343 = arith.addf %341, %342 : vector<2x64xf32>
    %cst_38 = arith.constant 0.000000e+00 : f32
    %344 = vector.broadcast %cst_38 : f32 to vector<2x64xf32>
    %345 = arith.maximumf %343, %344 : vector<2x64xf32>
    %346 = arith.truncf %345 : vector<2x64xf32> to vector<2x64xbf16>
    %347 = vector.extract_strided_slice %32 {offsets = [0, 4, 4, 0], sizes = [2, 1, 1, 32], strides = [1, 1, 1, 1]} : vector<2x8x8x32xbf16> to vector<2x1x1x32xbf16>
    %348 = vector.shape_cast %347 : vector<2x1x1x32xbf16> to vector<2x32xbf16>
    %349 = vector.extract_strided_slice %32 {offsets = [0, 4, 5, 0], sizes = [2, 1, 1, 32], strides = [1, 1, 1, 1]} : vector<2x8x8x32xbf16> to vector<2x1x1x32xbf16>
    %350 = vector.shape_cast %349 : vector<2x1x1x32xbf16> to vector<2x32xbf16>
    %351 = vector.extract_strided_slice %32 {offsets = [0, 4, 6, 0], sizes = [2, 1, 1, 32], strides = [1, 1, 1, 1]} : vector<2x8x8x32xbf16> to vector<2x1x1x32xbf16>
    %352 = vector.shape_cast %351 : vector<2x1x1x32xbf16> to vector<2x32xbf16>
    %353 = vector.extract_strided_slice %32 {offsets = [0, 4, 7, 0], sizes = [2, 1, 1, 32], strides = [1, 1, 1, 1]} : vector<2x8x8x32xbf16> to vector<2x1x1x32xbf16>
    %354 = vector.shape_cast %353 : vector<2x1x1x32xbf16> to vector<2x32xbf16>
    %355 = vector.extract_strided_slice %32 {offsets = [0, 5, 4, 0], sizes = [2, 1, 1, 32], strides = [1, 1, 1, 1]} : vector<2x8x8x32xbf16> to vector<2x1x1x32xbf16>
    %356 = vector.shape_cast %355 : vector<2x1x1x32xbf16> to vector<2x32xbf16>
    %357 = vector.extract_strided_slice %32 {offsets = [0, 5, 5, 0], sizes = [2, 1, 1, 32], strides = [1, 1, 1, 1]} : vector<2x8x8x32xbf16> to vector<2x1x1x32xbf16>
    %358 = vector.shape_cast %357 : vector<2x1x1x32xbf16> to vector<2x32xbf16>
    %359 = vector.extract_strided_slice %32 {offsets = [0, 5, 6, 0], sizes = [2, 1, 1, 32], strides = [1, 1, 1, 1]} : vector<2x8x8x32xbf16> to vector<2x1x1x32xbf16>
    %360 = vector.shape_cast %359 : vector<2x1x1x32xbf16> to vector<2x32xbf16>
    %361 = vector.extract_strided_slice %32 {offsets = [0, 5, 7, 0], sizes = [2, 1, 1, 32], strides = [1, 1, 1, 1]} : vector<2x8x8x32xbf16> to vector<2x1x1x32xbf16>
    %362 = vector.shape_cast %361 : vector<2x1x1x32xbf16> to vector<2x32xbf16>
    %363 = vector.extract_strided_slice %32 {offsets = [0, 6, 4, 0], sizes = [2, 1, 1, 32], strides = [1, 1, 1, 1]} : vector<2x8x8x32xbf16> to vector<2x1x1x32xbf16>
    %364 = vector.shape_cast %363 : vector<2x1x1x32xbf16> to vector<2x32xbf16>
    %365 = vector.extract_strided_slice %32 {offsets = [0, 6, 5, 0], sizes = [2, 1, 1, 32], strides = [1, 1, 1, 1]} : vector<2x8x8x32xbf16> to vector<2x1x1x32xbf16>
    %366 = vector.shape_cast %365 : vector<2x1x1x32xbf16> to vector<2x32xbf16>
    %367 = vector.extract_strided_slice %32 {offsets = [0, 6, 6, 0], sizes = [2, 1, 1, 32], strides = [1, 1, 1, 1]} : vector<2x8x8x32xbf16> to vector<2x1x1x32xbf16>
    %368 = vector.shape_cast %367 : vector<2x1x1x32xbf16> to vector<2x32xbf16>
    %369 = vector.extract_strided_slice %32 {offsets = [0, 6, 7, 0], sizes = [2, 1, 1, 32], strides = [1, 1, 1, 1]} : vector<2x8x8x32xbf16> to vector<2x1x1x32xbf16>
    %370 = vector.shape_cast %369 : vector<2x1x1x32xbf16> to vector<2x32xbf16>
    %371 = vector.extract_strided_slice %32 {offsets = [0, 7, 4, 0], sizes = [2, 1, 1, 32], strides = [1, 1, 1, 1]} : vector<2x8x8x32xbf16> to vector<2x1x1x32xbf16>
    %372 = vector.shape_cast %371 : vector<2x1x1x32xbf16> to vector<2x32xbf16>
    %373 = vector.extract_strided_slice %32 {offsets = [0, 7, 5, 0], sizes = [2, 1, 1, 32], strides = [1, 1, 1, 1]} : vector<2x8x8x32xbf16> to vector<2x1x1x32xbf16>
    %374 = vector.shape_cast %373 : vector<2x1x1x32xbf16> to vector<2x32xbf16>
    %375 = vector.extract_strided_slice %32 {offsets = [0, 7, 6, 0], sizes = [2, 1, 1, 32], strides = [1, 1, 1, 1]} : vector<2x8x8x32xbf16> to vector<2x1x1x32xbf16>
    %376 = vector.shape_cast %375 : vector<2x1x1x32xbf16> to vector<2x32xbf16>
    %377 = vector.extract_strided_slice %32 {offsets = [0, 7, 7, 0], sizes = [2, 1, 1, 32], strides = [1, 1, 1, 1]} : vector<2x8x8x32xbf16> to vector<2x1x1x32xbf16>
    %378 = vector.shape_cast %377 : vector<2x1x1x32xbf16> to vector<2x32xbf16>
    %379 = tpu.concatenate %348, %350, %352, %354, %356, %358, %360, %362, %364, %366, %368, %370, %372, %374, %376, %378 in 1 : vector<2x32xbf16>, vector<2x32xbf16>, vector<2x32xbf16>, vector<2x32xbf16>, vector<2x32xbf16>, vector<2x32xbf16>, vector<2x32xbf16>, vector<2x32xbf16>, vector<2x32xbf16>, vector<2x32xbf16>, vector<2x32xbf16>, vector<2x32xbf16>, vector<2x32xbf16>, vector<2x32xbf16>, vector<2x32xbf16>, vector<2x32xbf16> -> vector<2x512xbf16>
    %cst_39 = arith.constant dense<0.000000e+00> : vector<2x64xf32>
    %380 = tpu.matmul %379, %33, %cst_39 {dimension_numbers = #tpu.dot_dimension_numbers<[1], [0], [0], [1], [0, 0, 1, 1], [], []>} : vector<2x512xbf16>, vector<512x64xbf16>, vector<2x64xf32> -> vector<2x64xf32>
    %381 = vector.broadcast %34 : vector<1x64xf32> to vector<2x64xf32>
    %382 = arith.addf %380, %381 : vector<2x64xf32>
    %cst_40 = arith.constant 0.000000e+00 : f32
    %383 = vector.broadcast %cst_40 : f32 to vector<2x64xf32>
    %384 = arith.maximumf %382, %383 : vector<2x64xf32>
    %385 = arith.truncf %384 : vector<2x64xf32> to vector<2x64xbf16>
    %c0_41 = arith.constant 0 : index
    %c0_42 = arith.constant 0 : index
    %386 = vector.load %arg6[%c0_41, %c0_42] : memref<576x64xbf16, #tpu.memory_space<vmem>>, vector<576x64xbf16>
    %c0_43 = arith.constant 0 : index
    %c0_44 = arith.constant 0 : index
    %387 = vector.load %arg7[%c0_43, %c0_44] : memref<1x64xf32, #tpu.memory_space<vmem>>, vector<1x64xf32>
    %388 = tpu.concatenate %73, %112, %151, %190, %229, %268, %307, %346, %385 in 1 : vector<2x64xbf16>, vector<2x64xbf16>, vector<2x64xbf16>, vector<2x64xbf16>, vector<2x64xbf16>, vector<2x64xbf16>, vector<2x64xbf16>, vector<2x64xbf16>, vector<2x64xbf16> -> vector<2x576xbf16>
    %cst_45 = arith.constant dense<0.000000e+00> : vector<2x64xf32>
    %389 = tpu.matmul %388, %386, %cst_45 {dimension_numbers = #tpu.dot_dimension_numbers<[1], [0], [0], [1], [0, 0, 1, 1], [], []>} : vector<2x576xbf16>, vector<576x64xbf16>, vector<2x64xf32> -> vector<2x64xf32>
    %390 = vector.broadcast %387 : vector<1x64xf32> to vector<2x64xf32>
    %391 = arith.addf %389, %390 : vector<2x64xf32>
    %cst_46 = arith.constant 0.000000e+00 : f32
    %392 = vector.broadcast %cst_46 : f32 to vector<2x64xf32>
    %393 = arith.maximumf %391, %392 : vector<2x64xf32>
    %394 = arith.truncf %393 : vector<2x64xf32> to vector<2x64xbf16>
    %c0_47 = arith.constant 0 : index
    %c0_48 = arith.constant 0 : index
    %395 = vector.load %arg8[%c0_47, %c0_48] : memref<64x512xbf16, #tpu.memory_space<vmem>>, vector<64x512xbf16>
    %cst_49 = arith.constant dense<0.000000e+00> : vector<2x512xf32>
    %396 = tpu.matmul %394, %395, %cst_49 {dimension_numbers = #tpu.dot_dimension_numbers<[1], [0], [0], [1], [0, 0, 1, 1], [], []>} : vector<2x64xbf16>, vector<64x512xbf16>, vector<2x512xf32> -> vector<2x512xf32>
    %c0_50 = arith.constant 0 : index
    %c0_51 = arith.constant 0 : index
    %397 = vector.load %arg9[%c0_50, %c0_51] : memref<1x512xf32, #tpu.memory_space<vmem>>, vector<1x512xf32>
    %398 = vector.broadcast %397 : vector<1x512xf32> to vector<2x512xf32>
    %399 = arith.addf %396, %398 : vector<2x512xf32>
    %cst_52 = arith.constant 0.000000e+00 : f32
    %400 = vector.broadcast %cst_52 : f32 to vector<2x512xf32>
    %401 = arith.maximumf %399, %400 : vector<2x512xf32>
    %402 = arith.truncf %401 : vector<2x512xf32> to vector<2x512xbf16>
    %c0_53 = arith.constant 0 : index
    %c0_54 = arith.constant 0 : index
    %403 = vector.load %arg10[%c0_53, %c0_54] : memref<512x6xbf16, #tpu.memory_space<vmem>>, vector<512x6xbf16>
    %cst_55 = arith.constant dense<0.000000e+00> : vector<2x6xf32>
    %404 = tpu.matmul %402, %403, %cst_55 {dimension_numbers = #tpu.dot_dimension_numbers<[1], [0], [0], [1], [0, 0, 1, 1], [], []>} : vector<2x512xbf16>, vector<512x6xbf16>, vector<2x6xf32> -> vector<2x6xf32>
    %c0_56 = arith.constant 0 : index
    %c0_57 = arith.constant 0 : index
    %405 = vector.load %arg11[%c0_56, %c0_57] : memref<1x6xf32, #tpu.memory_space<vmem>>, vector<1x6xf32>
    %406 = vector.broadcast %405 : vector<1x6xf32> to vector<2x6xf32>
    %407 = arith.addf %404, %406 : vector<2x6xf32>
    %c0_58 = arith.constant 0 : index
    %c0_59 = arith.constant 0 : index
    %408 = vector.load %arg12[%c0_58, %c0_59] : memref<2x6xf32, #tpu.memory_space<vmem>>, vector<2x6xf32>
    tpu.vector_store %arg12[%c0_58, %c0_59], %407 {strides = array<i32>} : memref<2x6xf32, #tpu.memory_space<vmem>>, vector<2x6xf32>,
    return
  }
  func.func @transform_0(%arg0: i32) -> (i32, i32, i32, i32) {
    %c0_i32 = arith.constant 0 : i32
    %c0_i32_0 = arith.constant 0 : i32
    %c0_i32_1 = arith.constant 0 : i32
    %c0_i32_2 = arith.constant 0 : i32
    return %arg0, %c0_i32, %c0_i32_0, %c0_i32_1 : i32, i32, i32, i32
  }
  func.func @transform_1(%arg0: i32) -> (i32, i32, i32) {
    %c0_i32 = arith.constant 0 : i32
    %c0_i32_0 = arith.constant 0 : i32
    %c0_i32_1 = arith.constant 0 : i32
    %c0_i32_2 = arith.constant 0 : i32
    return %c0_i32, %c0_i32_0, %c0_i32_1 : i32, i32, i32
  }
  func.func @transform_2(%arg0: i32) -> (i32, i32) {
    %c0_i32 = arith.constant 0 : i32
    %c0_i32_0 = arith.constant 0 : i32
    %c0_i32_1 = arith.constant 0 : i32
    return %c0_i32, %c0_i32_0 : i32, i32
  }
  func.func @transform_3(%arg0: i32) -> (i32, i32) {
    %c0_i32 = arith.constant 0 : i32
    %c0_i32_0 = arith.constant 0 : i32
    %c0_i32_1 = arith.constant 0 : i32
    return %c0_i32, %c0_i32_0 : i32, i32
  }
  func.func @transform_4(%arg0: i32) -> (i32, i32) {
    %c0_i32 = arith.constant 0 : i32
    %c0_i32_0 = arith.constant 0 : i32
    %c0_i32_1 = arith.constant 0 : i32
    return %c0_i32, %c0_i32_0 : i32, i32
  }
  func.func @transform_5(%arg0: i32) -> (i32, i32) {
    %c0_i32 = arith.constant 0 : i32
    %c0_i32_0 = arith.constant 0 : i32
    %c0_i32_1 = arith.constant 0 : i32
    return %c0_i32, %c0_i32_0 : i32, i32
  }
  func.func @transform_6(%arg0: i32) -> (i32, i32) {
    %c0_i32 = arith.constant 0 : i32
    %c0_i32_0 = arith.constant 0 : i32
    %c0_i32_1 = arith.constant 0 : i32
    return %c0_i32, %c0_i32_0 : i32, i32
  }
  func.func @transform_7(%arg0: i32) -> (i32, i32) {
    %c0_i32 = arith.constant 0 : i32
    %c0_i32_0 = arith.constant 0 : i32
    %c0_i32_1 = arith.constant 0 : i32
    return %c0_i32, %c0_i32_0 : i32, i32
  }
  func.func @transform_8(%arg0: i32) -> (i32, i32) {
    %c0_i32 = arith.constant 0 : i32
    %c0_i32_0 = arith.constant 0 : i32
    %c0_i32_1 = arith.constant 0 : i32
    return %c0_i32, %c0_i32_0 : i32, i32
  }
  func.func @transform_9(%arg0: i32) -> (i32, i32) {
    %c0_i32 = arith.constant 0 : i32
    %c0_i32_0 = arith.constant 0 : i32
    %c0_i32_1 = arith.constant 0 : i32
    return %c0_i32, %c0_i32_0 : i32, i32
  }
  func.func @transform_10(%arg0: i32) -> (i32, i32) {
    %c0_i32 = arith.constant 0 : i32
    %c0_i32_0 = arith.constant 0 : i32
    %c0_i32_1 = arith.constant 0 : i32
    return %c0_i32, %c0_i32_0 : i32, i32
  }
  func.func @transform_11(%arg0: i32) -> (i32, i32) {
    %c0_i32 = arith.constant 0 : i32
    %c0_i32_0 = arith.constant 0 : i32
    return %arg0, %c0_i32 : i32, i32
  }
}

</mosaic_0001>

<bundles_post_ra>
// kernel: dqn_forward.1
= control target key start
LH: loop header
LB: loop body
LE: loop exit
PB: predicated region body
PF: predicated region fallthrough
CT: control target
= control target key end

     0   :  { %vm368_vm0 = vcmask 523264   ;;  %vm84_vm1 = vsmask.f32 3328  ;;  %vm85_vm2 = vsmask.f32 7440  ;;  %s7146_s0 = inlined_call_operand.vmem [shape: bf16[2,9,9,64], index: 0, kind: input, shape index: {}]   ;;  %s7147_s1 = inlined_call_operand.vmem [shape: bf16[4,64,32], index: 1, kind: input, shape index: {}]   ;;  %s7148_s2 = inlined_call_operand.vmem [shape: f32[1,32], index: 2, kind: input, shape index: {}]   ;;  %s7149_s3 = inlined_call_operand.vmem [shape: bf16[512,64], index: 3, kind: input, shape index: {}]   ;;  %s7150_s4 = inlined_call_operand.vmem [shape: f32[1,64], index: 4, kind: input, shape index: {}]   ;;  %s7151_s5 = inlined_call_operand.vmem [shape: bf16[576,64], index: 5, kind: input, shape index: {}]   ;;  %s7152_s6 = inlined_call_operand.vmem [shape: f32[1,64], index: 6, kind: input, shape index: {}]   ;;  %s7153_s7 = inlined_call_operand.vmem [shape: bf16[64,512], index: 7, kind: input, shape index: {}]   ;;  %s7154_s8 = inlined_call_operand.vmem [shape: f32[1,512], index: 8, kind: input, shape index: {}]   ;;  %s7155_s9 = inlined_call_operand.vmem [shape: bf16[512,6], index: 9, kind: input, shape index: {}]   ;;  %s7156_s10 = inlined_call_operand.vmem [shape: f32[1,6], index: 10, kind: input, shape index: {}]   ;;  %s7157_s11 = inlined_call_operand.hbm [shape: f32[2,6], index: 11, kind: output, shape index: {}]  }
   0x1   :  { %v4711_v0 = vld [vmem:[%s7147_s1 + $0x38] sm:$0xff]   ;;  %v4713_v2 = vld [vmem:[%s7147_s1 + $0x30] sm:$0xff]   ;;  %v4715_v4 = vld [vmem:[%s7147_s1 + $0x28] sm:$0xff]  }
   0x2   :  { %v4712_v1 = vld [vmem:[%s7147_s1 + $0x18] sm:$0xff]   ;;  %4596 = vmatprep.subr.bf16.mxu0 %v4711_v0  ;;  %v4714_v3 = vld [vmem:[%s7147_s1 + $0x10] sm:$0xff]   ;;  %v4716_v5 = vld [vmem:[%s7147_s1 + $0x8] sm:$0xff]  }
   0x3   :  { %4620 = vmatprep.subr.bf16.mxu1 %v4712_v1  ;;  %4597 = vmatpush3.bf16.msra.mxu0 %v4711_v0  ;;  %v4717_v6 = vld [vmem:[%s7147_s1 + $0x20] sm:$0xff]   ;;  %v5015_v8 = vld [vmem:[%s7146_s0 + $0x8] sm:$0xf]  ;;  %v43_v12 = vld [vmem:[%s7146_s0 + $0xc] sm:$0x1] }
   0x4   :  { %4621 = vmatpush3.bf16.msra.mxu1 %v4712_v1  ;;  %4598 = vmatprep.subr.bf16.mxu0 %v4713_v2  ;;  %v40_v7 = vld [vmem:[%s7146_s0] sm:$0xf]  ;;  %v41_v10 = vld [vmem:[%s7146_s0 + $0x4] sm:$0x1]  ;;  %v5030_v13 = vld [vmem:[%s7146_s0 + $0x10] sm:$0xf] }
   0x5   :  { %4622 = vmatprep.subr.bf16.mxu1 %v4714_v3  ;;  %v4718_v9 = vld [vmem:[%s7147_s1] sm:$0xff]   ;;  %v3828_v11 = vcombine.low %v40_v7, %v5015_v8  ;;  %v5035_v14 = vld [vmem:[%s7146_s0 + $0x18] sm:$0xf]  ;;  %v45_v15 = vld [vmem:[%s7146_s0 + $0x14] sm:$0x1]  ;;  %v88_v19 = vshrl.u32 %v40_v7, 16 }
   0x6   :  { %v3829_v16 = vcombine.low %v5030_v13, %v5035_v14  ;;  %v47_v17 = vld [vmem:[%s7146_s0 + $0x1c] sm:$0x1]  ;;  %v5049_v18 = vld [vmem:[%s7146_s0 + $0x20] sm:$0xf]  ;;  %v91_v20 = vshll.u32 %v40_v7, 16  ;;  %v97_v21 = vshll.u32 %v41_v10, 16  ;;  %vm5071_vm3 = vmor %vm84_vm1, %vm85_vm2 }
   0x7   :  { %4599 = vmatpush3.bf16.msra.mxu0 %v4713_v2  ;;  %4628 = vmatprep.mubr.msk.bf16.mxu1 %vm368_vm0, %v3828_v11  ;;  %v102_v22 = vshrl.u32 %v5015_v8, 16  ;;  %v105_v23 = vshll.u32 %v5015_v8, 16  ;;  %v111_v24 = vshll.u32 %v43_v12, 16  ;;  %v116_v25 = vshrl.u32 %v5030_v13, 16  ;;  %v5058_v31 = vld [vmem:[%s7147_s1 + $0x58] sm:$0xff]   ;;  %v4726_v7 = vld [vmem:[%s7147_s1 + $0x70] sm:$0xff]  }
   0x8   :  { %4623 = vmatpush3.bf16.msra.mxu1 %v4714_v3  ;;  %4600 = vmatprep.subr.bf16.mxu0 %v4715_v4  ;;  %v119_v26 = vshll.u32 %v5030_v13, 16  ;;  %v90_v27 = vrot.slane %v88_v19, 4  ;;  %v93_v28 = vrot.slane %v91_v20, 5  ;;  %v99_v29 = vrot.slane %v97_v21, 5  ;;  %v4722_v32 = vld [vmem:[%s7147_s1 + $0x78] sm:$0xff]   ;;  %v4730_v21 = vld [vmem:[%s7147_s1 + $0x68] sm:$0xff]  }
   0x9   :  { %4624 = vmatprep.subr.bf16.mxu1 %v4716_v5  ;;  %v104_v30 = vrot.slane %v102_v22, 4  ;;  %v107_v33 = vrot.slane %v105_v23, 5  ;;  %v113_v34 = vrot.slane %v111_v24, 5  ;;  %v118_v35 = vrot.slane %v116_v25, 4  ;;  %v49_v41 = vld [vmem:[%s7146_s0 + $0x24] sm:$0x1] }
   0xa   :  { %v121_v36 = vrot.slane %v119_v26, 5  ;;  %v94_v37 = vor.u32 %v93_v28, %v90_v27  ;;  %v125_v38 = vshll.u32 %v45_v15, 16  ;;  %v130_v39 = vshrl.u32 %v5035_v14, 16  ;;  %v5079_v51 = vld [vmem:[%s7146_s0 + $0x28] sm:$0xf]  ;;  %v4725_v26 = vld [vmem:[%s7147_s1 + $0x50] sm:$0xff]  }
   0xb   :  { %4601 = vmatpush3.bf16.msra.mxu0 %v4715_v4  ;;  %v133_v40 = vshll.u32 %v5035_v14, 16  ;;  %v108_v43 = vor.u32 %v107_v33, %v104_v30  ;;  %v139_v45 = vshll.u32 %v47_v17, 16  ;;  %v144_v46 = vshrl.u32 %v5049_v18, 16  ;;  %v51_v60 = vld [vmem:[%s7146_s0 + $0x2c] sm:$0x1] }
   0xc   :  { %4625 = vmatpush3.bf16.msra.mxu1 %v4716_v5  ;;  %4602 = vmatprep.subr.bf16.mxu0 %v4717_v6  ;;  %v122_v44 = vor.u32 %v121_v36, %v118_v35  ;;  %v95_v47 = vrot.slane %v94_v37, 4  ;;  %v127_v48 = vrot.slane %v125_v38, 5  ;;  %v132_v49 = vrot.slane %v130_v39, 4  ;;  %v5091_v61 = vld [vmem:[%s7146_s0 + $0x30] sm:$0xf] }
   0xd   :  { %4626 = vmatprep.subr.bf16.mxu1 %v4718_v9  ;;  %v135_v50 = vrot.slane %v133_v40, 5  ;;  %v109_v52 = vrot.slane %v108_v43, 4  ;;  %v141_v54 = vrot.slane %v139_v45, 5  ;;  %v146_v55 = vrot.slane %v144_v46, 4  ;;  %v53_v1 = vld [vmem:[%s7146_s0 + $0x34] sm:$0x1] }
   0xe   :  { %v123_v53 = vrot.slane %v122_v44, 4  ;;  %v100_v56 = vsel %vm5071_vm3, %v95_v47, %v99_v29  ;;  %v147_v58 = vshll.u32 %v5049_v18, 16  ;;  %v153_v59 = vshll.u32 %v49_v41, 16  ;;  %v5105_v2 = vld [vmem:[%s7146_s0 + $0x38] sm:$0xf]  ;;  %v4729_v45 = vld [vmem:[%s7147_s1 + $0x48] sm:$0xff]  }
   0xf   :  { %4603 = vmatpush3.bf16.msra.mxu0 %v4717_v6  ;;  %v136_v57 = vor.u32 %v135_v50, %v132_v49  ;;  %v5095_v62 = vsel %vm5071_vm3, %v109_v52, %v113_v34  ;;  %v158_v63 = vshrl.u32 %v5079_v51, 16  ;;  %v161_v0 = vshll.u32 %v5079_v51, 16  ;;  %v55_v19 = vld [vmem:[%s7146_s0 + $0x3c] sm:$0x1]  ;;  %v59_v37 = vld [vmem:[%s7146_s0 + $0x4c] sm:$0x1] }
  0x10   :  { %4627 = vmatpush3.bf16.msra.mxu1 %v4718_v9  ;;  %4644 = vmatprep.subr.bf16.mxu0 %v5058_v31  ;;  %v5109_v3 = vsel %vm5071_vm3, %v123_v53, %v127_v48  ;;  %v149_v5 = vrot.slane %v147_v58, 5  ;;  %v3808_v6 = vcombine.low %v100_v56, %v5095_v62  ;;  %v155_v9 = vrot.slane %v153_v59, 5  ;;  %v5157_v43 = vld [vmem:[%s7146_s0 + $0x50] sm:$0xf]  ;;  %v61_v44 = vld [vmem:[%s7146_s0 + $0x54] sm:$0x1] }
  0x11   :  { %4668 = vmatprep.subr.bf16.mxu1 %v4722_v32  ;;  %v137_v4 = vrot.slane %v136_v57, 4  ;;  %v160_v10 = vrot.slane %v158_v63, 4  ;;  %v163_v11 = vrot.slane %v161_v0, 5  ;;  %v167_v12 = vshll.u32 %v51_v60, 16  ;;  %v4734_v56 = vld [vmem:[%s7147_s1 + $0x60] sm:$0xff]  }
  0x12   :  { %4604 = vmatprep.mubr.msk.bf16.mxu0 %vm368_vm0, %v3808_v6  ;;  %v3830_v17 = vcombine.low %v5049_v18, %v5079_v51  ;;  %v172_v20 = vshrl.u32 %v5091_v61, 16  ;;  %v175_v25 = vshll.u32 %v5091_v61, 16  ;;  %v181_v29 = vshll.u32 %v53_v1, 16 }
  0x13   :  { %4629 = vmatmul.mubr.msk.bf16.vlgmr.msra.gmra.mxu1 %vm368_vm0, %v3829_v16  ;;  %v5117_v15 = vsel %vm5071_vm3, %v137_v4, %v141_v54  ;;  %v150_v16 = vor.u32 %v149_v5, %v146_v55  ;;  %v164_v23 = vor.u32 %v163_v11, %v160_v10  ;;  %v169_v24 = vrot.slane %v167_v12, 5  ;;  %v5175_v54 = vld [vmem:[%s7146_s0 + $0x58] sm:$0xf]  ;;  %v63_v55 = vld [vmem:[%s7146_s0 + $0x5c] sm:$0x1]  ;;  %v4733_v11 = vld [vmem:[%s7147_s1 + $0x40] sm:$0xff]  }
  0x14   :  { %4669 = vmatpush3.bf16.msra.mxu1 %v4722_v32  ;;  %v3809_v22 = vcombine.low %v5109_v3, %v5117_v15  ;;  %4632 = vmatprep.mubr.msk.bf16.mxu1 %vm368_vm0, %v3830_v17  ;;  %v174_v28 = vrot.slane %v172_v20, 4  ;;  %v186_v30 = vshrl.u32 %v5105_v2, 16  ;;  %v58_v32 = vld [vmem:[%s7146_s0 + $0x48] sm:$0xf]  ;;  %v177_v34 = vrot.slane %v175_v25, 5 }
  0x15   :  { %4670 = vmatprep.subr.bf16.mxu1 %v4726_v7  ;;  %v151_v27 = vrot.slane %v150_v16, 4  ;;  %v165_v33 = vrot.slane %v164_v23, 4  ;;  %v189_v35 = vshll.u32 %v5105_v2, 16  ;;  %v195_v36 = vshll.u32 %v55_v19, 16  ;;  %v5189_v5 = vld [vmem:[%s7146_s0 + $0x60] sm:$0xf] }
  0x16   :  { %4605 = vmatmul.mubr.msk.bf16.vlgmr.msra.gmra.mxu0 %vm368_vm0, %v3809_v22  ;;  %v3884_v39 = vcombine.low %v5095_v62, %v5109_v3  ;;  %v188_v40 = vrot.slane %v186_v30, 4  ;;  %v3831_v41 = vcombine.low %v5091_v61, %v5105_v2  ;;  %v178_v46 = vor.u32 %v177_v34, %v174_v28  ;;  %v67_v30 = vld [vmem:[%s7146_s0 + $0x6c] sm:$0x1] }
  0x17   :  { %v5147_v38 = vsel %vm5071_vm3, %v151_v27, %v155_v9  ;;  %4645 = vmatpush3.bf16.msra.mxu0 %v5058_v31  ;;  %v5167_v31 = vsel %vm5071_vm3, %v165_v33, %v169_v24  ;;  %v183_v47 = vrot.slane %v181_v29, 5  ;;  %v191_v48 = vrot.slane %v189_v35, 5  ;;  %v5215_v29 = vld [vmem:[%s7146_s0 + $0x68] sm:$0xf] }
  0x18   :  { %4671 = vmatpush3.bf16.msra.mxu1 %v4726_v7  ;;  %4646 = vmatprep.subr.bf16.mxu0 %v4725_v26  ;;  %v3810_v49 = vcombine.low %v5147_v38, %v5167_v31  ;;  %v197_v50 = vrot.slane %v195_v36, 5  ;;  %v200_v52 = vshrl.u32 %v58_v32, 16  ;;  %v203_v53 = vshll.u32 %v58_v32, 16  ;;  %v5224_v36 = vld [vmem:[%s7146_s0 + $0x70] sm:$0xf] }
  0x19   :  { %4672 = vmatprep.subr.bf16.mxu1 %v4730_v21  ;;  %v179_v57 = vrot.slane %v178_v46, 4  ;;  %v192_v58 = vor.u32 %v191_v48, %v188_v40  ;;  %v209_v59 = vshll.u32 %v59_v37, 16  ;;  %v214_v60 = vshrl.u32 %v5157_v43, 16 }
  0x1a   :  { %4608 = vmatprep.mubr.msk.bf16.mxu0 %vm368_vm0, %v3810_v49  ;;  %v202_v63 = vrot.slane %v200_v52, 4  ;;  %v205_v0 = vrot.slane %v203_v53, 5  ;;  %v217_v1 = vshll.u32 %v5157_v43, 16  ;;  %v223_v4 = vshll.u32 %v61_v44, 16 }
  0x1b   :  { %4633 = vmatmul.mubr.msk.bf16.gmra.mxu1 %vm368_vm0, %v3831_v41  ;;  %4647 = vmatpush3.bf16.msra.mxu0 %v4725_v26  ;;  %v5193_v6 = vsel %vm5071_vm3, %v179_v57, %v183_v47  ;;  %v193_v7 = vrot.slane %v192_v58, 4  ;;  %v211_v9 = vrot.slane %v209_v59, 5  ;;  %v216_v10 = vrot.slane %v214_v60, 4  ;;  %v5245_v60 = vld [vmem:[%s7146_s0 + $0x78] sm:$0xf] }
  0x1c   :  { %4673 = vmatpush3.bf16.msra.mxu1 %v4730_v21  ;;  %4648 = vmatprep.subr.bf16.mxu0 %v4729_v45  ;;  %v206_v12 = vor.u32 %v205_v0, %v202_v63  ;;  %v219_v16 = vrot.slane %v217_v1, 5  ;;  %v225_v17 = vrot.slane %v223_v4, 5  ;;  %v3832_v19 = vcombine.low %v58_v32, %v5157_v43  ;;  %v65_v21 = vld [vmem:[%s7146_s0 + $0x64] sm:$0x1]  ;;  %v71_v63 = vld [vmem:[%s7146_s0 + $0x7c] sm:$0x1] }
  0x1d   :  { %4674 = vmatprep.subr.bf16.mxu1 %v4734_v56  ;;  %v5201_v20 = vsel %vm5071_vm3, %v193_v7, %v197_v50  ;;  %v228_v22 = vshrl.u32 %v5175_v54, 16  ;;  %v231_v23 = vshll.u32 %v5175_v54, 16  ;;  %v237_v24 = vshll.u32 %v63_v55, 16 }
  0x1e   :  { %v3811_v25 = vcombine.low %v5193_v6, %v5201_v20  ;;  %v207_v26 = vrot.slane %v206_v12, 4  ;;  %v220_v27 = vor.u32 %v219_v16, %v216_v10  ;;  %4636 = vmatprep.mubr.msk.bf16.mxu1 %vm368_vm0, %v3832_v19  ;;  %v242_v28 = vshrl.u32 %v5189_v5, 16 }
  0x1f   :  { %4649 = vmatpush3.bf16.msra.mxu0 %v4729_v45  ;;  %v230_v32 = vrot.slane %v228_v22, 4  ;;  %v233_v33 = vrot.slane %v231_v23, 5  ;;  %v239_v34 = vrot.slane %v237_v24, 5  ;;  %v245_v35 = vshll.u32 %v5189_v5, 16  ;;  %v69_v45 = vld [vmem:[%s7146_s0 + $0x74] sm:$0x1] }
  0x20   :  { %4675 = vmatpush3.bf16.msra.mxu1 %v4734_v56  ;;  %4650 = vmatprep.subr.bf16.mxu0 %v4733_v11  ;;  %v212_v37 = vsel %vm5071_vm3, %v207_v26, %v211_v9  ;;  %v221_v40 = vrot.slane %v220_v27, 4  ;;  %v244_v41 = vrot.slane %v242_v28, 4  ;;  %v251_v44 = vshll.u32 %v65_v21, 16  ;;  %v5255_v9 = vld [vmem:[%s7146_s0 + $0x80] sm:$0xf] }
  0x21   :  { %4609 = vmatmul.mubr.msk.bf16.gmra.mxu0 %vm368_vm0, %v3811_v25  ;;  %v234_v46 = vor.u32 %v233_v33, %v230_v32  ;;  %v247_v47 = vrot.slane %v245_v35, 5  ;;  %v3833_v48 = vcombine.low %v5175_v54, %v5189_v5  ;;  %v256_v49 = vshrl.u32 %v5215_v29, 16 }
  0x22   :  { %v5237_v50 = vsel %vm5071_vm3, %v221_v40, %v225_v17  ;;  %v253_v52 = vrot.slane %v251_v44, 5  ;;  %v259_v53 = vshll.u32 %v5215_v29, 16  ;;  %v265_v55 = vshll.u32 %v67_v30, 16  ;;  %v73_v17 = vld [vmem:[%s7146_s0 + $0x84] sm:$0x1] }
  0x23   :  { %4651 = vmatpush3.bf16.msra.mxu0 %v4733_v11  ;;  %v3812_v56 = vcombine.low %v212_v37, %v5237_v50  ;;  %v235_v57 = vrot.slane %v234_v46, 4  ;;  %v248_v58 = vor.u32 %v247_v47, %v244_v41  ;;  %4637 = vmatmul.mubr.msk.bf16.gmra.mxu1 %vm368_vm0, %v3833_v48  ;;  %v258_v59 = vrot.slane %v256_v49, 4  ;;  %v57_v44 = vld [vmem:[%s7146_s0 + $0x44] sm:$0x1] }
  0x24   :  { %v261_v0 = vrot.slane %v259_v53, 5  ;;  %v267_v1 = vrot.slane %v265_v55, 5  ;;  %v270_v4 = vshrl.u32 %v5224_v36, 16  ;;  %v273_v7 = vshll.u32 %v5224_v36, 16 }
  0x25   :  { %4612 = vmatprep.mubr.msk.bf16.mxu0 %vm368_vm0, %v3812_v56  ;;  %v5260_v10 = vsel %vm5071_vm3, %v235_v57, %v239_v34  ;;  %v249_v11 = vrot.slane %v248_v58, 4  ;;  %v279_v12 = vshll.u32 %v69_v45, 16  ;;  %v3834_v16 = vcombine.low %v5215_v29, %v5224_v36  ;;  %v5279_v34 = vld [vmem:[%s7146_s0 + $0x40] sm:$0xf]  ;;  %v74_v57 = vld [vmem:[%s7146_s0 + $0x88] sm:$0xf] }
  0x26   :  { %v262_v19 = vor.u32 %v261_v0, %v258_v59  ;;  %v272_v21 = vrot.slane %v270_v4, 4  ;;  %v275_v22 = vrot.slane %v273_v7, 5  ;;  %v284_v23 = vshrl.u32 %v5245_v60, 16 }
  0x27   :  { %v5270_v24 = vsel %vm5071_vm3, %v249_v11, %v253_v52  ;;  %v281_v25 = vrot.slane %v279_v12, 5  ;;  %4640 = vmatprep.mubr.msk.bf16.mxu1 %vm368_vm0, %v3834_v16  ;;  %v287_v26 = vshll.u32 %v5245_v60, 16  ;;  %v293_v27 = vshll.u32 %v71_v63, 16 }
  0x28   :  { %v3813_v28 = vcombine.low %v5260_v10, %v5270_v24  ;;  %v263_v30 = vrot.slane %v262_v19, 4  ;;  %v276_v32 = vor.u32 %v275_v22, %v272_v21  ;;  %v286_v33 = vrot.slane %v284_v23, 4 }
  0x29   :  { %v289_v35 = vrot.slane %v287_v26, 5  ;;  %v295_v37 = vrot.slane %v293_v27, 5  ;;  %v298_v40 = vshrl.u32 %v5255_v9, 16  ;;  %v301_v41 = vshll.u32 %v5255_v9, 16 }
  0x2a   :  { %4613 = vmatmul.mubr.msk.bf16.gmra.mxu0 %vm368_vm0, %v3813_v28  ;;  %v268_v45 = vsel %vm5071_vm3, %v263_v30, %v267_v1  ;;  %v277_v46 = vrot.slane %v276_v32, 4  ;;  %v307_v47 = vshll.u32 %v73_v17, 16  ;;  %v3835_v48 = vcombine.low %v5245_v60, %v5255_v9  ;;  %v75_v1 = vld [vmem:[%s7146_s0 + $0x8c] sm:$0x1] }
  0x2b   :  { %v290_v49 = vor.u32 %v289_v35, %v286_v33  ;;  %v300_v52 = vrot.slane %v298_v40, 4  ;;  %v303_v53 = vrot.slane %v301_v41, 5  ;;  %v858_v0 = vshrl.u32 %v5279_v34, 16 }
  0x2c   :  { %v282_v55 = vsel %vm5071_vm3, %v277_v46, %v281_v25  ;;  %v309_v56 = vrot.slane %v307_v47, 5  ;;  %4641 = vmatmul.mubr.msk.bf16.gmra.mxu1 %vm368_vm0, %v3835_v48  ;;  %v861_v4 = vshll.u32 %v5279_v34, 16  ;;  %v867_v7 = vshll.u32 %v57_v44, 16 }
  0x2d   :  { %v3814_v58 = vcombine.low %v268_v45, %v282_v55  ;;  %v291_v59 = vrot.slane %v290_v49, 4  ;;  %v304_v63 = vor.u32 %v303_v53, %v300_v52  ;;  %4676 = vmatprep.mubr.msk.bf16.mxu1 %vm368_vm0, %v3884_v39  ;;  %v860_v16 = vrot.slane %v858_v0, 4 }
  0x2e   :  { %v3885_v62 = vcombine.low %v5117_v15, %v5147_v38  ;;  %v3856_v3 = vcombine.low %v5015_v8, %v5030_v13  ;;  %v863_v39 = vrot.slane %v861_v4, 5  ;;  %v869_v17 = vrot.slane %v867_v7, 5 }
  0x2f   :  { %4616 = vmatprep.mubr.msk.bf16.mxu0 %vm368_vm0, %v3814_v58  ;;  %v296_v11 = vsel %vm5071_vm3, %v291_v59, %v295_v37  ;;  %v305_v12 = vrot.slane %v304_v63, 4  ;;  %v3886_v21 = vcombine.low %v5167_v31, %v5193_v6  ;;  %v872_v22 = vshrl.u32 %v74_v57, 16 }
  0x30   :  { %v875_v23 = vshll.u32 %v74_v57, 16  ;;  %v864_v26 = vor.u32 %v863_v39, %v860_v16  ;;  %v881_v27 = vshll.u32 %v75_v1, 16  ;;  %v3857_v6 = vcombine.low %v5035_v14, %v5049_v18 }
  0x31   :  { %v310_v19 = vsel %vm5071_vm3, %v305_v12, %v309_v56  ;;  %v874_v28 = vrot.slane %v872_v22, 4  ;;  %v3858_v33 = vcombine.low %v5079_v51, %v5091_v61  ;;  %v3888_v35 = vcombine.low %v5237_v50, %v5260_v10 }
  0x32   :  { %v3815_v25 = vcombine.low %v296_v11, %v310_v19  ;;  %v877_v30 = vrot.slane %v875_v23, 5  ;;  %v865_v8 = vrot.slane %v864_v26, 4  ;;  %v883_v13 = vrot.slane %v881_v27, 5 }
  0x33   :  { %v3859_v37 = vcombine.low %v5105_v2, %v5279_v34  ;;  %v3889_v14 = vcombine.low %v5270_v24, %v268_v45  ;;  %v3860_v18 = vcombine.low %v5157_v43, %v5175_v54  ;;  %v3890_v51 = vcombine.low %v282_v55, %v296_v11 }
  0x34   :  { %4617 = vmatmul.mubr.msk.bf16.gmra.mxu0 %vm368_vm0, %v3815_v25  ;;  %4677 = vmatmul.mubr.msk.bf16.vlgmr.msra.gmra.mxu1 %vm368_vm0, %v3885_v62  ;;  %v878_v15 = vor.u32 %v877_v30, %v874_v28  ;;  %v870_v38 = vsel %vm5071_vm3, %v865_v8, %v869_v17  ;;  %v3861_v2 = vcombine.low %v5189_v5, %v5215_v29 }
  0x35   :  { %4652 = vmatprep.mubr.msk.bf16.mxu0 %vm368_vm0, %v3856_v3  ;;  %4680 = vmatprep.mubr.msk.bf16.mxu1 %vm368_vm0, %v3886_v21  ;;  %v3887_v32 = vcombine.low %v5201_v20, %v870_v38  ;;  %v3862_v50 = vcombine.low %v5224_v36, %v5245_v60  ;;  %v3863_v43 = vcombine.low %v5255_v9, %v74_v57 }
  0x36   :  { %v879_v31 = vrot.slane %v878_v15, 4 }
  0x38   :  { %v884_v61 = vsel %vm5071_vm3, %v879_v31, %v883_v13 }
  0x39   :  { %v3891_v20 = vcombine.low %v310_v19, %v884_v61 }
  0x3c   :  { %4653 = vmatmul.mubr.msk.bf16.vlgmr.msra.gmra.mxu0 %vm368_vm0, %v3857_v6  ;;  %4681 = vmatmul.mubr.msk.bf16.gmra.mxu1 %vm368_vm0, %v3887_v32 }
  0x3d   :  { %4656 = vmatprep.mubr.msk.bf16.mxu0 %vm368_vm0, %v3858_v33  ;;  %4684 = vmatprep.mubr.msk.bf16.mxu1 %vm368_vm0, %v3888_v35 }
  0x44   :  { %4657 = vmatmul.mubr.msk.bf16.gmra.mxu0 %vm368_vm0, %v3859_v37  ;;  %4685 = vmatmul.mubr.msk.bf16.gmra.mxu1 %vm368_vm0, %v3889_v14 }
  0x45   :  { %4660 = vmatprep.mubr.msk.bf16.mxu0 %vm368_vm0, %v3860_v18  ;;  %4688 = vmatprep.mubr.msk.bf16.mxu1 %vm368_vm0, %v3890_v51 }
  0x4c   :  { %4661 = vmatmul.mubr.msk.bf16.gmra.mxu0 %vm368_vm0, %v3861_v2  ;;  %4689 = vmatmul.mubr.msk.bf16.gmra.mxu1 %vm368_vm0, %v3891_v20 }
  0x4d   :  { %4664 = vmatprep.mubr.msk.bf16.mxu0 %vm368_vm0, %v3862_v50 }
  0x54   :  { %4665 = vmatmul.mubr.msk.bf16.gmra.mxu0 %vm368_vm0, %v3863_v43 }
  0x55   :  { %16 = vsyncpa [#allocation3], 0  ;;  %v5385_v14 = vld [vmem:[%s7149_s3 + $0x78] sm:$0xff]   ;;  %v5390_v61 = vld [vmem:[%s7148_s2] ss:$0 sm:$0xff]  ;;  %vm1206_vm4 = vcmask 1041409  }
  0x56   :  { %4107 = vmatprep.subr.bf16.mxu0 %v5385_v14  ;;  %v5396_v50 = vld [vmem:[%s7149_s3 + $0x38] sm:$0xff]   ;;  %s4921_s13 = smov 32   ;;  %s4922_s21 = smov 64   ;;  %vm1612_vm5 = vcmask 1043459   ;;  %vm1791_vm6 = vcmask 1045509   ;;  %vm1298_vm7 = vcmask 261120  }
  0x57   :  { %7202 = vst [vmem:[#allocation5_spill] sm:$0xff] %v5396_v50  ;;  %4108 = vmatpush3.bf16.msra.mxu0 %v5396_v50  ;;  %s4923_s0 = smov 96   ;;  %vm1304_vm8 = vcmask 785408   ;;  %vm4925_vm9 = vmmov 0   ;;  %s4927_s26 = smov [#allocation2]   ;;  %vm3784_vm10 = vcmask 41984  }
  0xd3   :  { %v4630_v42 = vpop.f32.mrf.mxu1 }
  0xd5   :  { %v612_v54 = vpop.f32.mrf.mxu1 }
  0xd6   :  { %v4606_v5 = vpop.f32.mrf.mxu0 }
  0xd7   :  { %v4631_v10 = vpop.f32.mrf.mxu1  ;;  %v621_v8 = vadd.f32 %v4630_v42, %v4606_v5 }
  0xd8   :  { %v427_v29 = vpop.f32.mrf.mxu0 }
  0xd9   :  { %v615_v24 = vpop.f32.mrf.mxu1  ;;  %v613_v38 = vadd.f32 %v612_v54, %v427_v29 }
  0xda   :  { %v4607_v40 = vpop.f32.mrf.mxu0 }
  0xdb   :  { %v4634_v34 = vpop.f32.mrf.mxu1  ;;  %v624_v51 = vadd.f32 %v4631_v10, %v4607_v40  ;;  %v5407_v40 = vld [vmem:[%s7149_s3 + $0xf8] sm:$0xff]  }
  0xdc   :  { %v430_v60 = vpop.f32.mrf.mxu0  ;;  %4129 = vmatprep.subr.bf16.mxu1 %v5407_v40 }
  0xdd   :  { %v628_v36 = vpop.f32.mrf.mxu1  ;;  %v616_v42 = vadd.f32 %v615_v24, %v430_v60 }
  0xdf   :  { %v4635_v41 = vpop.f32.mrf.mxu1 }
  0xe1   :  { %v631_v44 = vpop.f32.mrf.mxu1  ;;  %v4610_v45 = vpop.f32.mrf.mxu0 }
  0xe2   :  { %v637_v46 = vadd.f32 %v4634_v34, %v4610_v45  ;;  %v5402_v34 = vld [vmem:[%s7149_s3 + $0x70] sm:$0xff]  }
  0xe3   :  { %v443_v47 = vpop.f32.mrf.mxu0  ;;  %v5354_v9 = vpop.f32.mrf.mxu1  ;;  %7203 = vst [vmem:[#allocation6_spill] sm:$0xff] %v5402_v34  ;;  %4109 = vmatprep.subr.bf16.mxu0 %v5402_v34 }
  0xe4   :  { %v629_v48 = vadd.f32 %v628_v36, %v443_v47  ;;  %v5422_v47 = vld [vmem:[%s7149_s3 + $0xb8] sm:$0xff]  }
  0xe5   :  { %v4611_v49 = vpop.f32.mrf.mxu0  ;;  %v5358_v53 = vpop.f32.mrf.mxu1  ;;  %7205 = vst [vmem:[#allocation8_spill] sm:$0xff] %v5422_v47  ;;  %4130 = vmatpush3.bf16.msra.mxu1 %v5422_v47 }
  0xe6   :  { %v5356_v52 = vadd.f32 %v4635_v41, %v4611_v49 }
  0xe7   :  { %v446_v55 = vpop.f32.mrf.mxu0  ;;  %v5362_v57 = vpop.f32.mrf.mxu1 }
  0xe8   :  { %v5360_v56 = vadd.f32 %v631_v44, %v446_v55 }
  0xe9   :  { %v5364_v58 = vpop.f32.mrf.mxu1 }
  0xea   :  { %v5366_v59 = vpop.f32.mrf.mxu0 }
  0xec   :  { %v5368_v63 = vpop.f32.mrf.mxu0  ;;  %v4642_v0 = vpop.f32.mrf.mxu1 }
  0xee   :  { %v5370_v1 = vpop.f32.mrf.mxu0  ;;  %v660_v4 = vpop.f32.mrf.mxu1 }
  0xf0   :  { %v5372_v7 = vpop.f32.mrf.mxu0  ;;  %v4643_v11 = vpop.f32.mrf.mxu1 }
  0xf2   :  { %v663_v12 = vpop.f32.mrf.mxu1 }
  0xf4   :  { %v4618_v16 = vpop.f32.mrf.mxu0  ;;  %v4678_v62 = vpop.f32.mrf.mxu1 }
  0xf5   :  { %v5374_v3 = vadd.f32 %v4642_v0, %v4618_v16  ;;  %v5439_v16 = vld [vmem:[%s7149_s3 + $0xf0] sm:$0xff]  }
  0xf6   :  { %v475_v39 = vpop.f32.mrf.mxu0  ;;  %v986_v17 = vpop.f32.mrf.mxu1  ;;  %7207 = vst [vmem:[#allocation10_spill] sm:$0xff] %v5439_v16  ;;  %4131 = vmatprep.subr.bf16.mxu1 %v5439_v16 }
  0xf7   :  { %v5376_v19 = vadd.f32 %v660_v4, %v475_v39 }
  0xf8   :  { %v4619_v21 = vpop.f32.mrf.mxu0  ;;  %v4679_v22 = vpop.f32.mrf.mxu1 }
  0xf9   :  { %v5378_v23 = vadd.f32 %v4643_v11, %v4619_v21 }
  0xfa   :  { %v478_v25 = vpop.f32.mrf.mxu0  ;;  %v989_v26 = vpop.f32.mrf.mxu1 }
  0xfb   :  { %v5380_v27 = vadd.f32 %v663_v12, %v478_v25  ;;  %v5434_v12 = vld [vmem:[%s7149_s3 + $0x68] sm:$0xff]  }
  0xfc   :  { %v4654_v28 = vpop.f32.mrf.mxu0  ;;  %v4682_v30 = vpop.f32.mrf.mxu1  ;;  %7206 = vst [vmem:[#allocation9_spill] sm:$0xff] %v5434_v12 }
  0xfd   :  { %v843_v31 = vadd.f32 %v4654_v28, %v621_v8 }
  0xfe   :  { %v778_v13 = vpop.f32.mrf.mxu0  ;;  %v1002_v15 = vpop.f32.mrf.mxu1 }
  0xff   :  { %v841_v33 = vadd.f32 %v778_v13, %v613_v38  ;;  %v1051_v18 = vadd.f32 %v4678_v62, %v843_v31 }
 0x100   :  { %v4655_v6 = vpop.f32.mrf.mxu0  ;;  %v4683_v32 = vpop.f32.mrf.mxu1 }
 0x101   :  { %v1049_v43 = vadd.f32 %v986_v17, %v841_v33  ;;  %v844_v54 = vadd.f32 %v4655_v6, %v624_v51  ;;  %v1074_v36 = vadd.f32 %v5390_v61, %v1051_v18  ;;  %v5470_v6 = vld [vmem:[%s7149_s3 + $0x60] sm:$0xff]  }
 0x102   :  { %v781_v35 = vpop.f32.mrf.mxu0  ;;  %v1005_v37 = vpop.f32.mrf.mxu1  ;;  %7210 = vst [vmem:[#allocation13_spill] sm:$0xff] %v5470_v6 }
 0x103   :  { %v842_v41 = vadd.f32 %v781_v35, %v616_v42  ;;  %v1072_v49 = vadd.f32 %v5390_v61, %v1049_v43  ;;  %v1052_v55 = vadd.f32 %v4679_v22, %v844_v54  ;;  %v1090_v17 = vmax.f32 %v1074_v36, 0.0  ;;  %v5489_v42 = vld [vmem:[%s7149_s3 + $0x20] sm:$0xff]  }
 0x104   :  { %v4658_v2 = vpop.f32.mrf.mxu0  ;;  %v4686_v20 = vpop.f32.mrf.mxu1  ;;  %v656_v35 = vadd.f32 %v5362_v57, %v5370_v1  ;;  %7212 = vst [vmem:[#allocation15_spill] sm:$0xff] %v5489_v42  ;;  %v5494_v57 = vld [vmem:[%s7149_s3 + $0xa8] sm:$0xff]   ;;  %v648_v1 = vadd.f32 %v5364_v58, %v5372_v7  ;;  %v5509_v58 = vld [vmem:[%s7149_s3 + $0xe0] sm:$0xff]  }
 0x105   :  { %v847_v5 = vadd.f32 %v4658_v2, %v637_v46  ;;  %v5417_v46 = vld [vmem:[%s7149_s3 + $0x30] sm:$0xff]   ;;  %v1050_v21 = vadd.f32 %v989_v26, %v842_v41  ;;  %v1088_v13 = vmax.f32 %v1072_v49, 0.0  ;;  %7213 = vst [vmem:[#allocation16_spill] sm:$0xff] %v5494_v57  ;;  %7215 = vst [vmem:[#allocation18_spill] sm:$0xff] %v5509_v58 }
 0x106   :  { %v794_v29 = vpop.f32.mrf.mxu0  ;;  %v1018_v10 = vpop.f32.mrf.mxu1  ;;  %7204 = vst [vmem:[#allocation7_spill] sm:$0xff] %v5417_v46  ;;  %4110 = vmatpush3.bf16.msra.mxu0 %v5417_v46 }
 0x107   :  { %v1055_v24 = vadd.f32 %v4682_v30, %v847_v5  ;;  %v845_v60 = vadd.f32 %v794_v29, %v629_v48  ;;  %4111 = vmatprep.subr.bf16.mxu0 %v5434_v12  ;;  %v5452_v30 = vld [vmem:[%s7149_s3 + $0x28] sm:$0xff]   ;;  %v1073_v18 = vadd.f32 %v5390_v61, %v1050_v21 }
 0x108   :  { %v4659_v44 = vpop.f32.mrf.mxu0  ;;  %v5410_v45 = vpop.f32.mrf.mxu1  ;;  %7208 = vst [vmem:[#allocation11_spill] sm:$0xff] %v5452_v30 }
 0x109   :  { %v848_v48 = vadd.f32 %v4659_v44, %v5356_v52  ;;  %v5427_v0 = vadd.f32 %v5390_v61, %v1055_v24  ;;  %v1053_v4 = vadd.f32 %v1002_v15, %v845_v60  ;;  %v653_v52 = vadd.f32 %v5354_v9, %v5366_v59  ;;  %v5457_v9 = vld [vmem:[%s7149_s3 + $0xb0] sm:$0xff]   ;;  %v5504_v24 = vld [vmem:[%s7149_s3 + $0x58] sm:$0xff]  }
 0x10a   :  { %v797_v11 = vpop.f32.mrf.mxu0  ;;  %v1021_v28 = vpop.f32.mrf.mxu1  ;;  %7209 = vst [vmem:[#allocation12_spill] sm:$0xff] %v5457_v9  ;;  %v1075_v15 = vadd.f32 %v5390_v61, %v1052_v55  ;;  %4112 = vmatpush3.bf16.msra.mxu0 %v5452_v30  ;;  %4132 = vmatpush3.bf16.msra.mxu1 %v5457_v9  ;;  %7214 = vst [vmem:[#allocation17_spill] sm:$0xff] %v5504_v24  ;;  %v1089_v60 = vmax.f32 %v1073_v18, 0.0 }
 0x10b   :  { %v1056_v62 = vadd.f32 %v4683_v32, %v848_v48  ;;  %v846_v39 = vadd.f32 %v797_v11, %v5360_v56  ;;  %v5445_v22 = vadd.f32 %v5390_v61, %v1053_v4  ;;  %v645_v56 = vadd.f32 %v5358_v53, %v5368_v63  ;;  %v5475_v53 = vld [vmem:[%s7149_s3 + $0xe8] sm:$0xff]   ;;  %4113 = vmatprep.subr.bf16.mxu0 %v5470_v6 }
 0x10c   :  { %v4662_v25 = vpop.f32.mrf.mxu0  ;;  %v4690_v31 = vpop.f32.mrf.mxu1  ;;  %7211 = vst [vmem:[#allocation14_spill] sm:$0xff] %v5475_v53  ;;  %4133 = vmatprep.subr.bf16.mxu1 %v5475_v53  ;;  %v1091_v54 = vmax.f32 %v1075_v15, 0.0 }
 0x10d   :  { %v5462_v59 = vadd.f32 %v5390_v61, %v1056_v62  ;;  %v1054_v26 = vadd.f32 %v1005_v37, %v846_v39  ;;  %v851_v8 = vadd.f32 %v4662_v25, %v653_v52  ;;  %v4047_v37 = vpack.c.bf16 %v1090_v17, %v1090_v17  ;;  %v5520_v52 = vld [vmem:[%s7149_s3 + $0x18] sm:$0xff]  }
 0x10e   :  { %v810_v38 = vpop.f32.mrf.mxu0  ;;  %v1034_v36 = vpop.f32.mrf.mxu1  ;;  %4114 = vmatpush3.bf16.msra.mxu0 %v5489_v42  ;;  %4134 = vmatpush3.bf16.msra.mxu1 %v5494_v57  ;;  %7216 = vst [vmem:[#allocation19_spill] sm:$0xff] %v5520_v52  ;;  %v4049_v39 = vpack.c.bf16 %v1091_v54, %v1091_v54 }
 0x10f   :  { %v5478_v63 = vadd.f32 %v5390_v61, %v1054_v26  ;;  %v1059_v32 = vadd.f32 %v4686_v20, %v851_v8  ;;  %v849_v33 = vadd.f32 %v810_v38, %v645_v56  ;;  %v4043_v20 = vpack.c.bf16 %v1088_v13, %v1088_v13  ;;  %4115 = vmatprep.subr.bf16.mxu0 %v5504_v24  ;;  %v5533_v56 = vld [vmem:[%s7149_s3 + $0x50] sm:$0xff]   ;;  %v5538_v26 = vld [vmem:[%s7149_s3 + $0xd8] sm:$0xff]  }
 0x110   :  { %v4663_v51 = vpop.f32.mrf.mxu0  ;;  %v5511_v7 = vunpack.c.l.b16 %v4047_v37  ;;  %4135 = vmatprep.subr.bf16.mxu1 %v5509_v58  ;;  %v4691_v25 = vpop.f32.mrf.mxu1  ;;  %7218 = vst [vmem:[#allocation21_spill] sm:$0xff] %v5533_v56  ;;  %7219 = vst [vmem:[#allocation22_spill] sm:$0xff] %v5538_v26 }
 0x111   :  { %v1082_v2 = vadd.f32 %v5390_v61, %v1059_v32  ;;  %v1057_v43 = vadd.f32 %v1018_v10, %v849_v33  ;;  %v852_v5 = vadd.f32 %v4663_v51, %v656_v35  ;;  %v5527_v62 = vunpack.c.l.b16 %v4043_v20 }
 0x112   :  { %v813_v29 = vpop.f32.mrf.mxu0  ;;  %4116 = vmatpush3.bf16.msra.mxu0 %v5520_v52  ;;  %v5547_v37 = vrot.slane %v5511_v7, 1 }
 0x113   :  { %v1098_v41 = vmax.f32 %v1082_v2, 0.0  ;;  %v1080_v10 = vadd.f32 %v5390_v61, %v1057_v43  ;;  %v1060_v44 = vadd.f32 %v5410_v45, %v852_v5  ;;  %v850_v49 = vadd.f32 %v813_v29, %v648_v1  ;;  %v5525_v45 = vld [vmem:[%s7149_s3 + $0xa0] sm:$0xff]   ;;  %4117 = vmatprep.subr.bf16.mxu0 %v5533_v56  ;;  %v1037_v1 = vpop.f32.mrf.mxu1  ;;  %v5569_v29 = vld [vmem:[%s7149_s3 + $0x10] sm:$0xff]  }
 0x114   :  { %v4666_v48 = vpop.f32.mrf.mxu0  ;;  %7217 = vst [vmem:[#allocation20_spill] sm:$0xff] %v5525_v45  ;;  %4136 = vmatpush3.bf16.msra.mxu1 %v5525_v45  ;;  %v5561_v54 = vrot.slane %v5527_v62, 1  ;;  %7220 = vst [vmem:[#allocation23_spill] sm:$0xff] %v5569_v29 }
 0x115   :  { %v4048_v55 = vpack.c.bf16 %v1098_v41, %v1098_v41  ;;  %v1096_v4 = vmax.f32 %v1080_v10, 0.0  ;;  %v855_v11 = vadd.f32 %v4666_v48, %v5374_v3  ;;  %v1083_v3 = vadd.f32 %v5390_v61, %v1060_v44  ;;  %4137 = vmatprep.subr.bf16.mxu1 %v5538_v26  ;;  %v5583_v44 = vld [vmem:[%s7149_s3 + $0x48] sm:$0xff]  }
 0x116   :  { %v1058_v17 = vadd.f32 %v1021_v28, %v850_v49  ;;  %v826_v21 = vpop.f32.mrf.mxu0  ;;  %v4045_v28 = vpack.c.bf16 %v1089_v60, %v1089_v60  ;;  %7222 = vst [vmem:[#allocation25_spill] sm:$0xff] %v5583_v44  ;;  %v5588_v49 = vld [vmem:[%s7149_s3 + $0xd0] sm:$0xff]   ;;  %4118 = vmatpush3.bf16.msra.mxu0 %v5569_v29 }
 0x117   :  { %v5540_v8 = vunpack.c.l.b16 %v4048_v55  ;;  %v4044_v13 = vpack.c.bf16 %v1096_v4, %v1096_v4  ;;  %v853_v15 = vadd.f32 %v826_v21, %v5376_v19  ;;  %v1063_v38 = vadd.f32 %v4690_v31, %v855_v11  ;;  %7223 = vst [vmem:[#allocation26_spill] sm:$0xff] %v5588_v49  ;;  %4119 = vmatprep.subr.bf16.mxu0 %v5583_v44  ;;  %v5608_v21 = vld [vmem:[%s7149_s3 + $0x8] sm:$0xff]  }
 0x118   :  { %v1099_v32 = vmax.f32 %v1083_v3, 0.0  ;;  %v1081_v33 = vadd.f32 %v5390_v61, %v1058_v17  ;;  %v4667_v35 = vpop.f32.mrf.mxu0  ;;  %v5594_v11 = vrot.slane %v5511_v7, 2  ;;  %7224 = vst [vmem:[#allocation27_spill] sm:$0xff] %v5608_v21 }
 0x119   :  { %v5551_v18 = vunpack.c.l.b16 %v4044_v13  ;;  %v5554_v19 = vadd.f32 %v5390_v61, %v1063_v38  ;;  %v856_v31 = vadd.f32 %v4667_v35, %v5378_v23  ;;  %v1061_v51 = vadd.f32 %v1034_v36, %v853_v15  ;;  %v5574_v23 = vld [vmem:[%s7149_s3 + $0x98] sm:$0xff]  }
 0x11a   :  { %v1097_v2 = vmax.f32 %v1081_v33, 0.0  ;;  %v829_v43 = vpop.f32.mrf.mxu0  ;;  %v1258_v20 = vsel %vm1206_vm4, %v5540_v8, %v5547_v37  ;;  %v5564_v5 = vrot.slane %v5540_v8, 1  ;;  %7221 = vst [vmem:[#allocation24_spill] sm:$0xff] %v5574_v23  ;;  %v4050_v36 = vpack.c.bf16 %v1099_v32, %v1099_v32  ;;  %4138 = vmatpush3.bf16.msra.mxu1 %v5574_v23  ;;  %4120 = vmatpush3.bf16.msra.mxu0 %v5608_v21 }
 0x11b   :  { %v5577_v41 = vadd.f32 %v5390_v61, %v1061_v51  ;;  %v854_v10 = vadd.f32 %v829_v43, %v5380_v27  ;;  %v1064_v60 = vadd.f32 %v4691_v25, %v856_v31  ;;  %v1259_v55 = vpack.c.b16 %v1258_v20, %v1258_v20  ;;  %4139 = vmatprep.subr.bf16.mxu1 %v5588_v49  ;;  %v5613_v25 = vld [vmem:[%s7149_s3 + $0x90] sm:$0xff]   ;;  %v5635_v51 = vld [vmem:[%s7149_s3 + $0x40] sm:$0xff]  }
 0x11c   :  { %v4046_v48 = vpack.c.bf16 %v1097_v2, %v1097_v2  ;;  %v1210_v4 = vsel %vm1206_vm4, %v5551_v18, %v5561_v54  ;;  %v5598_v27 = vunpack.c.l.b16 %v4045_v28  ;;  %7225 = vst [vmem:[#allocation28_spill] sm:$0xff] %v5613_v25  ;;  %v1264_v15 = vsel %vm1206_vm4, %v5564_v5, %v5594_v11  ;;  %7226 = vst [vmem:[#allocation29_spill] sm:$0xff] %v5635_v51  ;;  %v5640_v2 = vld [vmem:[%s7149_s3 + $0xc8] sm:$0xff]  }
 0x11d   :  { %v5601_v3 = vadd.f32 %v5390_v61, %v1064_v60  ;;  %v1062_v17 = vadd.f32 %v1037_v1, %v854_v10  ;;  %1260 = vrot.lane.b32.xlu1 %v1259_v55, %s4921_s13  ;;  %v1211_v13 = vpack.c.b16 %v1210_v4, %v1210_v4  ;;  %v5620_v38 = vrot.slane %v5527_v62, 3  ;;  %7227 = vst [vmem:[#allocation30_spill] sm:$0xff] %v5640_v2  ;;  %v5666_v10 = vld [vmem:[%s7149_s3 + $0x88] sm:$0xff]  }
 0x11e   :  { %v5623_v28 = vrot.slane %v5551_v18, 2  ;;  %v5625_v32 = vunpack.c.l.b16 %v4049_v39  ;;  %v5627_v33 = vunpack.c.l.b16 %v4050_v36  ;;  %v5629_v35 = vunpack.c.l.b16 %v4046_v48  ;;  %4140 = vmatpush3.bf16.msra.mxu1 %v5613_v25  ;;  %4121 = vmatprep.subr.bf16.mxu0 %v5635_v51  ;;  %v5661_v36 = vld [vmem:[%s7149_s3] sm:$0xff]   ;;  %7229 = vst [vmem:[#allocation32_spill] sm:$0xff] %v5666_v10 }
 0x11f   :  { %v1085_v31 = vadd.f32 %v5390_v61, %v1062_v17  ;;  %1212 = vrot.lane.b32.xlu0 %v1211_v13, %s4921_s13  ;;  %v1265_v39 = vpack.c.b16 %v1264_v15, %v1264_v15  ;;  %v5647_v1 = vrot.slane %v5527_v62, 2  ;;  %v5650_v61 = vrot.slane %v5551_v18, 1  ;;  %7228 = vst [vmem:[#allocation31_spill] sm:$0xff] %v5661_v36  ;;  %4141 = vmatprep.subr.bf16.mxu1 %v5640_v2  ;;  %v5685_v13 = vld [vmem:[%s7149_s3 + $0xc0] sm:$0xff]  }
 0x120   :  { %v1222_v43 = vsel %vm1206_vm4, %v5623_v28, %v5620_v38  ;;  %v5654_v20 = vrot.slane %v5598_v27, 1  ;;  %v5677_v4 = vrot.slane %v5625_v32, 1  ;;  %v5680_v17 = vrot.slane %v5627_v33, 1  ;;  %7230 = vst [vmem:[#allocation33_spill] sm:$0xff] %v5685_v13  ;;  %4122 = vmatpush3.bf16.msra.mxu0 %v5661_v36 }
 0x121   :  { %1266 = vrot.lane.b32.xlu1 %v1265_v39, %s4922_s21  ;;  %v1223_v60 = vpack.c.b16 %v1222_v43, %v1222_v43  ;;  %v1216_v48 = vsel %vm1206_vm4, %v5650_v61, %v5647_v1  ;;  %v1092_v39 = vmax.f32 %v5445_v22, 0.0  ;;  %v5694_v2 = vrot.slane %v5625_v32, 2  ;;  %4151 = vmatprep.subr.bf16.mxu0 %v5385_v14 }
 0x122   :  { %v1234_v55 = vsel %vm1206_vm4, %v5629_v35, %v5654_v20  ;;  %v1217_v15 = vpack.c.b16 %v1216_v48, %v1216_v48  ;;  %v1282_v43 = vsel %vm1206_vm4, %v5627_v33, %v5677_v4  ;;  %v5697_v51 = vrot.slane %v5629_v35, 1  ;;  %4142 = vmatpush3.bf16.msra.mxu1 %v5666_v10 }
 0x123   :  { %1224 = vrot.lane.b32.xlu0 %v1223_v60, %s4923_s0  ;;  %v5704_v60 = vld [vmem:[%s7149_s3 + $0x80] sm:$0xff]   ;;  %v1093_v22 = vmax.f32 %v5478_v63, 0.0  ;;  %v1235_v48 = vpack.c.b16 %v1234_v55, %v1234_v55  ;;  %v1100_v36 = vmax.f32 %v5577_v41, 0.0  ;;  %v1288_v25 = vsel %vm1206_vm4, %v5680_v17, %v5694_v2  ;;  %4143 = vmatprep.subr.bf16.mxu1 %v5685_v13 }
 0x124   :  { %7231 = vst [vmem:[#allocation34_spill] sm:$0xff] %v5704_v60  ;;  %v5713_v10 = vrot.slane %v5598_v27, 2  ;;  %v5716_v14 = vrot.slane %v5629_v35, 2  ;;  %v1101_v21 = vmax.f32 %v1085_v31, 0.0  ;;  %v1283_v63 = vpack.c.b16 %v1282_v43, %v1282_v43 }
 0x125   :  { %1218 = vrot.lane.b32.xlu1 %v1217_v15, %s4922_s21  ;;  %v4051_v15 = vpack.c.bf16 %v1092_v39, %v1092_v39  ;;  %v5724_v55 = vrot.slane %v5598_v27, 3  ;;  %v5727_v49 = vrot.slane %v5540_v8, 2  ;;  %v4053_v44 = vpack.c.bf16 %v1093_v22, %v1093_v22 }
 0x126   :  { %v1240_v41 = vsel %vm1206_vm4, %v5697_v51, %v5713_v10  ;;  %4144 = vmatpush3.bf16.msra.mxu1 %v5704_v60  ;;  %v1289_v31 = vpack.c.b16 %v1288_v25, %v1288_v25  ;;  %v4052_v13 = vpack.c.bf16 %v1100_v36, %v1100_v36  ;;  %v5735_v43 = vrot.slane %v5511_v7, 3 }
 0x127   :  { %1236 = vrot.lane.b32.xlu0 %v1235_v48, %s4921_s13  ;;  %v1246_v39 = vsel %vm1206_vm4, %v5716_v14, %v5724_v55  ;;  %v5738_v48 = vrot.slane %v5627_v33, 2  ;;  %4173 = vmatprep.subr.bf16.mxu1 %v5407_v40  ;;  %v1094_v23 = vmax.f32 %v5427_v0, 0.0  ;;  %v4054_v60 = vpack.c.bf16 %v1101_v21, %v1101_v21 }
 0x128   :  { %v1241_v22 = vpack.c.b16 %v1240_v41, %v1240_v41  ;;  %v5743_v25 = vunpack.c.l.b16 %v4051_v15  ;;  %v1095_v36 = vmax.f32 %v5462_v59, 0.0  ;;  %v5750_v29 = vrot.slane %v5625_v32, 3 }
 0x129   :  { %1284 = vrot.lane.b32.xlu1 %v1283_v63, %s4921_s13  ;;  %v1270_v63 = vsel %vm1206_vm4, %v5727_v49, %v5735_v43  ;;  %v5752_v26 = vunpack.c.l.b16 %v4053_v44  ;;  %v1247_v40 = vpack.c.b16 %v1246_v39, %v1246_v39  ;;  %v1102_v0 = vmax.f32 %v5554_v19, 0.0 }
 0x12a   :  { %v5756_v21 = vunpack.c.l.b16 %v4052_v13  ;;  %v1294_v59 = vsel %vm1206_vm4, %v5738_v48, %v5750_v29  ;;  %v5761_v15 = vunpack.c.l.b16 %v4054_v60  ;;  %v1271_v41 = vpack.c.b16 %v1270_v63, %v1270_v63 }
 0x12b   :  { %1290 = vrot.lane.b32.xlu0 %v1289_v31, %s4922_s21  ;;  %v1615_v44 = vsel %vm1612_vm5, %v5551_v18, %v5561_v54  ;;  %v4055_v31 = vpack.c.bf16 %v1094_v23, %v1094_v23  ;;  %v4057_v39 = vpack.c.bf16 %v1095_v36, %v1095_v36  ;;  %v1977_v19 = vrot.slane %v5743_v25, 1 }
 0x12c   :  { %v1982_v13 = vrot.slane %v5743_v25, 2  ;;  %v1629_v60 = vsel %vm1612_vm5, %v5629_v35, %v5654_v20  ;;  %v2001_v63 = vrot.slane %v5752_v26, 1  ;;  %v4056_v56 = vpack.c.bf16 %v1102_v0, %v1102_v0 }
 0x12d   :  { %1242 = vrot.lane.b32.xlu1 %v1241_v22, %s4922_s21  ;;  %v1295_v22 = vpack.c.b16 %v1294_v59, %v1294_v59  ;;  %v1103_v23 = vmax.f32 %v5601_v3, 0.0  ;;  %v1616_v36 = vpack.c.b16 %v1615_v44, %v1615_v44  ;;  %v5778_v45 = vsel %vm1206_vm4, %v5756_v21, %v1977_v19 }
 0x12e   :  { %v1619_v59 = vsel %vm1612_vm5, %v5650_v61, %v5647_v1  ;;  %v1983_v52 = vrot.slane %v5756_v21, 1  ;;  %v2007_v0 = vrot.slane %v5761_v15, 1  ;;  %v1630_v3 = vpack.c.b16 %v1629_v60, %v1629_v60 }
 0x12f   :  { %1248 = vrot.lane.b32.xlu0 %v1247_v40, %s4923_s0  ;;  %v2006_v40 = vrot.slane %v5752_v26, 2  ;;  %v1988_v44 = vrot.slane %v5743_v25, 3  ;;  %v1989_v58 = vrot.slane %v5756_v21, 2  ;;  %v2012_v24 = vrot.slane %v5752_v26, 3 }
 0x130   :  { %v2013_v42 = vrot.slane %v5761_v15, 2  ;;  %v5803_v53 = vsel %vm1612_vm5, %v5756_v21, %v1977_v19  ;;  %v5805_v60 = vunpack.c.l.b16 %v4055_v31  ;;  %v4058_v6 = vpack.c.bf16 %v1103_v23, %v1103_v23 }
 0x131   :  { %1272 = vrot.lane.b32.xlu1 %v1271_v41, %s4923_s0  ;;  %v5786_v41 = vsel %vm1206_vm4, %v5761_v15, %v2001_v63  ;;  %v5798_v57 = vsel %vm1206_vm4, %v2007_v0, %v2006_v40  ;;  %7232 = vst [vmem:[#allocation35_spill] sm:$0xff] %v5803_v53  ;;  %v1623_v9 = vsel %vm1612_vm5, %v5623_v28, %v5620_v38  ;;  %v5824_v23 = vunpack.c.l.b16 %v4057_v39 }
 0x132   :  { %v1620_v30 = vpack.c.b16 %v1619_v59, %v1619_v59  ;;  %v5815_v16 = vsel %vm1206_vm4, %v2013_v42, %v2012_v24  ;;  %v5819_v12 = vsel %vm1612_vm5, %v5761_v15, %v2001_v63  ;;  %v5822_v31 = vsel %vm1612_vm5, %v1983_v52, %v1982_v13 }
 0x133   :  { %1296 = vrot.lane.b32.xlu0 %v1295_v22, %s4923_s0  ;;  %v5795_v22 = vsel %vm1206_vm4, %v1983_v52, %v1982_v13  ;;  %7233 = vst [vmem:[#allocation36_spill] sm:$0xff] %v5815_v16  ;;  %7234 = vst [vmem:[#allocation37_spill] sm:$0xff] %v5819_v12  ;;  %v5826_v47 = vunpack.c.l.b16 %v4056_v56  ;;  %v1657_v46 = vsel %vm1612_vm5, %v5627_v33, %v5677_v4  ;;  %v5845_v39 = vunpack.c.l.b16 %v4058_v6 }
 0x134   :  { %7235 = vst [vmem:[#allocation38_spill] sm:$0xff] %v5822_v31  ;;  %v5832_v59 = vsel %vm1612_vm5, %v2007_v0, %v2006_v40  ;;  %v5836_v34 = vsel %vm1612_vm5, %v1989_v58, %v1988_v44  ;;  %v5839_v50 = vsel %vm1612_vm5, %v2013_v42, %v2012_v24  ;;  %v5843_v56 = vsel %vm1791_vm6, %v5756_v21, %v1977_v19 }
 0x135   :  { %1617 = vrot.lane.b32.xlu1 %v1616_v36, %s4921_s13  ;;  %v5811_v36 = vsel %vm1206_vm4, %v1989_v58, %v1988_v44  ;;  %7236 = vst [vmem:[#allocation39_spill] sm:$0xff] %v5832_v59  ;;  %7237 = vst [vmem:[#allocation40_spill] sm:$0xff] %v5836_v34  ;;  %v1661_v31 = vsel %vm1612_vm5, %v5680_v17, %v5694_v2  ;;  %v5859_v19 = vsel %vm1791_vm6, %v1983_v52, %v1982_v13 }
 0x136   :  { %7238 = vst [vmem:[#allocation41_spill] sm:$0xff] %v5839_v50  ;;  %7239 = vst [vmem:[#allocation42_spill] sm:$0xff] %v5843_v56  ;;  %v1658_v50 = vpack.c.b16 %v1657_v46, %v1657_v46  ;;  %v5862_v6 = vsel %vm1791_vm6, %v2007_v0, %v2006_v40  ;;  %v5865_v56 = vsel %vm1791_vm6, %v1989_v58, %v1988_v44  ;;  %v2383_v52 = vrot.slane %v5805_v60, 1 }
 0x137   :  { %1631 = vrot.lane.b32.xlu0 %v1630_v3, %s4921_s13  ;;  %v1624_v3 = vpack.c.b16 %v1623_v9, %v1623_v9  ;;  %v5855_v9 = vsel %vm1791_vm6, %v5761_v15, %v2001_v63  ;;  %7241 = vst [vmem:[#allocation44_spill] sm:$0xff] %v5859_v19  ;;  %7242 = vst [vmem:[#allocation45_spill] sm:$0xff] %v5862_v6  ;;  %v1633_v34 = vsel %vm1612_vm5, %v5697_v51, %v5713_v10 }
 0x138   :  { %7240 = vst [vmem:[#allocation43_spill] sm:$0xff] %v5855_v9  ;;  %7243 = vst [vmem:[#allocation46_spill] sm:$0xff] %v5865_v56  ;;  %v5871_v59 = vsel %vm1791_vm6, %v2013_v42, %v2012_v24  ;;  %v1662_v63 = vpack.c.b16 %v1661_v31, %v1661_v31  ;;  %v2407_v13 = vrot.slane %v5824_v23, 1  ;;  %v2388_v40 = vrot.slane %v5805_v60, 2 }
 0x139   :  { %1621 = vrot.lane.b32.xlu1 %v1620_v30, %s4922_s21  ;;  %v1643_v30 = vsel %vm1612_vm5, %v5540_v8, %v5547_v37  ;;  %7244 = vst [vmem:[#allocation47_spill] sm:$0xff] %v5871_v59  ;;  %v2389_v58 = vrot.slane %v5826_v47, 1  ;;  %v5879_v0 = vrot.slane %v5540_v8, 7  ;;  %v2412_v44 = vrot.slane %v5824_v23, 2 }
 0x13a   :  { %v1644_v46 = vpack.c.b16 %v1643_v30, %v1643_v30  ;;  %v5889_v42 = vsel %vm1206_vm4, %v5845_v39, %v2407_v13  ;;  %v2413_v24 = vrot.slane %v5845_v39, 1  ;;  %v1205_v31 = vrot.slane %v5551_v18, 7 }
 0x13b   :  { %1625 = vrot.lane.b32.xlu0 %v1624_v3, %s4923_s0  ;;  %7246 = vst [vmem:[#allocation49_spill] sm:$0xff] %v5889_v42  ;;  %v1647_v3 = vsel %vm1612_vm5, %v5564_v5, %v5594_v11  ;;  %v5897_v30 = vsel %vm1206_vm4, %v2389_v58, %v2388_v40  ;;  %v1637_v56 = vsel %vm1612_vm5, %v5716_v14, %v5724_v55  ;;  %v2395_v6 = vrot.slane %v5826_v47, 2 }
 0x13c   :  { %7247 = vst [vmem:[#allocation50_spill] sm:$0xff] %v5897_v30  ;;  %v5906_v42 = vsel %vm1206_vm4, %v2413_v24, %v2412_v44  ;;  %v5910_v59 = vsel %vm1206_vm4, %v1205_v31, %v5527_v62  ;;  %v2394_v30 = vrot.slane %v5805_v60, 3  ;;  %v5932_v9 = vsel %vm1612_vm5, %v5845_v39, %v2407_v13 }
 0x13d   :  { %1659 = vrot.lane.b32.xlu1 %v1658_v50, %s4921_s13  ;;  %v5885_v50 = vsel %vm1206_vm4, %v5826_v47, %v2383_v52  ;;  %7249 = vst [vmem:[#allocation52_spill] sm:$0xff] %v5906_v42  ;;  %7250 = vst [vmem:[#allocation53_spill] sm:$0xff] %v5910_v59  ;;  %v5922_v42 = vsel %vm1612_vm5, %v5826_v47, %v2383_v52  ;;  %v1651_v59 = vsel %vm1612_vm5, %v5727_v49, %v5735_v43 }
 0x13e   :  { %7245 = vst [vmem:[#allocation48_spill] sm:$0xff] %v5885_v50  ;;  %v1634_v50 = vpack.c.b16 %v1633_v34, %v1633_v34  ;;  %v2418_v34 = vrot.slane %v5824_v23, 3  ;;  %7251 = vst [vmem:[#allocation54_spill] sm:$0xff] %v5922_v42  ;;  %v5928_v19 = vsel %vm1206_vm4, %v2395_v6, %v2394_v30  ;;  %v5940_v42 = vsel %vm1612_vm5, %v2389_v58, %v2388_v40 }
 0x13f   :  { %1663 = vrot.lane.b32.xlu0 %v1662_v63, %s4922_s21  ;;  %v5902_v63 = vsel %vm1206_vm4, %v5879_v0, %v5511_v7  ;;  %7252 = vst [vmem:[#allocation55_spill] sm:$0xff] %v5928_v19  ;;  %7253 = vst [vmem:[#allocation56_spill] sm:$0xff] %v5932_v9  ;;  %v1665_v53 = vsel %vm1612_vm5, %v5738_v48, %v5750_v29  ;;  %v1278_v9 = vrot.slane %v5627_v33, 7 }
 0x140   :  { %7248 = vst [vmem:[#allocation51_spill] sm:$0xff] %v5902_v63  ;;  %v1648_v63 = vpack.c.b16 %v1647_v3, %v1647_v3  ;;  %v1638_v3 = vpack.c.b16 %v1637_v56, %v1637_v56  ;;  %7255 = vst [vmem:[#allocation58_spill] sm:$0xff] %v5940_v42  ;;  %v5952_v56 = vsel %vm1612_vm5, %v2413_v24, %v2412_v44 }
 0x141   :  { %1645 = vrot.lane.b32.xlu1 %v1644_v46, %s4921_s13  ;;  %v2419_v46 = vrot.slane %v5845_v39, 2  ;;  %v1794_v16 = vsel %vm1791_vm6, %v5551_v18, %v5561_v54  ;;  %v1808_v18 = vsel %vm1791_vm6, %v5629_v35, %v5654_v20  ;;  %v5984_v54 = vsel %vm1612_vm5, %v1205_v31, %v5527_v62 }
 0x142   :  { %v1802_v20 = vsel %vm1791_vm6, %v5623_v28, %v5620_v38 }
 0x143   :  { %1635 = vrot.lane.b32.xlu0 %v1634_v50, %s4922_s21  ;;  %v1230_v50 = vrot.slane %v5629_v35, 7  ;;  %v5937_v12 = vsel %vm1206_vm4, %v2419_v46, %v2418_v34  ;;  %v5958_v42 = vsel %vm1612_vm5, %v2419_v46, %v2418_v34  ;;  %v1798_v35 = vsel %vm1791_vm6, %v5650_v61, %v5647_v1 }
 0x144   :  { %7254 = vst [vmem:[#allocation57_spill] sm:$0xff] %v5937_v12  ;;  %v5955_v12 = vsel %vm1612_vm5, %v2395_v6, %v2394_v30  ;;  %7258 = vst [vmem:[#allocation61_spill] sm:$0xff] %v5958_v42  ;;  %v5977_v42 = vsel %vm1791_vm6, %v2389_v58, %v2388_v40  ;;  %v5995_v40 = vsel %vm1791_vm6, %v2395_v6, %v2394_v30  ;;  %v1974_v30 = vrot.slane %v5756_v21, 7 }
 0x145   :  { %1649 = vrot.lane.b32.xlu1 %v1648_v63, %s4922_s21  ;;  %v5947_v19 = vsel %vm1206_vm4, %v1230_v50, %v5598_v27  ;;  %v1652_v63 = vpack.c.b16 %v1651_v59, %v1651_v59  ;;  %7257 = vst [vmem:[#allocation60_spill] sm:$0xff] %v5955_v12  ;;  %v1666_v59 = vpack.c.b16 %v1665_v53, %v1665_v53 }
 0x146   :  { %7256 = vst [vmem:[#allocation59_spill] sm:$0xff] %v5947_v19  ;;  %v5965_v19 = vsel %vm1206_vm4, %v1278_v9, %v5625_v32  ;;  %v5974_v12 = vsel %vm1791_vm6, %v5845_v39, %v2407_v13  ;;  %v1795_v53 = vpack.c.b16 %v1794_v16, %v1794_v16  ;;  %v5992_v13 = vsel %vm1612_vm5, %v1230_v50, %v5598_v27 }
 0x147   :  { %1639 = vrot.lane.b32.xlu0 %v1638_v3, %s4923_s0  ;;  %v5970_v3 = vsel %vm1791_vm6, %v5826_v47, %v2383_v52  ;;  %v5988_v52 = vsel %vm1791_vm6, %v2413_v24, %v2412_v44  ;;  %v6004_v16 = vsel %vm1791_vm6, %v2419_v46, %v2418_v34  ;;  %v1809_v58 = vpack.c.b16 %v1808_v18, %v1808_v18 }
 0x148   :  { %v6009_v44 = vsel %vm1612_vm5, %v1278_v9, %v5625_v32  ;;  %v6014_v6 = vsel %vm1612_vm5, %v5879_v0, %v5511_v7  ;;  %v6018_v1 = vsel %vm1791_vm6, %v1205_v31, %v5527_v62  ;;  %v6022_v38 = vsel %vm1791_vm6, %v1230_v50, %v5598_v27 }
 0x149   :  { %1653 = vrot.lane.b32.xlu1 %v1652_v63, %s4923_s0  ;;  %v1799_v28 = vpack.c.b16 %v1798_v35, %v1798_v35  ;;  %v6027_v61 = vsel %vm1791_vm6, %v1278_v9, %v5625_v32  ;;  %v6032_v24 = vsel %vm1791_vm6, %v5879_v0, %v5511_v7  ;;  %v1803_v62 = vpack.c.b16 %v1802_v20, %v1802_v20  ;;  %v7261_v35 = vld [vmem:[#allocation37_spill] sm:$0xff]  ;;  %v7262_v20 = vld [vmem:[#allocation38_spill] sm:$0xff] }
 0x14a   :  { %v1836_v27 = vsel %vm1791_vm6, %v5627_v33, %v5677_v4  ;;  %v1998_v31 = vrot.slane %v5761_v15, 7  ;;  %v2380_v34 = vrot.slane %v5826_v47, 7  ;;  %v6043_v32 = vsel %vm1206_vm4, %v1974_v30, %v5743_v25 }
 0x14b   :  { %1667 = vrot.lane.b32.xlu0 %v1666_v59, %s4923_s0  ;;  %v6047_v7 = vsel %vm1612_vm5, %v1974_v30, %v5743_v25  ;;  %v6051_v21 = vsel %vm1791_vm6, %v1974_v30, %v5743_v25  ;;  %v2404_v33 = vrot.slane %v5845_v39, 7  ;;  %v1840_v47 = vsel %vm1791_vm6, %v5680_v17, %v5694_v2  ;;  %v7264_v30 = vld [vmem:[#allocation40_spill] sm:$0xff] }
 0x14c   :  { %v6059_v4 = vsel %vm1206_vm4, %v1998_v31, %v5752_v26  ;;  %v6063_v15 = vsel %vm1612_vm5, %v1998_v31, %v5752_v26  ;;  %v1837_v9 = vpack.c.b16 %v1836_v27, %v1836_v27  ;;  %v6068_v25 = vsel %vm1791_vm6, %v1998_v31, %v5752_v26  ;;  %v7265_v27 = vld [vmem:[#allocation41_spill] sm:$0xff] }
 0x14d   :  { %1796 = vrot.lane.b32.xlu1 %v1795_v53, %s4921_s13  ;;  %v1822_v39 = vsel %vm1791_vm6, %v5540_v8, %v5547_v37  ;;  %v6075_v2 = vsel %vm1206_vm4, %v2380_v34, %v5805_v60  ;;  %v6079_v17 = vsel %vm1206_vm4, %v2404_v33, %v5824_v23  ;;  %v6083_v0 = vsel %vm1612_vm5, %v2380_v34, %v5805_v60  ;;  %v7260_v53 = vld [vmem:[#allocation35_spill] sm:$0xff] }
 0x14e   :  { %v1841_v26 = vpack.c.b16 %v1840_v47, %v1840_v47  ;;  %v6088_v46 = vsel %vm1612_vm5, %v2404_v33, %v5824_v23  ;;  %v1812_v8 = vsel %vm1791_vm6, %v5697_v51, %v5713_v10  ;;  %v6095_v37 = vsel %vm1791_vm6, %v2380_v34, %v5805_v60  ;;  %v7266_v34 = vld [vmem:[#allocation42_spill] sm:$0xff]  ;;  %v7267_v47 = vld [vmem:[#allocation43_spill] sm:$0xff] }
 0x14f   :  { %1810 = vrot.lane.b32.xlu0 %v1809_v58, %s4921_s13  ;;  %v6099_v50 = vsel %vm1791_vm6, %v2404_v33, %v5824_v23  ;;  %v1823_v63 = vpack.c.b16 %v1822_v39, %v1822_v39  ;;  %v1826_v59 = vsel %vm1791_vm6, %v5564_v5, %v5594_v11  ;;  %v1813_v18 = vpack.c.b16 %v1812_v8, %v1812_v8  ;;  %v7263_v58 = vld [vmem:[#allocation39_spill] sm:$0xff]  ;;  %v7268_v39 = vld [vmem:[#allocation44_spill] sm:$0xff]  ;;  %v7269_v8 = vld [vmem:[#allocation45_spill] sm:$0xff] }
 0x150   :  { %v1816_v51 = vsel %vm1791_vm6, %v5716_v14, %v5724_v55  ;;  %v1827_v10 = vpack.c.b16 %v1826_v59, %v1826_v59  ;;  %v1830_v60 = vsel %vm1791_vm6, %v5727_v49, %v5735_v43  ;;  %v1844_v5 = vsel %vm1791_vm6, %v5738_v48, %v5750_v29  ;;  %v7259_v48 = vld [vmem:[#allocation36_spill] sm:$0xff]  ;;  %v7270_v59 = vld [vmem:[#allocation46_spill] sm:$0xff] }
 0x151   :  { %1800 = vrot.lane.b32.xlu1 %v1799_v28, %s4922_s21  ;;  %v1817_v23 = vpack.c.b16 %v1816_v51, %v1816_v51  ;;  %v1831_v11 = vpack.c.b16 %v1830_v60, %v1830_v60  ;;  %v1845_v14 = vpack.c.b16 %v1844_v5, %v1844_v5  ;;  %v1979_v55 = vpack.c.b16 %v5778_v45, %v5778_v45  ;;  %v7271_v51 = vld [vmem:[#allocation47_spill] sm:$0xff]  ;;  %v7272_v60 = vld [vmem:[#allocation48_spill] sm:$0xff]  ;;  %v7273_v5 = vld [vmem:[#allocation49_spill] sm:$0xff] }
 0x152   :  { %v2003_v49 = vpack.c.b16 %v5786_v41, %v5786_v41  ;;  %v1985_v29 = vpack.c.b16 %v5795_v22, %v5795_v22  ;;  %v2009_v43 = vpack.c.b16 %v5798_v57, %v5798_v57  ;;  %v1991_v45 = vpack.c.b16 %v5811_v36, %v5811_v36 }
 0x153   :  { %1804 = vrot.lane.b32.xlu0 %v1803_v62, %s4923_s0  ;;  %v2015_v41 = vpack.c.b16 %v7259_v48, %v7259_v48  ;;  %v2119_v22 = vpack.c.b16 %v7260_v53, %v7260_v53  ;;  %v2133_v57 = vpack.c.b16 %v7261_v35, %v7261_v35  ;;  %v2123_v36 = vpack.c.b16 %v7262_v20, %v7262_v20  ;;  %v7277_v53 = vld [vmem:[#allocation57_spill] sm:$0xff] }
 0x154   :  { %v2137_v28 = vpack.c.b16 %v7263_v58, %v7263_v58  ;;  %v2127_v62 = vpack.c.b16 %v7264_v30, %v7264_v30  ;;  %v2141_v31 = vpack.c.b16 %v7265_v27, %v7265_v27  ;;  %v2249_v33 = vpack.c.b16 %v7266_v34, %v7266_v34  ;;  %v7279_v58 = vld [vmem:[#allocation56_spill] sm:$0xff] }
 0x155   :  { %1838 = vrot.lane.b32.xlu1 %v1837_v9, %s4921_s13  ;;  %v2263_v9 = vpack.c.b16 %v7267_v47, %v7267_v47  ;;  %v2543_v34 = vpack.c.b16 %v5952_v56, %v5952_v56  ;;  %v7281_v47 = vld [vmem:[#allocation60_spill] sm:$0xff] }
 0x157   :  { %1842 = vrot.lane.b32.xlu0 %v1841_v26, %s4922_s21  ;;  %v2253_v26 = vpack.c.b16 %v7268_v39, %v7268_v39  ;;  %v7282_v39 = vld [vmem:[#allocation53_spill] sm:$0xff] }
 0x159   :  { %1824 = vrot.lane.b32.xlu1 %v1823_v63, %s4921_s13  ;;  %v2267_v63 = vpack.c.b16 %v7269_v8, %v7269_v8  ;;  %v7283_v8 = vld [vmem:[#allocation59_spill] sm:$0xff] }
 0x15b   :  { %1814 = vrot.lane.b32.xlu0 %v1813_v18, %s4922_s21  ;;  %v2257_v18 = vpack.c.b16 %v7270_v59, %v7270_v59 }
 0x15d   :  { %1828 = vrot.lane.b32.xlu1 %v1827_v10, %s4922_s21  ;;  %v2271_v10 = vpack.c.b16 %v7271_v51, %v7271_v51 }
 0x15f   :  { %1818 = vrot.lane.b32.xlu0 %v1817_v23, %s4923_s0  ;;  %v2385_v23 = vpack.c.b16 %v7272_v60, %v7272_v60 }
 0x161   :  { %1832 = vrot.lane.b32.xlu1 %v1831_v11, %s4923_s0  ;;  %v2409_v11 = vpack.c.b16 %v7273_v5, %v7273_v5 }
 0x163   :  { %1846 = vrot.lane.b32.xlu0 %v1845_v14, %s4923_s0  ;;  %v7274_v14 = vld [vmem:[#allocation50_spill] sm:$0xff] }
 0x165   :  { %1980 = vrot.lane.b32.xlu1 %v1979_v55, %s4921_s13  ;;  %v2391_v55 = vpack.c.b16 %v7274_v14, %v7274_v14 }
 0x167   :  { %2004 = vrot.lane.b32.xlu0 %v2003_v49, %s4921_s13  ;;  %v7275_v49 = vld [vmem:[#allocation52_spill] sm:$0xff] }
 0x169   :  { %1986 = vrot.lane.b32.xlu1 %v1985_v29, %s4922_s21  ;;  %v2415_v29 = vpack.c.b16 %v7275_v49, %v7275_v49  ;;  %v2669_v49 = vpack.c.b16 %v5974_v12, %v5974_v12 }
 0x16b   :  { %2010 = vrot.lane.b32.xlu0 %v2009_v43, %s4922_s21 }
 0x16d   :  { %1992 = vrot.lane.b32.xlu1 %v1991_v45, %s4923_s0  ;;  %v7276_v45 = vld [vmem:[#allocation55_spill] sm:$0xff] }
 0x16e   :  { %v2397_v48 = vpack.c.b16 %v7276_v45, %v7276_v45 }
 0x16f   :  { %2016 = vrot.lane.b32.xlu0 %v2015_v41, %s4923_s0 }
 0x171   :  { %2120 = vrot.lane.b32.xlu1 %v2119_v22, %s4921_s13  ;;  %v2421_v22 = vpack.c.b16 %v7277_v53, %v7277_v53 }
 0x173   :  { %2134 = vrot.lane.b32.xlu0 %v2133_v57, %s4921_s13  ;;  %v7278_v57 = vld [vmem:[#allocation54_spill] sm:$0xff] }
 0x174   :  { %v2525_v20 = vpack.c.b16 %v7278_v57, %v7278_v57  ;;  %v7286_v57 = vld [vmem:[#allocation5_spill] sm:$0xff] }
 0x175   :  { %2124 = vrot.lane.b32.xlu1 %v2123_v36, %s4922_s21 }
 0x177   :  { %2138 = vrot.lane.b32.xlu0 %v2137_v28, %s4922_s21  ;;  %v2539_v28 = vpack.c.b16 %v7279_v58, %v7279_v58 }
 0x179   :  { %2128 = vrot.lane.b32.xlu1 %v2127_v62, %s4923_s0  ;;  %v7280_v62 = vld [vmem:[#allocation58_spill] sm:$0xff] }
 0x17a   :  { %v2529_v27 = vpack.c.b16 %v7280_v62, %v7280_v62  ;;  %v7288_v62 = vld [vmem:[#allocation7_spill] sm:$0xff] }
 0x17b   :  { %2142 = vrot.lane.b32.xlu0 %v2141_v31, %s4923_s0 }
 0x17d   :  { %2250 = vrot.lane.b32.xlu1 %v2249_v33, %s4921_s13 }
 0x17f   :  { %2264 = vrot.lane.b32.xlu0 %v2263_v9, %s4921_s13  ;;  %v2533_v9 = vpack.c.b16 %v7281_v47, %v7281_v47  ;;  %v7291_v47 = vld [vmem:[#allocation10_spill] sm:$0xff] }
 0x181   :  { %2254 = vrot.lane.b32.xlu1 %v2253_v26, %s4922_s21  ;;  %v1208_v26 = vpack.c.b16 %v7282_v39, %v7282_v39 }
 0x183   :  { %2268 = vrot.lane.b32.xlu0 %v2267_v63, %s4922_s21  ;;  %v1232_v63 = vpack.c.b16 %v7283_v8, %v7283_v8  ;;  %v7295_v8 = vld [vmem:[#allocation14_spill] sm:$0xff] }
 0x185   :  { %2258 = vrot.lane.b32.xlu1 %v2257_v18, %s4923_s0  ;;  %v7284_v18 = vld [vmem:[#allocation61_spill] sm:$0xff] }
 0x186   :  { %v2547_v51 = vpack.c.b16 %v7284_v18, %v7284_v18 }
 0x187   :  { %2272 = vrot.lane.b32.xlu0 %v2271_v10, %s4923_s0 }
 0x189   :  { %2386 = vrot.lane.b32.xlu1 %v2385_v23, %s4921_s13  ;;  %v2655_v23 = vpack.c.b16 %v5970_v3, %v5970_v3 }
 0x18b   :  { %2410 = vrot.lane.b32.xlu0 %v2409_v11, %s4921_s13  ;;  %v1280_v11 = vpack.c.b16 %v5965_v19, %v5965_v19  ;;  %v2659_v19 = vpack.c.b16 %v5977_v42, %v5977_v42 }
 0x18d   :  { %2392 = vrot.lane.b32.xlu1 %v2391_v55, %s4922_s21 }
 0x18f   :  { %v1261_v43 = vpop.permute.xlu1 %1260  ;;  %2416 = vrot.lane.b32.xlu0 %v2415_v29, %s4922_s21 }
 0x191   :  { %v1213_v41 = vpop.permute.xlu0 %1212  ;;  %2398 = vrot.lane.b32.xlu1 %v2397_v48, %s4923_s0  ;;  %v7285_v48 = vld [vmem:[#allocation51_spill] sm:$0xff] }
 0x192   :  { %v1301_v56 = vsel %vm1298_vm7, %v1208_v26, %v1213_v41  ;;  %v1256_v3 = vpack.c.b16 %v7285_v48, %v7285_v48  ;;  %v7294_v26 = vld [vmem:[#allocation13_spill] sm:$0xff]  ;;  %v1614_v48 = vpack.c.b16 %v5984_v54, %v5984_v54 }
 0x193   :  { %v1267_v35 = vpop.permute.xlu1 %1266  ;;  %2422 = vrot.lane.b32.xlu0 %v2421_v22, %s4923_s0 }
 0x194   :  { %v1318_v22 = vsel %vm1298_vm7, %v1256_v3, %v1261_v43 }
 0x195   :  { %v1225_v36 = vpop.permute.xlu0 %1224  ;;  %2526 = vrot.lane.b32.xlu1 %v2525_v20, %s4921_s13  ;;  %v1320_v58 = vsel %vm368_vm0, %v1318_v22, %v1267_v35  ;;  %v7289_v35 = vld [vmem:[#allocation8_spill] sm:$0xff] }
 0x197   :  { %v1219_v30 = vpop.permute.xlu1 %1218  ;;  %2540 = vrot.lane.b32.xlu0 %v2539_v28, %s4921_s13 }
 0x198   :  { %v1303_v5 = vsel %vm368_vm0, %v1301_v56, %v1219_v30  ;;  %v7287_v30 = vld [vmem:[#allocation6_spill] sm:$0xff] }
 0x199   :  { %v1237_v31 = vpop.permute.xlu0 %1236  ;;  %2530 = vrot.lane.b32.xlu1 %v2529_v27, %s4922_s21  ;;  %v1306_v41 = vsel %vm1304_vm8, %v1303_v5, %v1225_v36  ;;  %v2673_v36 = vpack.c.b16 %v5988_v52, %v5988_v52  ;;  %v2663_v52 = vpack.c.b16 %v5995_v40, %v5995_v40  ;;  %v7293_v40 = vld [vmem:[#allocation12_spill] sm:$0xff]  ;;  %v7299_v56 = vld [vmem:[#allocation18_spill] sm:$0xff] }
 0x19a   :  { %v1310_v10 = vsel %vm1298_vm7, %v1232_v63, %v1237_v31  ;;  %v2677_v31 = vpack.c.b16 %v6004_v16, %v6004_v16  ;;  %v7296_v16 = vld [vmem:[#allocation15_spill] sm:$0xff] }
 0x19b   :  { %v1285_v33 = vpop.permute.xlu1 %1284  ;;  %2544 = vrot.lane.b32.xlu0 %v2543_v34, %s4922_s21  ;;  %v7290_v34 = vld [vmem:[#allocation9_spill] sm:$0xff] }
 0x19c   :  { %v1326_v29 = vsel %vm1298_vm7, %v1280_v11, %v1285_v33  ;;  %v1628_v11 = vpack.c.b16 %v5992_v13, %v5992_v13 }
 0x19d   :  { %v1291_v59 = vpop.permute.xlu0 %1290  ;;  %2534 = vrot.lane.b32.xlu1 %v2533_v9, %s4923_s0  ;;  %v7292_v9 = vld [vmem:[#allocation11_spill] sm:$0xff] }
 0x19e   :  { %v1328_v12 = vsel %vm368_vm0, %v1326_v29, %v1291_v59  ;;  %v7297_v59 = vld [vmem:[#allocation16_spill] sm:$0xff] }
 0x19f   :  { %v1243_v60 = vpop.permute.xlu1 %1242  ;;  %2548 = vrot.lane.b32.xlu0 %v2547_v51, %s4923_s0  ;;  %v7298_v51 = vld [vmem:[#allocation17_spill] sm:$0xff] }
 0x1a0   :  { %v1312_v14 = vsel %vm368_vm0, %v1310_v10, %v1243_v60  ;;  %v7300_v60 = vld [vmem:[#allocation19_spill] sm:$0xff] }
 0x1a1   :  { %v1249_v55 = vpop.permute.xlu0 %1248  ;;  %2656 = vrot.lane.b32.xlu1 %v2655_v23, %s4921_s13  ;;  %v7301_v23 = vld [vmem:[#allocation20_spill] sm:$0xff] }
 0x1a2   :  { %v1314_v45 = vsel %vm1304_vm8, %v1312_v14, %v1249_v55  ;;  %v7302_v14 = vld [vmem:[#allocation21_spill] sm:$0xff]  ;;  %v7303_v55 = vld [vmem:[#allocation22_spill] sm:$0xff] }
 0x1a3   :  { %v1273_v53 = vpop.permute.xlu1 %1272  ;;  %1562 = vmatprep.mubr.bf16.mxu0 %v1314_v45  ;;  %2670 = vrot.lane.b32.xlu0 %v2669_v49, %s4921_s13  ;;  %v1656_v45 = vpack.c.b16 %v6009_v44, %v6009_v44 }
 0x1a4   :  { %1563 = vmatmul.mubr.bf16.vlgmr.msra.gmra.mxu0 %v1306_v41  ;;  %v6245_v42 = vsel %vm1304_vm8, %v1320_v58, %v1273_v53  ;;  %v7304_v41 = vld [vmem:[#allocation23_spill] sm:$0xff]  ;;  %v7305_v53 = vld [vmem:[#allocation24_spill] sm:$0xff] }
 0x1a5   :  { %4152 = vmatpush3.bf16.msra.mxu0 %v7286_v57  ;;  %v1297_v20 = vpop.permute.xlu0 %1296  ;;  %2660 = vrot.lane.b32.xlu1 %v2659_v19, %s4922_s21  ;;  %v7307_v57 = vld [vmem:[#allocation26_spill] sm:$0xff] }
 0x1a6   :  { %v6241_v28 = vsel %vm1304_vm8, %v1328_v12, %v1297_v20  ;;  %4153 = vmatprep.subr.bf16.mxu0 %v7287_v30  ;;  %v7306_v12 = vld [vmem:[#allocation25_spill] sm:$0xff]  ;;  %v7308_v30 = vld [vmem:[#allocation27_spill] sm:$0xff] }
 0x1a7   :  { %v1618_v43 = vpop.permute.xlu1 %1617  ;;  %1602 = vmatprep.mubr.bf16.mxu1 %v6241_v28  ;;  %2674 = vrot.lane.b32.xlu0 %v2673_v36, %s4922_s21 }
 0x1a8   :  { %1603 = vmatmul.mubr.bf16.vlgmr.msra.gmra.mxu1 %v6245_v42  ;;  %v1671_v44 = vsel %vm1298_vm7, %v1614_v48, %v1618_v43  ;;  %v1642_v43 = vpack.c.b16 %v6014_v6, %v6014_v6  ;;  %v7314_v6 = vld [vmem:[#allocation33_spill] sm:$0xff]  ;;  %v6375_v48 = vld [vmem:[%s7149_s3 + $0xb0] sm:$0xff]  }
 0x1a9   :  { %4154 = vmatpush3.bf16.msra.mxu0 %v7288_v62  ;;  %4174 = vmatpush3.bf16.msra.mxu1 %v7289_v35  ;;  %v1632_v27 = vpop.permute.xlu0 %1631 }
 0x1aa   :  { %2664 = vrot.lane.b32.xlu1 %v2663_v52, %s4923_s0  ;;  %4155 = vmatprep.subr.bf16.mxu0 %v7290_v34  ;;  %v1678_v29 = vsel %vm1298_vm7, %v1628_v11, %v1632_v27  ;;  %v7309_v52 = vld [vmem:[#allocation28_spill] sm:$0xff]  ;;  %v7310_v27 = vld [vmem:[#allocation29_spill] sm:$0xff]  ;;  %v6345_v11 = vld [vmem:[%s7149_s3 + $0x30] sm:$0xff]  }
 0x1ab   :  { %v1622_v33 = vpop.permute.xlu1 %1621  ;;  %4175 = vmatprep.subr.bf16.mxu1 %v7291_v47  ;;  %2678 = vrot.lane.b32.xlu0 %v2677_v31, %s4923_s0 }
 0x1ac   :  { %v1673_v54 = vsel %vm368_vm0, %v1671_v44, %v1622_v33  ;;  %v7311_v33 = vld [vmem:[#allocation30_spill] sm:$0xff] }
 0x1ad   :  { %4156 = vmatpush3.bf16.msra.mxu0 %v7292_v9  ;;  %4176 = vmatpush3.bf16.msra.mxu1 %v7293_v40  ;;  %v1626_v39 = vpop.permute.xlu0 %1625  ;;  %v7312_v9 = vld [vmem:[#allocation31_spill] sm:$0xff]  ;;  %v7313_v40 = vld [vmem:[#allocation32_spill] sm:$0xff]  ;;  %v6389_v44 = vld [vmem:[%s7149_s3 + $0xe8] sm:$0xff]  }
 0x1ae   :  { %4157 = vmatprep.subr.bf16.mxu0 %v7294_v26  ;;  %4177 = vmatprep.subr.bf16.mxu1 %v7295_v8  ;;  %v1675_v31 = vsel %vm1304_vm8, %v1673_v54, %v1626_v39 }
 0x1af   :  { %v1660_v63 = vpop.permute.xlu1 %1659  ;;  %v1701_v8 = vrot.slane %v1675_v31, 1 }
 0x1b0   :  { %v1692_v19 = vsel %vm1298_vm7, %v1656_v45, %v1660_v63  ;;  %v6369_v45 = vld [vmem:[%s7149_s3 + $0x28] sm:$0xff]  }
 0x1b1   :  { %4158 = vmatpush3.bf16.msra.mxu0 %v7296_v16  ;;  %4178 = vmatpush3.bf16.msra.mxu1 %v7297_v59  ;;  %v1664_v18 = vpop.permute.xlu0 %1663  ;;  %v6315_v59 = vld [vmem:[%s7149_s3 + $0x78] sm:$0xff]  }
 0x1b2   :  { %4159 = vmatprep.subr.bf16.mxu0 %v7298_v51  ;;  %4179 = vmatprep.subr.bf16.mxu1 %v7299_v56  ;;  %v1694_v58 = vsel %vm368_vm0, %v1692_v19, %v1664_v18  ;;  %v7315_v18 = vld [vmem:[#allocation34_spill] sm:$0xff]  ;;  %v6322_v51 = vld [vmem:[%s7149_s3 + $0x38] sm:$0xff]  }
 0x1b3   :  { %v1646_v10 = vpop.permute.xlu1 %1645 }
 0x1b4   :  { %v1685_v47 = vsel %vm1298_vm7, %v1642_v43, %v1646_v10  ;;  %v6413_v43 = vld [vmem:[%s7149_s3 + $0x58] sm:$0xff]  }
 0x1b5   :  { %4160 = vmatpush3.bf16.msra.mxu0 %v7300_v60  ;;  %4180 = vmatpush3.bf16.msra.mxu1 %v7301_v23  ;;  %v1636_v5 = vpop.permute.xlu0 %1635  ;;  %v6331_v60 = vld [vmem:[%s7149_s3 + $0x70] sm:$0xff]   ;;  %v6337_v23 = vld [vmem:[%s7149_s3 + $0xf8] sm:$0xff]  }
 0x1b6   :  { %4161 = vmatprep.subr.bf16.mxu0 %v7302_v14  ;;  %4181 = vmatprep.subr.bf16.mxu1 %v7303_v55  ;;  %v1680_v3 = vsel %vm368_vm0, %v1678_v29, %v1636_v5  ;;  %v6351_v14 = vld [vmem:[%s7149_s3 + $0xb8] sm:$0xff]   ;;  %v6363_v29 = vld [vmem:[%s7149_s3 + $0xf0] sm:$0xff]  }
 0x1b7   :  { %v1650_v49 = vpop.permute.xlu1 %1649 }
 0x1b8   :  { %v1687_v63 = vsel %vm368_vm0, %v1685_v47, %v1650_v49  ;;  %v6357_v49 = vld [vmem:[%s7149_s3 + $0x68] sm:$0xff]   ;;  %v6419_v47 = vld [vmem:[%s7149_s3 + $0xe0] sm:$0xff]  }
 0x1b9   :  { %4162 = vmatpush3.bf16.msra.mxu0 %v7304_v41  ;;  %4182 = vmatpush3.bf16.msra.mxu1 %v7305_v53  ;;  %v1640_v13 = vpop.permute.xlu0 %1639 }
 0x1ba   :  { %v1682_v22 = vsel %vm1304_vm8, %v1680_v3, %v1640_v13  ;;  %4163 = vmatprep.subr.bf16.mxu0 %v7306_v12  ;;  %4183 = vmatprep.subr.bf16.mxu1 %v7307_v57  ;;  %v1807_v13 = vpack.c.b16 %v6022_v38, %v6022_v38  ;;  %v1835_v38 = vpack.c.b16 %v6027_v61, %v6027_v61 }
 0x1bb   :  { %v1702_v20 = vrot.slane %v1682_v22, 1  ;;  %v1654_v36 = vpop.permute.xlu1 %1653  ;;  %v6383_v22 = vld [vmem:[%s7149_s3 + $0x60] sm:$0xff]  }
 0x1bc   :  { %v6310_v39 = vsel %vm1304_vm8, %v1687_v63, %v1654_v36  ;;  %v6399_v36 = vld [vmem:[%s7149_s3 + $0x20] sm:$0xff]  }
 0x1bd   :  { %4164 = vmatpush3.bf16.msra.mxu0 %v7308_v30  ;;  %4184 = vmatpush3.bf16.msra.mxu1 %v7309_v52  ;;  %v1668_v62 = vpop.permute.xlu0 %1667  ;;  %v1703_v10 = vrot.slane %v6310_v39, 1 }
 0x1be   :  { %v6292_v35 = vsel %vm1304_vm8, %v1694_v58, %v1668_v62  ;;  %1741 = vmatprep.mubr.bf16.mxu0 %v1702_v20  ;;  %4165 = vmatprep.subr.bf16.mxu0 %v7310_v27  ;;  %v6405_v58 = vld [vmem:[%s7149_s3 + $0xa8] sm:$0xff]  }
 0x1bf   :  { %v1704_v34 = vrot.slane %v6292_v35, 1  ;;  %4185 = vmatprep.subr.bf16.mxu1 %v7311_v33  ;;  %v6304_v16 = vpop.permute.xlu1 %1796 }
 0x1c1   :  { %4166 = vmatpush3.bf16.msra.mxu0 %v7312_v9  ;;  %4186 = vmatpush3.bf16.msra.mxu1 %v7313_v40  ;;  %v1811_v26 = vpop.permute.xlu0 %1810 }
 0x1c2   :  { %1781 = vmatprep.mubr.bf16.mxu1 %v1704_v34  ;;  %4187 = vmatprep.subr.bf16.mxu1 %v7314_v6  ;;  %v1857_v20 = vsel %vm1298_vm7, %v1807_v13, %v1811_v26  ;;  %v6432_v13 = vld [vmem:[%s7149_s3 + $0xa0] sm:$0xff]  }
 0x1c3   :  { %4195 = vmatprep.subr.bf16.mxu0 %v6315_v59  ;;  %v1801_v5 = vpop.permute.xlu1 %1800 }
 0x1c4   :  { %1742 = vmatmul.mubr.bf16.vlgmr.msra.gmra.mxu0 %v1701_v8 }
 0x1c5   :  { %4188 = vmatpush3.bf16.msra.mxu1 %v7315_v18  ;;  %4196 = vmatpush3.bf16.msra.mxu0 %v6322_v51  ;;  %v6325_v56 = vpop.permute.xlu0 %1804 }
 0x1c6   :  { %4197 = vmatprep.subr.bf16.mxu0 %v6331_v60  ;;  %4217 = vmatprep.subr.bf16.mxu1 %v6337_v23 }
 0x1c7   :  { %v1839_v19 = vpop.permute.xlu1 %1838 }
 0x1c8   :  { %1782 = vmatmul.mubr.bf16.vlgmr.msra.gmra.mxu1 %v1703_v10  ;;  %v1871_v31 = vsel %vm1298_vm7, %v1835_v38, %v1839_v19 }
 0x1c9   :  { %4198 = vmatpush3.bf16.msra.mxu0 %v6345_v11  ;;  %4218 = vmatpush3.bf16.msra.mxu1 %v6351_v14  ;;  %v1843_v55 = vpop.permute.xlu0 %1842 }
 0x1ca   :  { %4199 = vmatprep.subr.bf16.mxu0 %v6357_v49  ;;  %4219 = vmatprep.subr.bf16.mxu1 %v6363_v29  ;;  %v1873_v63 = vsel %vm368_vm0, %v1871_v31, %v1843_v55  ;;  %v6441_v55 = vld [vmem:[%s7149_s3 + $0x50] sm:$0xff]  }
 0x1cb   :  { %v1825_v8 = vpop.permute.xlu1 %1824 }
 0x1cd   :  { %4200 = vmatpush3.bf16.msra.mxu0 %v6369_v45  ;;  %4220 = vmatpush3.bf16.msra.mxu1 %v6375_v48  ;;  %v1815_v3 = vpop.permute.xlu0 %1814 }
 0x1ce   :  { %4201 = vmatprep.subr.bf16.mxu0 %v6383_v22  ;;  %4221 = vmatprep.subr.bf16.mxu1 %v6389_v44  ;;  %v1859_v54 = vsel %vm368_vm0, %v1857_v20, %v1815_v3  ;;  %v6426_v3 = vld [vmem:[%s7149_s3 + $0x18] sm:$0xff]  }
 0x1cf   :  { %v1829_v31 = vpop.permute.xlu1 %1828 }
 0x1d1   :  { %4202 = vmatpush3.bf16.msra.mxu0 %v6399_v36  ;;  %4222 = vmatpush3.bf16.msra.mxu1 %v6405_v58  ;;  %v1819_v62 = vpop.permute.xlu0 %1818 }
 0x1d2   :  { %v1861_v61 = vsel %vm1304_vm8, %v1859_v54, %v1819_v62  ;;  %4203 = vmatprep.subr.bf16.mxu0 %v6413_v43  ;;  %4223 = vmatprep.subr.bf16.mxu1 %v6419_v47  ;;  %v6448_v54 = vld [vmem:[%s7149_s3 + $0xd8] sm:$0xff]   ;;  %v1793_v62 = vpack.c.b16 %v6018_v1, %v6018_v1 }
 0x1d3   :  { %v1881_v26 = vrot.slane %v1861_v61, 2 }
 0x1d5   :  { %4204 = vmatpush3.bf16.msra.mxu0 %v6426_v3  ;;  %4224 = vmatpush3.bf16.msra.mxu1 %v6432_v13  ;;  %v1847_v19 = vpop.permute.xlu0 %1846 }
 0x1d6   :  { %v6436_v20 = vsel %vm1304_vm8, %v1873_v63, %v1847_v19  ;;  %1920 = vmatprep.mubr.bf16.mxu0 %v1881_v26  ;;  %4205 = vmatprep.subr.bf16.mxu0 %v6441_v55  ;;  %v1850_v26 = vsel %vm1298_vm7, %v1793_v62, %v6304_v16  ;;  %v6526_v19 = vld [vmem:[%s7149_s3 + $0x48] sm:$0xff]   ;;  %v6532_v62 = vld [vmem:[%s7149_s3 + $0xd0] sm:$0xff]  }
 0x1d7   :  { %v1883_v38 = vrot.slane %v6436_v20, 2  ;;  %4225 = vmatprep.subr.bf16.mxu1 %v6448_v54  ;;  %v1852_v63 = vsel %vm368_vm0, %v1850_v26, %v1801_v5  ;;  %v6514_v5 = vld [vmem:[%s7149_s3 + $0x10] sm:$0xff]  }
 0x1d8   :  { %v1854_v1 = vsel %vm1304_vm8, %v1852_v63, %v6325_v56  ;;  %v6544_v26 = vld [vmem:[%s7149_s3 + $0x90] sm:$0xff]  }
 0x1d9   :  { %4206 = vmatpush3.bf16.msra.mxu0 %v7304_v41  ;;  %4226 = vmatpush3.bf16.msra.mxu1 %v7305_v53  ;;  %v2005_v61 = vpop.permute.xlu0 %2004  ;;  %v1821_v41 = vpack.c.b16 %v6032_v24, %v6032_v24  ;;  %v1833_v53 = vpop.permute.xlu1 %1832  ;;  %v2000_v24 = vpack.c.b16 %v6059_v4, %v6059_v4 }
 0x1da   :  { %1960 = vmatprep.mubr.bf16.mxu1 %v1883_v38  ;;  %4207 = vmatprep.subr.bf16.mxu0 %v7306_v12 }
 0x1db   :  { %4227 = vmatprep.subr.bf16.mxu1 %v7307_v57  ;;  %v1864_v57 = vsel %vm1298_vm7, %v1821_v41, %v1825_v8  ;;  %v6520_v8 = vld [vmem:[%s7149_s3 + $0x98] sm:$0xff]   ;;  %v6556_v41 = vld [vmem:[%s7149_s3 + $0xc8] sm:$0xff]  }
 0x1dd   :  { %4208 = vmatpush3.bf16.msra.mxu0 %v7308_v30  ;;  %4228 = vmatpush3.bf16.msra.mxu1 %v7309_v52  ;;  %v2011_v12 = vpop.permute.xlu0 %2010  ;;  %v1880_v30 = vrot.slane %v1854_v1, 2  ;;  %v1866_v52 = vsel %vm368_vm0, %v1864_v57, %v1829_v31  ;;  %v1981_v56 = vpop.permute.xlu1 %1980  ;;  %v6550_v1 = vld [vmem:[%s7149_s3 + $0x40] sm:$0xff]   ;;  %v6570_v57 = vld [vmem:[%s7149_s3 + $0x88] sm:$0xff]  }
 0x1de   :  { %4209 = vmatprep.subr.bf16.mxu0 %v7310_v27  ;;  %4229 = vmatprep.subr.bf16.mxu1 %v7311_v33  ;;  %v6477_v27 = vsel %vm1304_vm8, %v1866_v52, %v1833_v53  ;;  %v2131_v53 = vpack.c.b16 %v6063_v15, %v6063_v15  ;;  %v1976_v15 = vpack.c.b16 %v6043_v32, %v6043_v32 }
 0x1df   :  { %v1882_v33 = vrot.slane %v6477_v27, 2 }
 0x1e1   :  { %4210 = vmatpush3.bf16.msra.mxu0 %v7312_v9  ;;  %4230 = vmatpush3.bf16.msra.mxu1 %v7313_v40  ;;  %v2017_v9 = vpop.permute.xlu0 %2016  ;;  %v2028_v40 = vsel %vm1298_vm7, %v2000_v24, %v2005_v61  ;;  %v6538_v61 = vld [vmem:[%s7149_s3 + $0x8] sm:$0xff]   ;;  %v1987_v63 = vpop.permute.xlu1 %1986 }
 0x1e2   :  { %4231 = vmatprep.subr.bf16.mxu1 %v7314_v6  ;;  %4239 = vmatprep.subr.bf16.mxu0 %v6315_v59  ;;  %v2030_v16 = vsel %vm368_vm0, %v2028_v40, %v2011_v12  ;;  %v6564_v12 = vld [vmem:[%s7149_s3] sm:$0xff]   ;;  %v2020_v40 = vsel %vm1298_vm7, %v1976_v15, %v1981_v56  ;;  %v2117_v56 = vpack.c.b16 %v6047_v7, %v6047_v7 }
 0x1e3   :  { %v6494_v4 = vsel %vm1304_vm8, %v2030_v16, %v2017_v9 }
 0x1e4   :  { %1921 = vmatmul.mubr.bf16.vlgmr.msra.gmra.mxu0 %v1880_v30 }
 0x1e5   :  { %4232 = vmatpush3.bf16.msra.mxu1 %v7315_v18  ;;  %4240 = vmatpush3.bf16.msra.mxu0 %v6322_v51  ;;  %v1993_v24 = vpop.permute.xlu1 %1992 }
 0x1e6   :  { %2066 = vmatprep.mubr.bf16.mxu0 %v6241_v28  ;;  %4241 = vmatprep.subr.bf16.mxu0 %v6331_v60  ;;  %v2135_v28 = vpop.permute.xlu0 %2134 }
 0x1e7   :  { %4261 = vmatprep.subr.bf16.mxu1 %v6337_v23  ;;  %v2153_v52 = vsel %vm1298_vm7, %v2131_v53, %v2135_v28  ;;  %v2261_v53 = vpack.c.b16 %v6068_v25, %v6068_v25 }
 0x1e8   :  { %1961 = vmatmul.mubr.bf16.vlgmr.msra.gmra.mxu1 %v1882_v33 }
 0x1e9   :  { %4242 = vmatpush3.bf16.msra.mxu0 %v6345_v11  ;;  %4262 = vmatpush3.bf16.msra.mxu1 %v6351_v14  ;;  %v2121_v35 = vpop.permute.xlu1 %2120 }
 0x1ea   :  { %2106 = vmatprep.mubr.bf16.mxu1 %v6494_v4  ;;  %4243 = vmatprep.subr.bf16.mxu0 %v6357_v49  ;;  %v2139_v31 = vpop.permute.xlu0 %2138 }
 0x1eb   :  { %4263 = vmatprep.subr.bf16.mxu1 %v6363_v29  ;;  %v2155_v9 = vsel %vm368_vm0, %v2153_v52, %v2139_v31  ;;  %v6633_v52 = vld [vmem:[%s7149_s3 + $0xc0] sm:$0xff]  }
 0x1ed   :  { %4244 = vmatpush3.bf16.msra.mxu0 %v6369_v45  ;;  %4264 = vmatpush3.bf16.msra.mxu1 %v6375_v48 }
 0x1ee   :  { %4245 = vmatprep.subr.bf16.mxu0 %v6383_v22  ;;  %4265 = vmatprep.subr.bf16.mxu1 %v6389_v44  ;;  %v2143_v30 = vpop.permute.xlu0 %2142 }
 0x1ef   :  { %v6582_v16 = vsel %vm1304_vm8, %v2155_v9, %v2143_v30 }
 0x1f1   :  { %4246 = vmatpush3.bf16.msra.mxu0 %v6399_v36  ;;  %4266 = vmatpush3.bf16.msra.mxu1 %v6405_v58 }
 0x1f2   :  { %4247 = vmatprep.subr.bf16.mxu0 %v6413_v43  ;;  %4267 = vmatprep.subr.bf16.mxu1 %v6419_v47 }
 0x1f5   :  { %4248 = vmatpush3.bf16.msra.mxu0 %v6426_v3  ;;  %4268 = vmatpush3.bf16.msra.mxu1 %v6432_v13 }
 0x1f6   :  { %4249 = vmatprep.subr.bf16.mxu0 %v6441_v55  ;;  %4269 = vmatprep.subr.bf16.mxu1 %v6448_v54 }
 0x1f9   :  { %4250 = vmatpush3.bf16.msra.mxu0 %v6514_v5  ;;  %4270 = vmatpush3.bf16.msra.mxu1 %v6520_v8 }
 0x1fa   :  { %4251 = vmatprep.subr.bf16.mxu0 %v6526_v19  ;;  %4271 = vmatprep.subr.bf16.mxu1 %v6532_v62 }
 0x1fd   :  { %4252 = vmatpush3.bf16.msra.mxu0 %v6538_v61  ;;  %4272 = vmatpush3.bf16.msra.mxu1 %v6544_v26 }
 0x1fe   :  { %4253 = vmatprep.subr.bf16.mxu0 %v6550_v1  ;;  %4273 = vmatprep.subr.bf16.mxu1 %v6556_v41 }
 0x201   :  { %4254 = vmatpush3.bf16.msra.mxu0 %v6564_v12  ;;  %4274 = vmatpush3.bf16.msra.mxu1 %v6570_v57 }
 0x202   :  { %4275 = vmatprep.subr.bf16.mxu1 %v7314_v6  ;;  %4283 = vmatprep.subr.bf16.mxu0 %v6315_v59  ;;  %v2022_v6 = vsel %vm368_vm0, %v2020_v40, %v1987_v63  ;;  %v2146_v63 = vsel %vm1298_vm7, %v2117_v56, %v2121_v35  ;;  %v6650_v40 = vld [vmem:[%s7149_s3 + $0x80] sm:$0xff]   ;;  %v2247_v35 = vpack.c.b16 %v6051_v21, %v6051_v21  ;;  %s3792_s3 = sshll.u32 %s4927_s26, 4  ;;  %s3793_s3 = int_to_ptr.vmem [resolvable:$true] %s3792_s3 }
 0x203   :  { %v6591_v32 = vsel %vm1304_vm8, %v2022_v6, %v1993_v24  ;;  %v2406_v21 = vpack.c.b16 %v6079_v17, %v6079_v17  ;;  %s4899_s27 = scalar_lea.vmem %s3793_s3, 32  ;;  %p4904_p1 = scmp.lt.s32.totalorder %s3793_s3, %s3793_s3 }
 0x204   :  { %2067 = vmatmul.mubr.bf16.vlgmr.msra.gmra.mxu0 %v6245_v42  ;;  %v2161_v42 = vrot.slane %v6582_v16, 1  ;;  %p4900_p0 = scmp.ne.s32.totalorder %s3793_s3, %s4899_s27  ;;  %p4905_p2 = scmp.lt.s32.totalorder %s4899_s27, %s4899_s27 }
 0x205   :  { %4276 = vmatpush3.bf16.msra.mxu1 %v7315_v18  ;;  %4284 = vmatpush3.bf16.msra.mxu0 %v6322_v51  ;;  %v2125_v18 = vpop.permute.xlu1 %2124 }
 0x206   :  { %2196 = vmatprep.mubr.bf16.mxu0 %v1704_v34  ;;  %4285 = vmatprep.subr.bf16.mxu0 %v6331_v60  ;;  %v2265_v34 = vpop.permute.xlu0 %2264  ;;  %v2148_v30 = vsel %vm368_vm0, %v2146_v63, %v2125_v18  ;;  %p4906_p3 = por %p4905_p2, %p4904_p1 }
 0x207   :  { %4305 = vmatprep.subr.bf16.mxu1 %v6337_v23  ;;  %v2283_v25 = vsel %vm1298_vm7, %v2261_v53, %v2265_v34 }
 0x208   :  { %2107 = vmatmul.mubr.bf16.vlgmr.msra.gmra.mxu1 %v6591_v32  ;;  %p4907_p4 = pnand %p4906_p3, %p4900_p0 }
 0x209   :  { %4286 = vmatpush3.bf16.msra.mxu0 %v6345_v11  ;;  %4306 = vmatpush3.bf16.msra.mxu1 %v6351_v14  ;;  %v2129_v31 = vpop.permute.xlu1 %2128 }
 0x20a   :  { %2236 = vmatprep.mubr.bf16.mxu1 %v2161_v42  ;;  %4287 = vmatprep.subr.bf16.mxu0 %v6357_v49  ;;  %v2269_v28 = vpop.permute.xlu0 %2268  ;;  %v6638_v7 = vsel %vm1304_vm8, %v2148_v30, %v2129_v31 }
 0x20b   :  { %4307 = vmatprep.subr.bf16.mxu1 %v6363_v29  ;;  %v2285_v24 = vsel %vm368_vm0, %v2283_v25, %v2269_v28  ;;  %v2160_v6 = vrot.slane %v6638_v7, 1 }
 0x20d   :  { %4288 = vmatpush3.bf16.msra.mxu0 %v6369_v45  ;;  %4308 = vmatpush3.bf16.msra.mxu1 %v6375_v48 }
 0x20e   :  { %4289 = vmatprep.subr.bf16.mxu0 %v6383_v22  ;;  %4309 = vmatprep.subr.bf16.mxu1 %v6389_v44  ;;  %v2273_v15 = vpop.permute.xlu0 %2272 }
 0x20f   :  { %v6645_v9 = vsel %vm1304_vm8, %v2285_v24, %v2273_v15  ;;  %v2537_v24 = vpack.c.b16 %v6088_v46, %v6088_v46 }
 0x210   :  { %v2291_v39 = vrot.slane %v6645_v9, 2 }
 0x211   :  { %4290 = vmatpush3.bf16.msra.mxu0 %v6399_v36  ;;  %4310 = vmatpush3.bf16.msra.mxu1 %v6405_v58 }
 0x212   :  { %4291 = vmatprep.subr.bf16.mxu0 %v6413_v43  ;;  %4311 = vmatprep.subr.bf16.mxu1 %v6419_v47 }
 0x215   :  { %4292 = vmatpush3.bf16.msra.mxu0 %v6426_v3  ;;  %4312 = vmatpush3.bf16.msra.mxu1 %v6432_v13 }
 0x216   :  { %4293 = vmatprep.subr.bf16.mxu0 %v6441_v55  ;;  %4313 = vmatprep.subr.bf16.mxu1 %v6448_v54 }
 0x219   :  { %4294 = vmatpush3.bf16.msra.mxu0 %v6514_v5  ;;  %4314 = vmatpush3.bf16.msra.mxu1 %v6520_v8 }
 0x21a   :  { %4295 = vmatprep.subr.bf16.mxu0 %v6526_v19  ;;  %4315 = vmatprep.subr.bf16.mxu1 %v6532_v62 }
 0x21d   :  { %4296 = vmatpush3.bf16.msra.mxu0 %v6538_v61  ;;  %4316 = vmatpush3.bf16.msra.mxu1 %v6544_v26 }
 0x21e   :  { %4297 = vmatprep.subr.bf16.mxu0 %v6550_v1  ;;  %4317 = vmatprep.subr.bf16.mxu1 %v6556_v41 }
 0x221   :  { %4298 = vmatpush3.bf16.msra.mxu0 %v6564_v12  ;;  %4318 = vmatpush3.bf16.msra.mxu1 %v6570_v57 }
 0x222   :  { %4319 = vmatprep.subr.bf16.mxu1 %v6633_v52  ;;  %4327 = vmatprep.subr.bf16.mxu0 %v6315_v59 }
 0x224   :  { %2197 = vmatmul.mubr.bf16.vlgmr.msra.gmra.mxu0 %v1703_v10  ;;  %v2251_v10 = vpop.permute.xlu1 %2250 }
 0x225   :  { %4320 = vmatpush3.bf16.msra.mxu1 %v6650_v40  ;;  %4328 = vmatpush3.bf16.msra.mxu0 %v6322_v51  ;;  %v2276_v28 = vsel %vm1298_vm7, %v2247_v35, %v2251_v10 }
 0x226   :  { %2326 = vmatprep.mubr.bf16.mxu0 %v1883_v38  ;;  %4329 = vmatprep.subr.bf16.mxu0 %v6331_v60  ;;  %v2411_v38 = vpop.permute.xlu0 %2410 }
 0x227   :  { %4349 = vmatprep.subr.bf16.mxu1 %v6337_v23  ;;  %v2434_v30 = vsel %vm1298_vm7, %v2406_v21, %v2411_v38 }
 0x228   :  { %2237 = vmatmul.mubr.bf16.vlgmr.msra.gmra.mxu1 %v2160_v6  ;;  %v2255_v20 = vpop.permute.xlu1 %2254 }
 0x229   :  { %4330 = vmatpush3.bf16.msra.mxu0 %v6345_v11  ;;  %4350 = vmatpush3.bf16.msra.mxu1 %v6351_v14  ;;  %v2278_v56 = vsel %vm368_vm0, %v2276_v28, %v2255_v20  ;;  %v2382_v20 = vpack.c.b16 %v6075_v2, %v6075_v2 }
 0x22a   :  { %2366 = vmatprep.mubr.bf16.mxu1 %v2291_v39  ;;  %4331 = vmatprep.subr.bf16.mxu0 %v6357_v49  ;;  %v2417_v18 = vpop.permute.xlu0 %2416 }
 0x22b   :  { %4351 = vmatprep.subr.bf16.mxu1 %v6363_v29  ;;  %v2436_v27 = vsel %vm368_vm0, %v2434_v30, %v2417_v18  ;;  %v6762_v30 = vld [vmem:[%s7150_s4] ss:$0 sm:$0xff] }
 0x22c   :  { %v2259_v34 = vpop.permute.xlu1 %2258 }
 0x22d   :  { %4332 = vmatpush3.bf16.msra.mxu0 %v6369_v45  ;;  %4352 = vmatpush3.bf16.msra.mxu1 %v6375_v48  ;;  %v6697_v31 = vsel %vm1304_vm8, %v2278_v56, %v2259_v34 }
 0x22e   :  { %4333 = vmatprep.subr.bf16.mxu0 %v6383_v22  ;;  %4353 = vmatprep.subr.bf16.mxu1 %v6389_v44  ;;  %v2290_v63 = vrot.slane %v6697_v31, 2  ;;  %v2423_v53 = vpop.permute.xlu0 %2422  ;;  %v4782_v31 = vld [vmem:[%s7151_s5 + $0x20] sm:$0xff]  }
 0x22f   :  { %v2438_v17 = vsel %vm1304_vm8, %v2436_v27, %v2423_v53 }
 0x231   :  { %4334 = vmatpush3.bf16.msra.mxu0 %v6399_v36  ;;  %4354 = vmatpush3.bf16.msra.mxu1 %v6405_v58 }
 0x232   :  { %4335 = vmatprep.subr.bf16.mxu0 %v6413_v43  ;;  %4355 = vmatprep.subr.bf16.mxu1 %v6419_v47 }
 0x235   :  { %4336 = vmatpush3.bf16.msra.mxu0 %v6426_v3  ;;  %4356 = vmatpush3.bf16.msra.mxu1 %v6432_v13 }
 0x236   :  { %4337 = vmatprep.subr.bf16.mxu0 %v6441_v55  ;;  %4357 = vmatprep.subr.bf16.mxu1 %v6448_v54 }
 0x239   :  { %4338 = vmatpush3.bf16.msra.mxu0 %v6514_v5  ;;  %4358 = vmatpush3.bf16.msra.mxu1 %v6520_v8 }
 0x23a   :  { %4339 = vmatprep.subr.bf16.mxu0 %v6526_v19  ;;  %4359 = vmatprep.subr.bf16.mxu1 %v6532_v62 }
 0x23d   :  { %4340 = vmatpush3.bf16.msra.mxu0 %v6538_v61  ;;  %4360 = vmatpush3.bf16.msra.mxu1 %v6544_v26 }
 0x23e   :  { %4341 = vmatprep.subr.bf16.mxu0 %v6550_v1  ;;  %4361 = vmatprep.subr.bf16.mxu1 %v6556_v41 }
 0x241   :  { %4342 = vmatpush3.bf16.msra.mxu0 %v6564_v12  ;;  %4362 = vmatpush3.bf16.msra.mxu1 %v6570_v57 }
 0x242   :  { %4363 = vmatprep.subr.bf16.mxu1 %v6633_v52  ;;  %4371 = vmatprep.subr.bf16.mxu0 %v6315_v59 }
 0x244   :  { %2327 = vmatmul.mubr.bf16.vlgmr.msra.gmra.mxu0 %v1882_v33  ;;  %v2541_v33 = vpop.permute.xlu0 %2540 }
 0x245   :  { %4364 = vmatpush3.bf16.msra.mxu1 %v6650_v40  ;;  %4372 = vmatpush3.bf16.msra.mxu0 %v6322_v51  ;;  %v2559_v38 = vsel %vm1298_vm7, %v2537_v24, %v2541_v33 }
 0x246   :  { %2472 = vmatprep.mubr.bf16.mxu0 %v6494_v4  ;;  %4373 = vmatprep.subr.bf16.mxu0 %v6331_v60  ;;  %v2387_v4 = vpop.permute.xlu1 %2386 }
 0x247   :  { %4393 = vmatprep.subr.bf16.mxu1 %v6337_v23  ;;  %v2426_v18 = vsel %vm1298_vm7, %v2382_v20, %v2387_v4 }
 0x248   :  { %2367 = vmatmul.mubr.bf16.vlgmr.msra.gmra.mxu1 %v2290_v63  ;;  %v2545_v15 = vpop.permute.xlu0 %2544 }
 0x249   :  { %4374 = vmatpush3.bf16.msra.mxu0 %v6345_v11  ;;  %4394 = vmatpush3.bf16.msra.mxu1 %v6351_v14  ;;  %v2561_v34 = vsel %vm368_vm0, %v2559_v38, %v2545_v15 }
 0x24a   :  { %2512 = vmatprep.mubr.bf16.mxu1 %v2438_v17  ;;  %4375 = vmatprep.subr.bf16.mxu0 %v6357_v49  ;;  %v2393_v25 = vpop.permute.xlu1 %2392 }
 0x24b   :  { %4395 = vmatprep.subr.bf16.mxu1 %v6363_v29  ;;  %v2428_v56 = vsel %vm368_vm0, %v2426_v18, %v2393_v25 }
 0x24c   :  { %v2549_v10 = vpop.permute.xlu0 %2548 }
 0x24d   :  { %4376 = vmatpush3.bf16.msra.mxu0 %v6369_v45  ;;  %4396 = vmatpush3.bf16.msra.mxu1 %v6375_v48  ;;  %v2563_v28 = vsel %vm1304_vm8, %v2561_v34, %v2549_v10  ;;  %v2523_v34 = vpack.c.b16 %v6083_v0, %v6083_v0 }
 0x24e   :  { %4377 = vmatprep.subr.bf16.mxu0 %v6383_v22  ;;  %4397 = vmatprep.subr.bf16.mxu1 %v6389_v44  ;;  %v2399_v35 = vpop.permute.xlu1 %2398  ;;  %v2567_v53 = vrot.slane %v2563_v28, 1  ;;  %v2667_v28 = vpack.c.b16 %v6099_v50, %v6099_v50 }
 0x24f   :  { %v2430_v21 = vsel %vm1304_vm8, %v2428_v56, %v2399_v35 }
 0x250   :  { %v2671_v20 = vpop.permute.xlu0 %2670 }
 0x251   :  { %4378 = vmatpush3.bf16.msra.mxu0 %v6399_v36  ;;  %4398 = vmatpush3.bf16.msra.mxu1 %v6405_v58  ;;  %v2689_v0 = vsel %vm1298_vm7, %v2667_v28, %v2671_v20 }
 0x252   :  { %4379 = vmatprep.subr.bf16.mxu0 %v6413_v43  ;;  %4399 = vmatprep.subr.bf16.mxu1 %v6419_v47  ;;  %v2527_v10 = vpop.permute.xlu1 %2526 }
 0x253   :  { %v2552_v18 = vsel %vm1298_vm7, %v2523_v34, %v2527_v10  ;;  %v4787_v10 = vld [vmem:[%s7151_s5 + $0x48] sm:$0xff]  }
 0x254   :  { %v2675_v35 = vpop.permute.xlu0 %2674 }
 0x255   :  { %4380 = vmatpush3.bf16.msra.mxu0 %v6426_v3  ;;  %4400 = vmatpush3.bf16.msra.mxu1 %v6432_v13 }
 0x256   :  { %4381 = vmatprep.subr.bf16.mxu0 %v6441_v55  ;;  %4401 = vmatprep.subr.bf16.mxu1 %v6448_v54  ;;  %v2531_v38 = vpop.permute.xlu1 %2530 }
 0x257   :  { %v2554_v56 = vsel %vm368_vm0, %v2552_v18, %v2531_v38  ;;  %v4788_v38 = vld [vmem:[%s7151_s5 + $0x8] sm:$0xff]  }
 0x259   :  { %4382 = vmatpush3.bf16.msra.mxu0 %v6514_v5  ;;  %4402 = vmatpush3.bf16.msra.mxu1 %v6520_v8 }
 0x25a   :  { %4383 = vmatprep.subr.bf16.mxu0 %v6526_v19  ;;  %4403 = vmatprep.subr.bf16.mxu1 %v6532_v62 }
 0x25d   :  { %4384 = vmatpush3.bf16.msra.mxu0 %v6538_v61  ;;  %4404 = vmatpush3.bf16.msra.mxu1 %v6544_v26 }
 0x25e   :  { %4385 = vmatprep.subr.bf16.mxu0 %v6550_v1  ;;  %4405 = vmatprep.subr.bf16.mxu1 %v6556_v41 }
 0x261   :  { %4386 = vmatpush3.bf16.msra.mxu0 %v6564_v12  ;;  %4406 = vmatpush3.bf16.msra.mxu1 %v6570_v57 }
 0x262   :  { %4407 = vmatprep.subr.bf16.mxu1 %v6633_v52  ;;  %4415 = vmatprep.subr.bf16.mxu0 %v6315_v59 }
 0x264   :  { %2473 = vmatmul.mubr.bf16.vlgmr.msra.gmra.mxu0 %v6591_v32  ;;  %v4123_v46 = vpop.f32.mrf.mxu0 }
 0x265   :  { %4408 = vmatpush3.bf16.msra.mxu1 %v6650_v40  ;;  %4416 = vmatpush3.bf16.msra.mxu0 %v6322_v51 }
 0x266   :  { %2602 = vmatprep.mubr.bf16.mxu0 %v2161_v42  ;;  %v4124_v2 = vpop.f32.mrf.mxu0  ;;  %4417 = vmatprep.subr.bf16.mxu0 %v6331_v60 }
 0x267   :  { %v4125_v32 = vadd.f32 %v4124_v2, %v4123_v46  ;;  %4437 = vmatprep.subr.bf16.mxu1 %v6337_v23  ;;  %v2535_v46 = vpop.permute.xlu1 %2534  ;;  %v2679_v2 = vpop.permute.xlu0 %2678 }
 0x268   :  { %2513 = vmatmul.mubr.bf16.vlgmr.msra.gmra.mxu1 %v2430_v21  ;;  %v4126_v27 = vpop.f32.mrf.mxu0  ;;  %v4145_v17 = vpop.f32.mrf.mxu1  ;;  %v2556_v21 = vsel %vm1304_vm8, %v2554_v56, %v2535_v46  ;;  %v4790_v56 = vld [vmem:[%s7151_s5] sm:$0xff]  }
 0x269   :  { %4418 = vmatpush3.bf16.msra.mxu0 %v6345_v11  ;;  %4438 = vmatpush3.bf16.msra.mxu1 %v6351_v14  ;;  %v1565_v33 = vadd.f32 %v4125_v32, %v6762_v30  ;;  %v2691_v32 = vsel %vm368_vm0, %v2689_v0, %v2675_v35  ;;  %v2566_v27 = vrot.slane %v2556_v21, 1  ;;  %v4789_v35 = vld [vmem:[%s7151_s5 + $0x40] sm:$0xff]  }
 0x26a   :  { %2642 = vmatprep.mubr.bf16.mxu1 %v2567_v53  ;;  %v4127_v16 = vpop.f32.mrf.mxu0  ;;  %v4146_v42 = vpop.f32.mrf.mxu1  ;;  %4419 = vmatprep.subr.bf16.mxu0 %v6357_v49  ;;  %v2693_v50 = vsel %vm1304_vm8, %v2691_v32, %v2679_v2 }
 0x26b   :  { %v4147_v4 = vadd.f32 %v4146_v42, %v4145_v17  ;;  %4439 = vmatprep.subr.bf16.mxu1 %v6363_v29  ;;  %v2697_v16 = vrot.slane %v2693_v50, 2 }
 0x26c   :  { %v4148_v15 = vpop.f32.mrf.mxu1 }
 0x26d   :  { %v6769_v25 = vadd.f32 %v4147_v4, %v1565_v33  ;;  %4420 = vmatpush3.bf16.msra.mxu0 %v6369_v45  ;;  %4440 = vmatpush3.bf16.msra.mxu1 %v6375_v48  ;;  %v4784_v4 = vld [vmem:[%s7151_s5 + $0x18] sm:$0xff]   ;;  %v4785_v15 = vld [vmem:[%s7151_s5 + $0x50] sm:$0xff]  }
 0x26e   :  { %v4149_v24 = vpop.f32.mrf.mxu1  ;;  %4421 = vmatprep.subr.bf16.mxu0 %v6383_v22  ;;  %4441 = vmatprep.subr.bf16.mxu1 %v6389_v44 }
 0x26f   :  { %v4786_v24 = vld [vmem:[%s7151_s5 + $0x10] sm:$0xff]  }
 0x271   :  { %4422 = vmatpush3.bf16.msra.mxu0 %v6399_v36  ;;  %4442 = vmatpush3.bf16.msra.mxu1 %v6405_v58 }
 0x272   :  { %4423 = vmatprep.subr.bf16.mxu0 %v6413_v43  ;;  %4443 = vmatprep.subr.bf16.mxu1 %v6419_v47 }
 0x275   :  { %4424 = vmatpush3.bf16.msra.mxu0 %v6426_v3  ;;  %4444 = vmatpush3.bf16.msra.mxu1 %v6432_v13 }
 0x276   :  { %4425 = vmatprep.subr.bf16.mxu0 %v6441_v55  ;;  %4445 = vmatprep.subr.bf16.mxu1 %v6448_v54 }
 0x279   :  { %4426 = vmatpush3.bf16.msra.mxu0 %v6514_v5  ;;  %4446 = vmatpush3.bf16.msra.mxu1 %v6520_v8 }
 0x27a   :  { %4427 = vmatprep.subr.bf16.mxu0 %v6526_v19  ;;  %4447 = vmatprep.subr.bf16.mxu1 %v6532_v62 }
 0x27d   :  { %4428 = vmatpush3.bf16.msra.mxu0 %v6538_v61  ;;  %4448 = vmatpush3.bf16.msra.mxu1 %v6544_v26 }
 0x27e   :  { %4429 = vmatprep.subr.bf16.mxu0 %v6550_v1  ;;  %4449 = vmatprep.subr.bf16.mxu1 %v6556_v41 }
 0x281   :  { %4430 = vmatpush3.bf16.msra.mxu0 %v6564_v12  ;;  %4450 = vmatpush3.bf16.msra.mxu1 %v6570_v57 }
 0x282   :  { %4451 = vmatprep.subr.bf16.mxu1 %v6633_v52  ;;  %4459 = vmatprep.subr.bf16.mxu0 %v6315_v59 }
 0x284   :  { %v4167_v53 = vpop.f32.mrf.mxu0  ;;  %2603 = vmatmul.mubr.bf16.vlgmr.msra.gmra.mxu0 %v2160_v6 }
 0x285   :  { %4452 = vmatpush3.bf16.msra.mxu1 %v6650_v40  ;;  %4460 = vmatpush3.bf16.msra.mxu0 %v6322_v51 }
 0x286   :  { %2732 = vmatprep.mubr.bf16.mxu0 %v2291_v39  ;;  %v4168_v59 = vpop.f32.mrf.mxu0  ;;  %4461 = vmatprep.subr.bf16.mxu0 %v6331_v60 }
 0x287   :  { %v4169_v17 = vadd.f32 %v4168_v59, %v4167_v53  ;;  %4481 = vmatprep.subr.bf16.mxu1 %v6337_v23 }
 0x288   :  { %v4170_v42 = vpop.f32.mrf.mxu0  ;;  %v4189_v7 = vpop.f32.mrf.mxu1  ;;  %2643 = vmatmul.mubr.bf16.vlgmr.msra.gmra.mxu1 %v2566_v27 }
 0x289   :  { %4462 = vmatpush3.bf16.msra.mxu0 %v6345_v11  ;;  %4482 = vmatpush3.bf16.msra.mxu1 %v6351_v14  ;;  %v1744_v9 = vadd.f32 %v4169_v17, %v6762_v30 }
 0x28a   :  { %2772 = vmatprep.mubr.bf16.mxu1 %v2697_v16  ;;  %v4171_v51 = vpop.f32.mrf.mxu0  ;;  %v4190_v6 = vpop.f32.mrf.mxu1  ;;  %4463 = vmatprep.subr.bf16.mxu0 %v6357_v49  ;;  %v4924_v16 = vmov 0.0  }
 0x28b   :  { %v4191_v39 = vadd.f32 %v4190_v6, %v4189_v7  ;;  %4483 = vmatprep.subr.bf16.mxu1 %v6363_v29  ;;  %v2657_v49 = vpop.permute.xlu1 %2656 }
 0x28c   :  { %v4192_v60 = vpop.f32.mrf.mxu1 }
 0x28d   :  { %v1784_v23 = vadd.f32 %v4191_v39, %v1744_v9  ;;  %4464 = vmatpush3.bf16.msra.mxu0 %v6369_v45  ;;  %4484 = vmatpush3.bf16.msra.mxu1 %v6375_v48  ;;  %v2653_v45 = vpack.c.b16 %v6095_v37, %v6095_v37 }
 0x28e   :  { %v4193_v33 = vpop.f32.mrf.mxu1  ;;  %4465 = vmatprep.subr.bf16.mxu0 %v6383_v22  ;;  %4485 = vmatprep.subr.bf16.mxu1 %v6389_v44 }
 0x28f   :  { %v1789_v11 = vmax.f32 %v1784_v23, 0.0  ;;  %v2661_v29 = vpop.permute.xlu1 %2660  ;;  %v2682_v22 = vsel %vm1298_vm7, %v2653_v45, %v2657_v49 }
 0x290   :  { %v2684_v44 = vsel %vm368_vm0, %v2682_v22, %v2661_v29  ;;  %v4796_v22 = vld [vmem:[%s7151_s5 + $0xb8] sm:$0xff]  }
 0x291   :  { %v1790_v14 = vpack.c.bf16 %v1789_v11, %v1789_v11  ;;  %4466 = vmatpush3.bf16.msra.mxu0 %v6399_v36  ;;  %4486 = vmatpush3.bf16.msra.mxu1 %v6405_v58 }
 0x292   :  { %4467 = vmatprep.subr.bf16.mxu0 %v6413_v43  ;;  %4487 = vmatprep.subr.bf16.mxu1 %v6419_v47 }
 0x293   :  { %2856 = vrot.lane.b32.xlu1 %v1790_v14, %s4922_s21  ;;  %v2665_v48 = vpop.permute.xlu1 %2664 }
 0x294   :  { %v2686_v36 = vsel %vm1304_vm8, %v2684_v44, %v2665_v48  ;;  %v4795_v48 = vld [vmem:[%s7151_s5 + $0xf8] sm:$0xff]   ;;  %v4797_v44 = vld [vmem:[%s7151_s5 + $0xf0] sm:$0xff]  }
 0x295   :  { %4468 = vmatpush3.bf16.msra.mxu0 %v6426_v3  ;;  %4488 = vmatpush3.bf16.msra.mxu1 %v6432_v13  ;;  %v2696_v37 = vrot.slane %v2686_v36, 2 }
 0x296   :  { %4469 = vmatprep.subr.bf16.mxu0 %v6441_v55  ;;  %4489 = vmatprep.subr.bf16.mxu1 %v6448_v54  ;;  %v4775_v55 = vld [vmem:[%s7151_s5 + $0x78] sm:$0xff]  }
 0x297   :  { %v4776_v54 = vld [vmem:[%s7151_s5 + $0x38] sm:$0xff]  }
 0x299   :  { %4470 = vmatpush3.bf16.msra.mxu0 %v6514_v5  ;;  %4490 = vmatpush3.bf16.msra.mxu1 %v6520_v8 }
 0x29a   :  { %4471 = vmatprep.subr.bf16.mxu0 %v6526_v19  ;;  %4491 = vmatprep.subr.bf16.mxu1 %v6532_v62 }
 0x29d   :  { %4472 = vmatpush3.bf16.msra.mxu0 %v6538_v61  ;;  %4492 = vmatpush3.bf16.msra.mxu1 %v6544_v26 }
 0x29e   :  { %4473 = vmatprep.subr.bf16.mxu0 %v6550_v1  ;;  %4493 = vmatprep.subr.bf16.mxu1 %v6556_v41  ;;  %v4777_v41 = vld [vmem:[%s7151_s5 + $0x70] sm:$0xff]  }
 0x2a1   :  { %4474 = vmatpush3.bf16.msra.mxu0 %v6564_v12  ;;  %4494 = vmatpush3.bf16.msra.mxu1 %v6570_v57  ;;  %v4778_v12 = vld [vmem:[%s7151_s5 + $0x30] sm:$0xff]   ;;  %v4779_v57 = vld [vmem:[%s7151_s5 + $0x68] sm:$0xff]  }
 0x2a2   :  { %4495 = vmatprep.subr.bf16.mxu1 %v6633_v52  ;;  %4503 = vmatprep.subr.bf16.mxu0 %v4775_v55  ;;  %v4780_v52 = vld [vmem:[%s7151_s5 + $0x28] sm:$0xff]  }
 0x2a4   :  { %v4211_v58 = vpop.f32.mrf.mxu0  ;;  %2733 = vmatmul.mubr.bf16.vlgmr.msra.gmra.mxu0 %v2290_v63  ;;  %v4783_v63 = vld [vmem:[%s7151_s5 + $0x58] sm:$0xff]  }
 0x2a5   :  { %4496 = vmatpush3.bf16.msra.mxu1 %v6650_v40  ;;  %4504 = vmatpush3.bf16.msra.mxu0 %v4776_v54  ;;  %v4781_v40 = vld [vmem:[%s7151_s5 + $0x60] sm:$0xff]  }
 0x2a6   :  { %v4212_v43 = vpop.f32.mrf.mxu0  ;;  %4505 = vmatprep.subr.bf16.mxu0 %v4777_v41  ;;  %4525 = vmatprep.subr.bf16.mxu1 %v4795_v48  ;;  %v4793_v48 = vld [vmem:[%s7151_s5 + $0x108] sm:$0xff]  }
 0x2a7   :  { %v4213_v47 = vadd.f32 %v4212_v43, %v4211_v58  ;;  %v4798_v43 = vld [vmem:[%s7151_s5 + $0xb0] sm:$0xff]  }
 0x2a8   :  { %v4214_v3 = vpop.f32.mrf.mxu0  ;;  %v4233_v13 = vpop.f32.mrf.mxu1  ;;  %2773 = vmatmul.mubr.bf16.vlgmr.msra.gmra.mxu1 %v2696_v37 }
 0x2a9   :  { %v1923_v19 = vadd.f32 %v4213_v47, %v6762_v30  ;;  %4506 = vmatpush3.bf16.msra.mxu0 %v4778_v12  ;;  %4526 = vmatpush3.bf16.msra.mxu1 %v4796_v22  ;;  %v4802_v12 = vld [vmem:[%s7151_s5 + $0xa0] sm:$0xff]  }
 0x2aa   :  { %v4215_v5 = vpop.f32.mrf.mxu0  ;;  %v4234_v8 = vpop.f32.mrf.mxu1  ;;  %4507 = vmatprep.subr.bf16.mxu0 %v4779_v57  ;;  %4527 = vmatprep.subr.bf16.mxu1 %v4797_v44  ;;  %v4803_v57 = vld [vmem:[%s7151_s5 + $0xd8] sm:$0xff]  }
 0x2ab   :  { %v4235_v62 = vadd.f32 %v4234_v8, %v4233_v13  ;;  %v4799_v13 = vld [vmem:[%s7151_s5 + $0xe8] sm:$0xff]  }
 0x2ac   :  { %v4236_v61 = vpop.f32.mrf.mxu1 }
 0x2ad   :  { %v6857_v26 = vadd.f32 %v4235_v62, %v1923_v19  ;;  %4508 = vmatpush3.bf16.msra.mxu0 %v4780_v52  ;;  %4528 = vmatpush3.bf16.msra.mxu1 %v4798_v43  ;;  %v4800_v19 = vld [vmem:[%s7151_s5 + $0xa8] sm:$0xff]   ;;  %v4801_v61 = vld [vmem:[%s7151_s5 + $0xe0] sm:$0xff]   ;;  %v4804_v52 = vld [vmem:[%s7151_s5 + $0x98] sm:$0xff]  }
 0x2ae   :  { %v4237_v1 = vpop.f32.mrf.mxu1  ;;  %4509 = vmatprep.subr.bf16.mxu0 %v4781_v40  ;;  %4529 = vmatprep.subr.bf16.mxu1 %v4799_v13  ;;  %v4805_v40 = vld [vmem:[%s7151_s5 + $0xd0] sm:$0xff]  }
 0x2b1   :  { %4510 = vmatpush3.bf16.msra.mxu0 %v4782_v31  ;;  %4530 = vmatpush3.bf16.msra.mxu1 %v4800_v19  ;;  %v4806_v31 = vld [vmem:[%s7151_s5 + $0x90] sm:$0xff]  }
 0x2b2   :  { %4511 = vmatprep.subr.bf16.mxu0 %v4783_v63  ;;  %4531 = vmatprep.subr.bf16.mxu1 %v4801_v61  ;;  %v4807_v63 = vld [vmem:[%s7151_s5 + $0xc8] sm:$0xff]  }
 0x2b5   :  { %4512 = vmatpush3.bf16.msra.mxu0 %v4784_v4  ;;  %4532 = vmatpush3.bf16.msra.mxu1 %v4802_v12  ;;  %v4808_v4 = vld [vmem:[%s7151_s5 + $0x88] sm:$0xff]  }
 0x2b6   :  { %4513 = vmatprep.subr.bf16.mxu0 %v4785_v15  ;;  %4533 = vmatprep.subr.bf16.mxu1 %v4803_v57  ;;  %v4809_v15 = vld [vmem:[%s7151_s5 + $0xc0] sm:$0xff]   ;;  %v4814_v12 = vld [vmem:[%s7153_s7 + $0x68] ss:$16 sps:$4 sm:$0xff]  }
 0x2b9   :  { %4514 = vmatpush3.bf16.msra.mxu0 %v4786_v24  ;;  %4534 = vmatpush3.bf16.msra.mxu1 %v4804_v52  ;;  %v4810_v24 = vld [vmem:[%s7151_s5 + $0x80] sm:$0xff]  }
 0x2ba   :  { %4515 = vmatprep.subr.bf16.mxu0 %v4787_v10  ;;  %4535 = vmatprep.subr.bf16.mxu1 %v4805_v40 }
 0x2bd   :  { %4516 = vmatpush3.bf16.msra.mxu0 %v4788_v38  ;;  %4536 = vmatpush3.bf16.msra.mxu1 %v4806_v31 }
 0x2be   :  { %4517 = vmatprep.subr.bf16.mxu0 %v4789_v35  ;;  %4537 = vmatprep.subr.bf16.mxu1 %v4807_v63 }
 0x2c1   :  { %4518 = vmatpush3.bf16.msra.mxu0 %v4790_v56  ;;  %4538 = vmatpush3.bf16.msra.mxu1 %v4808_v4 }
 0x2c2   :  { %4692 = vmatprep.subr.bf16.mxu0 %v4924_v16  ;;  %4539 = vmatprep.subr.bf16.mxu1 %v4809_v15  ;;  %v4811_v15 = vld [vmem:[%s7153_s7 + $0x60] ss:$16 sps:$4 sm:$0xff]  }
 0x2c4   :  { %v4255_v20 = vpop.f32.mrf.mxu0 }
 0x2c5   :  { %4540 = vmatpush3.bf16.msra.mxu1 %v4810_v24 }
 0x2c6   :  { %v4256_v34 = vpop.f32.mrf.mxu0 }
 0x2c7   :  { %v4257_v46 = vadd.f32 %v4256_v34, %v4255_v20 }
 0x2c8   :  { %v4258_v18 = vpop.f32.mrf.mxu0  ;;  %v4277_v28 = vpop.f32.mrf.mxu1 }
 0x2c9   :  { %v2069_v0 = vadd.f32 %v4257_v46, %v6762_v30 }
 0x2ca   :  { %v4259_v2 = vpop.f32.mrf.mxu0  ;;  %v4278_v21 = vpop.f32.mrf.mxu1 }
 0x2cb   :  { %v4279_v32 = vadd.f32 %v4278_v21, %v4277_v28 }
 0x2cc   :  { %v4280_v53 = vpop.f32.mrf.mxu1 }
 0x2cd   :  { %v2109_v50 = vadd.f32 %v4279_v32, %v2069_v0  ;;  %v1968_v32 = vmax.f32 %v6857_v26, 0.0  ;;  %v1610_v53 = vmax.f32 %v6769_v25, 0.0  ;;  %v4792_v25 = vld [vmem:[%s7151_s5 + $0x110] sm:$0xff]  }
 0x2ce   :  { %v4281_v27 = vpop.f32.mrf.mxu1 }
 0x2cf   :  { %v2114_v59 = vmax.f32 %v2109_v50, 0.0  ;;  %v1969_v50 = vpack.c.bf16 %v1968_v32, %v1968_v32  ;;  %v4828_v32 = vld [vmem:[%s7153_s7 + $0x2c] ss:$16 sps:$4 sm:$0xff]  }
 0x2d1   :  { %v2115_v17 = vpack.c.bf16 %v2114_v59, %v2114_v59 }
 0x2d3   :  { %2859 = vrot.lane.b32.xlu0 %v2115_v17, %s4922_s21  ;;  %v1611_v17 = vpack.c.bf16 %v1610_v53, %v1610_v53  ;;  %v4831_v53 = vld [vmem:[%s7153_s7 + $0x4] ss:$16 sps:$4 sm:$0xff]  }
 0x2e4   :  { %v4299_v42 = vpop.f32.mrf.mxu0 }
 0x2e6   :  { %v4300_v7 = vpop.f32.mrf.mxu0 }
 0x2e7   :  { %v4301_v51 = vadd.f32 %v4300_v7, %v4299_v42  ;;  %v4791_v7 = vld [vmem:[%s7151_s5 + $0x118] sm:$0xff]  }
 0x2e8   :  { %v4302_v6 = vpop.f32.mrf.mxu0  ;;  %v4321_v9 = vpop.f32.mrf.mxu1 }
 0x2e9   :  { %v2199_v23 = vadd.f32 %v4301_v51, %v6762_v30 }
 0x2ea   :  { %v4303_v39 = vpop.f32.mrf.mxu0  ;;  %v4322_v60 = vpop.f32.mrf.mxu1 }
 0x2eb   :  { %v4323_v33 = vadd.f32 %v4322_v60, %v4321_v9 }
 0x2ec   :  { %v4324_v11 = vpop.f32.mrf.mxu1 }
 0x2ed   :  { %v6905_v14 = vadd.f32 %v4323_v33, %v2199_v23 }
 0x2ee   :  { %v4325_v49 = vpop.f32.mrf.mxu1 }
 0x2ef   :  { %v2244_v52 = vmax.f32 %v6905_v14, 0.0  ;;  %v4817_v14 = vld [vmem:[%s7153_s7 + $0x40] ss:$16 sps:$4 sm:$0xff]  }
 0x2f1   :  { %v2245_v63 = vpack.c.bf16 %v2244_v52, %v2244_v52  ;;  %v4858_v52 = vld [vmem:[%s7155_s9 + $0x90] sm:$0xff]  }
 0x304   :  { %v4343_v29 = vpop.f32.mrf.mxu0 }
 0x305   :  { %v2857_v27 = vpop.permute.xlu1 %2856 }
 0x306   :  { %v4344_v45 = vpop.f32.mrf.mxu0  ;;  %v2869_v9 = vsel %vm368_vm0, %v1611_v17, %v2857_v27  ;;  %v4829_v27 = vld [vmem:[%s7153_s7] ss:$16 sps:$4 sm:$0xff]   ;;  %v4835_v17 = vld [vmem:[%s7155_s9 + $0x78] sm:$0xff]  }
 0x307   :  { %v4345_v36 = vadd.f32 %v4344_v45, %v4343_v29 }
 0x308   :  { %v4346_v58 = vpop.f32.mrf.mxu0  ;;  %v4365_v37 = vpop.f32.mrf.mxu1 }
 0x309   :  { %v2329_v55 = vadd.f32 %v4345_v36, %v6762_v30  ;;  %v4794_v58 = vld [vmem:[%s7151_s5 + $0x100] sm:$0xff]  }
 0x30a   :  { %v4347_v47 = vpop.f32.mrf.mxu0  ;;  %v4366_v3 = vpop.f32.mrf.mxu1 }
 0x30b   :  { %v4367_v54 = vadd.f32 %v4366_v3, %v4365_v37 }
 0x30c   :  { %v4368_v5 = vpop.f32.mrf.mxu1 }
 0x30d   :  { %v2369_v8 = vadd.f32 %v4367_v54, %v2329_v55 }
 0x30e   :  { %v4369_v62 = vpop.f32.mrf.mxu1 }
 0x30f   :  { %v2374_v1 = vmax.f32 %v2369_v8, 0.0 }
 0x311   :  { %v2375_v41 = vpack.c.bf16 %v2374_v1, %v2374_v1 }
 0x313   :  { %2862 = vrot.lane.b32.xlu1 %v2375_v41, %s4922_s21 }
 0x324   :  { %v4387_v10 = vpop.f32.mrf.mxu0 }
 0x326   :  { %v4388_v20 = vpop.f32.mrf.mxu0 }
 0x327   :  { %v4389_v38 = vadd.f32 %v4388_v20, %v4387_v10 }
 0x328   :  { %v4390_v35 = vpop.f32.mrf.mxu0  ;;  %v4409_v34 = vpop.f32.mrf.mxu1 }
 0x329   :  { %v2475_v28 = vadd.f32 %v4389_v38, %v6762_v30  ;;  %v4819_v38 = vld [vmem:[%s7153_s7 + $0x44] ss:$16 sps:$4 sm:$0xff]   ;;  %v4820_v35 = vld [vmem:[%s7153_s7 + $0x48] ss:$16 sps:$4 sm:$0xff]  }
 0x32a   :  { %v4391_v46 = vpop.f32.mrf.mxu0  ;;  %v4410_v18 = vpop.f32.mrf.mxu1 }
 0x32b   :  { %v4411_v56 = vadd.f32 %v4410_v18, %v4409_v34  ;;  %v4822_v34 = vld [vmem:[%s7153_s7 + $0x4c] ss:$16 sps:$4 sm:$0xff]  }
 0x32c   :  { %v4412_v2 = vpop.f32.mrf.mxu1 }
 0x32d   :  { %v6958_v21 = vadd.f32 %v4411_v56, %v2475_v28  ;;  %v4823_v2 = vld [vmem:[%s7153_s7 + $0x20] ss:$16 sps:$4 sm:$0xff]  }
 0x32e   :  { %v4413_v0 = vpop.f32.mrf.mxu1 }
 0x32f   :  { %v2520_v57 = vmax.f32 %v6958_v21, 0.0  ;;  %v4825_v21 = vld [vmem:[%s7153_s7 + $0x24] ss:$16 sps:$4 sm:$0xff]   ;;  %v4826_v0 = vld [vmem:[%s7153_s7 + $0x28] ss:$16 sps:$4 sm:$0xff]  }
 0x331   :  { %v2521_v40 = vpack.c.bf16 %v2520_v57, %v2520_v57  ;;  %v4857_v57 = vld [vmem:[%s7155_s9 + $0x10] sm:$0xff]  }
 0x344   :  { %v4431_v59 = vpop.f32.mrf.mxu0 }
 0x345   :  { %v2860_v42 = vpop.permute.xlu0 %2859 }
 0x346   :  { %v4432_v51 = vpop.f32.mrf.mxu0  ;;  %v2873_v6 = vsel %vm368_vm0, %v1969_v50, %v2860_v42  ;;  %v4834_v50 = vld [vmem:[%s7153_s7 + $0xc] ss:$16 sps:$4 sm:$0xff]   ;;  %v4926_v42 = vmov 0  }
 0x347   :  { %v4433_v39 = vadd.f32 %v4432_v51, %v4431_v59  ;;  %3140 = vmatprep.mubr.bf16.mxu0 %v2873_v6  ;;  %v4832_v59 = vld [vmem:[%s7153_s7 + $0x8] ss:$16 sps:$4 sm:$0xff]  }
 0x348   :  { %v4434_v60 = vpop.f32.mrf.mxu0  ;;  %v4453_v26 = vpop.f32.mrf.mxu1  ;;  %3141 = vmatmul.mubr.bf16.vlgmr.msra.gmra.mxu0 %v2869_v9 }
 0x349   :  { %4693 = vmatpush3.bf16.msra.mxu0 %v4791_v7  ;;  %4700 = vmatprep.mubr.msk.bf16.mxu0 %vm4925_vm9, %v4924_v16  ;;  %v2605_v11 = vadd.f32 %v4433_v39, %v6762_v30  ;;  %v4836_v7 = vld [vmem:[%s7155_s9 + $0xf8] sm:$0xff]   ;;  %v3954_v60 = vld [vmem:[%s7152_s6] ss:$0 sm:$0xff] }
 0x34a   :  { %v4435_v23 = vpop.f32.mrf.mxu0  ;;  %v4454_v33 = vpop.f32.mrf.mxu1  ;;  %4694 = vmatprep.subr.bf16.mxu0 %v4924_v16 }
 0x34b   :  { %v4455_v49 = vadd.f32 %v4454_v33, %v4453_v26 }
 0x34c   :  { %v4456_v29 = vpop.f32.mrf.mxu1 }
 0x34d   :  { %v2645_v45 = vadd.f32 %v4455_v49, %v2605_v11  ;;  %4695 = vmatpush3.bf16.msra.mxu0 %v4792_v25 }
 0x34e   :  { %v4457_v22 = vpop.f32.mrf.mxu1  ;;  %4696 = vmatprep.subr.bf16.mxu0 %v4924_v16 }
 0x34f   :  { %v2650_v44 = vmax.f32 %v2645_v45, 0.0  ;;  %v4837_v22 = vld [vmem:[%s7155_s9 + $0x38] sm:$0xff]  }
 0x351   :  { %v2651_v36 = vpack.c.bf16 %v2650_v44, %v2650_v44  ;;  %4697 = vmatpush3.bf16.msra.mxu0 %v4793_v48  ;;  %v4838_v44 = vld [vmem:[%s7155_s9 + $0xb8] sm:$0xff]  }
 0x352   :  { %4698 = vmatprep.subr.bf16.mxu0 %v4924_v16  ;;  %v4813_v16 = vld [vmem:[%s7153_s7 + $0x64] ss:$16 sps:$4 sm:$0xff]  }
 0x353   :  { %2865 = vrot.lane.b32.xlu0 %v2651_v36, %s4922_s21  ;;  %3359 = vmatprep.subr.bf16.mxu1 %v4813_v16  ;;  %v4854_v16 = vld [vmem:[%s7155_s9 + $0x98] sm:$0xff]  }
 0x355   :  { %4699 = vmatpush3.bf16.msra.mxu0 %v4794_v58  ;;  %v4839_v58 = vld [vmem:[%s7155_s9 + $0x70] sm:$0xff]  }
 0x364   :  { %v4475_v37 = vpop.f32.mrf.mxu0 }
 0x366   :  { %v4476_v43 = vpop.f32.mrf.mxu0 }
 0x367   :  { %v4477_v47 = vadd.f32 %v4476_v43, %v4475_v37  ;;  %v4840_v37 = vld [vmem:[%s7155_s9 + $0xf0] sm:$0xff]  }
 0x368   :  { %v4478_v3 = vpop.f32.mrf.mxu0  ;;  %v4497_v13 = vpop.f32.mrf.mxu1  ;;  %v4841_v43 = vld [vmem:[%s7155_s9 + $0x30] sm:$0xff]  }
 0x369   :  { %v2735_v5 = vadd.f32 %v4477_v47, %v6762_v30  ;;  %v4816_v30 = vld [vmem:[%s7153_s7 + $0x6c] ss:$16 sps:$4 sm:$0xff]   ;;  %v4842_v47 = vld [vmem:[%s7155_s9 + $0xb0] sm:$0xff]  }
 0x36a   :  { %v4479_v55 = vpop.f32.mrf.mxu0  ;;  %v4498_v54 = vpop.f32.mrf.mxu1  ;;  %3400 = vmatprep.subr.bf16.mxu0 %v4816_v30  ;;  %v4843_v3 = vld [vmem:[%s7155_s9 + $0x68] sm:$0xff]   ;;  %v4856_v30 = vld [vmem:[%s7155_s9 + $0xd0] sm:$0xff]  }
 0x36b   :  { %v4499_v8 = vadd.f32 %v4498_v54, %v4497_v13  ;;  %v4844_v13 = vld [vmem:[%s7155_s9 + $0xe8] sm:$0xff]  }
 0x36c   :  { %v4500_v19 = vpop.f32.mrf.mxu1  ;;  %v4845_v55 = vld [vmem:[%s7155_s9 + $0x28] sm:$0xff]  }
 0x36d   :  { %v2775_v62 = vadd.f32 %v4499_v8, %v2735_v5  ;;  %v4846_v54 = vld [vmem:[%s7155_s9 + $0xa8] sm:$0xff]   ;;  %v4847_v5 = vld [vmem:[%s7155_s9 + $0x60] sm:$0xff]  }
 0x36e   :  { %v4501_v61 = vpop.f32.mrf.mxu1  ;;  %v4848_v8 = vld [vmem:[%s7155_s9 + $0xe0] sm:$0xff]  }
 0x36f   :  { %v2780_v1 = vmax.f32 %v2775_v62, 0.0  ;;  %v4849_v19 = vld [vmem:[%s7155_s9 + $0x20] sm:$0xff]   ;;  %v4851_v61 = vld [vmem:[%s7155_s9 + $0x58] sm:$0xff]  }
 0x370   :  { %v4850_v62 = vld [vmem:[%s7155_s9 + $0xa0] sm:$0xff]  }
 0x371   :  { %v2781_v41 = vpack.c.bf16 %v2780_v1, %v2780_v1  ;;  %v4852_v1 = vld [vmem:[%s7155_s9 + $0xd8] sm:$0xff]  }
 0x373   :  { %4701 = vmatmul.mubr.msk.bf16.vlgmr.msra.gmra.mxu0 %vm368_vm0, %v2781_v41  ;;  %v4853_v41 = vld [vmem:[%s7155_s9 + $0x18] sm:$0xff]  }
 0x374   :  { %3401 = vmatpush1.bf16.msra.mxu0 %v4814_v12  ;;  %3424 = vmatprep.mubr.bf16.mxu0 %v4926_v42  ;;  %v4855_v12 = vld [vmem:[%s7155_s9 + $0x50] sm:$0xff]  }
 0x375   :  { %3402 = vmatprep.subr.bf16.mxu0 %v4822_v34 }
 0x378   :  { %3403 = vmatpush1.bf16.msra.mxu0 %v4820_v35 }
 0x379   :  { %3404 = vmatprep.subr.bf16.mxu0 %v4828_v32 }
 0x37c   :  { %3405 = vmatpush1.bf16.msra.mxu0 %v4826_v0 }
 0x37d   :  { %3406 = vmatprep.subr.bf16.mxu0 %v4834_v50 }
 0x380   :  { %3407 = vmatpush1.bf16.msra.mxu0 %v4832_v59 }
 0x381   :  { %4574 = vmatprep.subr.bf16.mxu0 %v4836_v7 }
 0x385   :  { %v2863_v31 = vpop.permute.xlu1 %2862 }
 0x386   :  { %v2877_v10 = vsel %vm368_vm0, %v2245_v63, %v2863_v31  ;;  %v4860_v31 = vld [vmem:[%s7155_s9 + $0xc8] sm:$0xff]  }
 0x387   :  { %v4861_v63 = vld [vmem:[%s7155_s9 + $0x8] sm:$0xff]  }
 0x3c5   :  { %v2866_v4 = vpop.permute.xlu0 %2865 }
 0x3c6   :  { %v2881_v24 = vsel %vm368_vm0, %v2521_v40, %v2866_v4  ;;  %v4859_v40 = vld [vmem:[%s7155_s9 + $0x48] sm:$0xff]  }
 0x3c7   :  { %3180 = vmatprep.mubr.bf16.mxu1 %v2881_v24  ;;  %v4862_v4 = vld [vmem:[%s7155_s9 + $0x88] sm:$0xff]   ;;  %v4864_v24 = vld [vmem:[%s7155_s9 + $0xc0] sm:$0xff]  }
 0x3c8   :  { %3181 = vmatmul.mubr.bf16.vlgmr.msra.gmra.mxu1 %v2877_v10  ;;  %v4865_v10 = vld [vmem:[%s7155_s9] sm:$0xff]  }
 0x3c9   :  { %3360 = vmatpush1.bf16.msra.mxu1 %v4811_v15  ;;  %3383 = vmatprep.mubr.bf16.mxu1 %v4926_v42  ;;  %v4863_v15 = vld [vmem:[%s7155_s9 + $0x40] sm:$0xff]  }
 0x3ca   :  { %3361 = vmatprep.subr.bf16.mxu1 %v4819_v38 }
 0x3cd   :  { %3362 = vmatpush1.bf16.msra.mxu1 %v4817_v14  ;;  %v3248_v14 = vlaneseq }
 0x3ce   :  { %3363 = vmatprep.subr.bf16.mxu1 %v4825_v21 }
 0x3cf   :  { %v3249_v38 = vshrl.u32 %v3248_v14, 7 }
 0x3d1   :  { %3364 = vmatpush1.bf16.msra.mxu1 %v4823_v2  ;;  %v3250_v35 = vsub.s32 0, %v3249_v38  ;;  %v3258_v34 = vsub.s32 2, %v3249_v38 }
 0x3d2   :  { %3365 = vmatprep.subr.bf16.mxu1 %v4831_v53 }
 0x3d5   :  { %3366 = vmatpush1.bf16.msra.mxu1 %v4829_v27 }
 0x3d6   :  { %4552 = vmatprep.subr.bf16.mxu1 %v4835_v17 }
 0x408   :  { %v4519_v20 = vpop.f32.mrf.mxu0 }
 0x40a   :  { %v4520_v46 = vpop.f32.mrf.mxu0 }
 0x40b   :  { %v4521_v18 = vadd.f32 %v4520_v46, %v4519_v20  ;;  %v4866_v20 = vld [vmem:[%s7155_s9 + $0x80] sm:$0xff]  }
 0x40c   :  { %v4522_v28 = vpop.f32.mrf.mxu0  ;;  %v3246_v46 = vld [vmem:[%s7154_s8] sm:$0xf] }
 0x40d   :  { %v3143_v23 = vadd.f32 %v4521_v18, %v3954_v60  ;;  %v3254_v18 = vsub.s32 1, %v3249_v38  ;;  %v3262_v28 = vsub.s32 3, %v3249_v38  ;;  %v3259_v2 = vrot.slane %v3246_v46, %v3258_v34 }
 0x40e   :  { %v4523_v56 = vpop.f32.mrf.mxu0 }
 0x40f   :  { %v3251_v56 = vrot.slane %v3246_v46, %v3250_v35  ;;  %v3255_v21 = vrot.slane %v3246_v46, %v3254_v18  ;;  %v3263_v0 = vrot.slane %v3246_v46, %v3262_v28 }
 0x433   :  { %v3222_v51 = vpop.f32.mrf.mxu0 }
 0x435   :  { %v4702_v6 = vpop.f32.mrf.mxu0 }
 0x437   :  { %v3225_v9 = vpop.f32.mrf.mxu0 }
 0x439   :  { %v4703_v39 = vpop.f32.mrf.mxu0 }
 0x488   :  { %v4541_v26 = vpop.f32.mrf.mxu1 }
 0x48a   :  { %v4542_v25 = vpop.f32.mrf.mxu1 }
 0x48b   :  { %v4543_v33 = vadd.f32 %v4542_v25, %v4541_v26 }
 0x48c   :  { %v4544_v11 = vpop.f32.mrf.mxu1 }
 0x48d   :  { %v3183_v49 = vadd.f32 %v4543_v33, %v3143_v23 }
 0x48e   :  { %v4545_v29 = vpop.f32.mrf.mxu1 }
 0x48f   :  { %v3223_v45 = vadd.f32 %v3222_v51, %v3183_v49 }
 0x491   :  { %v3228_v48 = vmax.f32 %v3223_v45, 0.0 }
 0x493   :  { %v3229_v36 = vpack.c.bf16 %v3228_v48, %v3228_v48 }
 0x495   :  { %4008 = vmatmul.mubr.msk.bf16.vlgmr.msra.gmra.mxu1 %vm368_vm0, %v3229_v36  ;;  %4009 = vmatmul.mubr.msk.bf16.vlgmr.msra.gmra.mxu0 %vm368_vm0, %v3229_v36 }
 0x496   :  { %4553 = vmatpush3.bf16.msra.mxu1 %v4837_v22  ;;  %4575 = vmatpush3.bf16.msra.mxu0 %v4838_v44  ;;  %v4010_v22 = vld [vmem:[%s7156_s10] ss:$0 sm:$0xff] }
 0x497   :  { %4554 = vmatprep.subr.bf16.mxu1 %v4839_v58  ;;  %4576 = vmatprep.subr.bf16.mxu0 %v4840_v37 }
 0x49a   :  { %4555 = vmatpush3.bf16.msra.mxu1 %v4841_v43  ;;  %4577 = vmatpush3.bf16.msra.mxu0 %v4842_v47 }
 0x49b   :  { %4556 = vmatprep.subr.bf16.mxu1 %v4843_v3  ;;  %4578 = vmatprep.subr.bf16.mxu0 %v4844_v13 }
 0x49e   :  { %4557 = vmatpush3.bf16.msra.mxu1 %v4845_v55  ;;  %4579 = vmatpush3.bf16.msra.mxu0 %v4846_v54 }
 0x49f   :  { %4558 = vmatprep.subr.bf16.mxu1 %v4847_v5  ;;  %4580 = vmatprep.subr.bf16.mxu0 %v4848_v8 }
 0x4a2   :  { %4559 = vmatpush3.bf16.msra.mxu1 %v4849_v19  ;;  %4581 = vmatpush3.bf16.msra.mxu0 %v4850_v62 }
 0x4a3   :  { %4560 = vmatprep.subr.bf16.mxu1 %v4851_v61  ;;  %4582 = vmatprep.subr.bf16.mxu0 %v4852_v1 }
 0x4a6   :  { %4561 = vmatpush3.bf16.msra.mxu1 %v4853_v41  ;;  %4583 = vmatpush3.bf16.msra.mxu0 %v4854_v16 }
 0x4a7   :  { %4562 = vmatprep.subr.bf16.mxu1 %v4855_v12  ;;  %4584 = vmatprep.subr.bf16.mxu0 %v4856_v30 }
 0x4aa   :  { %4563 = vmatpush3.bf16.msra.mxu1 %v4857_v57  ;;  %4585 = vmatpush3.bf16.msra.mxu0 %v4858_v52 }
 0x4ab   :  { %4564 = vmatprep.subr.bf16.mxu1 %v4859_v40  ;;  %4586 = vmatprep.subr.bf16.mxu0 %v4860_v31 }
 0x4ae   :  { %4565 = vmatpush3.bf16.msra.mxu1 %v4861_v63  ;;  %4587 = vmatpush3.bf16.msra.mxu0 %v4862_v4 }
 0x4af   :  { %4566 = vmatprep.subr.bf16.mxu1 %v4863_v15  ;;  %4588 = vmatprep.subr.bf16.mxu0 %v4864_v24 }
 0x4b2   :  { %4567 = vmatpush3.bf16.msra.mxu1 %v4865_v10  ;;  %4589 = vmatpush3.bf16.msra.mxu0 %v4866_v20 }
 0x555   :  { %v3385_v32 = vpop.f32.mrf.mxu1  ;;  %v3426_v53 = vpop.f32.mrf.mxu0 }
 0x556   :  { %v3386_v50 = vadd.f32 %v3385_v32, %v3251_v56  ;;  %v3427_v27 = vadd.f32 %v3426_v53, %v3259_v2 }
 0x557   :  { %v3387_v59 = vpop.f32.mrf.mxu1  ;;  %v3428_v17 = vpop.f32.mrf.mxu0 }
 0x558   :  { %v3388_v42 = vadd.f32 %v3387_v59, %v3255_v21  ;;  %v3429_v7 = vadd.f32 %v3428_v17, %v3263_v0  ;;  %v3433_v51 = vmax.f32 %v3386_v50, 0.0  ;;  %v3435_v6 = vmax.f32 %v3427_v27, 0.0 }
 0x559   :  { %v3389_v9 = vpop.f32.mrf.mxu1  ;;  %v3430_v39 = vpop.f32.mrf.mxu0 }
 0x55a   :  { %v3434_v60 = vmax.f32 %v3388_v42, 0.0  ;;  %v3436_v26 = vmax.f32 %v3429_v7, 0.0  ;;  %v3437_v49 = vpack.c.bf16 %v3433_v51, %v3433_v51  ;;  %v3439_v29 = vpack.c.bf16 %v3435_v6, %v3435_v6 }
 0x55b   :  { %v3390_v25 = vpop.f32.mrf.mxu1  ;;  %v3431_v23 = vpop.f32.mrf.mxu0 }
 0x55c   :  { %v3438_v33 = vpack.c.bf16 %v3434_v60, %v3434_v60  ;;  %v3440_v11 = vpack.c.bf16 %v3436_v26, %v3436_v26 }
 0x55e   :  { %3736 = vmatprep.mubr.bf16.mxu1 %v3438_v33  ;;  %3776 = vmatprep.mubr.bf16.mxu0 %v3440_v11 }
 0x55f   :  { %3737 = vmatmul.mubr.bf16.vlgmr.msra.gmra.mxu1 %v3437_v49  ;;  %3777 = vmatmul.mubr.bf16.vlgmr.msra.gmra.mxu0 %v3439_v29 }
 0x61f   :  { %v4568_v45 = vpop.f32.mrf.mxu1  ;;  %v4590_v48 = vpop.f32.mrf.mxu0 }
 0x621   :  { %v4569_v44 = vpop.f32.mrf.mxu1  ;;  %v4591_v36 = vpop.f32.mrf.mxu0 }
 0x622   :  { %v4570_v58 = vadd.f32 %v4569_v44, %v4568_v45  ;;  %v4592_v3 = vadd.f32 %v4591_v36, %v4590_v48 }
 0x623   :  { %v4571_v37 = vpop.f32.mrf.mxu1  ;;  %v4593_v43 = vpop.f32.mrf.mxu0 }
 0x624   :  { %v3739_v47 = vadd.f32 %v4570_v58, %v4010_v22 }
 0x625   :  { %v4572_v13 = vpop.f32.mrf.mxu1  ;;  %v4594_v55 = vpop.f32.mrf.mxu0 }
 0x626   :  { %v3779_v54 = vadd.f32 %v4592_v3, %v3739_v47 }
 0x628   :  { %3785 = vst.msk [vmem:[#allocation2] sm:$0x3] %vm3784_vm10, %v3779_v54 }
 0x629   :  { %4910 = shalt.err (!%p4907_p4)
}
 0x62a   :  { %3795 = dma.vmem_to_hbm [thread:$0]  %s3793_s3, 32, %s7157_s11, [#allocation3]  }
 0x62b   :  { %4919 = dma.done.wait [#allocation3], 32  }
 0x62c   :  { %4920 = vsyncadd [#allocation3], 4294967264 }
 0x62d   :  { %3799 = vsyncpa [#allocation3], 1 }

</bundles_post_ra>
